<compile_context>
chip_gen: v5e
topology: v5e:2x2
jax: 0.10.0
libtpu: 0.0.40
codegen_flags: <defaults>
</compile_context>

<pallas_src>
import functools
import math

import jax
import jax.numpy as jnp
from jax.experimental import pallas as pl
from jax.experimental.pallas import tpu as pltpu


def _round_up(x, m):
    return ((x + m - 1) // m) * m


def _layernorm(v, g, b, eps=1e-5):
    mu = jnp.mean(v, axis=-1, keepdims=True)
    var = jnp.mean((v - mu) ** 2, axis=-1, keepdims=True)
    return (v - mu) * jax.lax.rsqrt(var + eps) * g + b


# ---------------- patch embedding kernel: Linear(C*p*p -> E) ------------------

def _embed_kernel(x_ref, w_ref, b_ref, o_ref):
    # x_ref: (TM, Dp) bf16, w_ref: (Dp, E) bf16, b_ref: (1, E) f32
    o_ref[...] = (
        jnp.dot(x_ref[...], w_ref[...], preferred_element_type=jnp.float32)
        + b_ref[...]
    )


def patch_embed(xp_flat, w_in, b_in):
    M, Dp = xp_flat.shape
    E = w_in.shape[1]
    TM = min(256, _round_up(M, 8))          # row tile; 256 at real sizes
    M_pad = _round_up(M, TM)
    if M_pad != M:
        xp_flat = jnp.pad(xp_flat, ((0, M_pad - M), (0, 0)))
    out = pl.pallas_call(
        _embed_kernel,
        out_shape=jax.ShapeDtypeStruct((M_pad, E), jnp.float32),
        grid=(M_pad // TM,),
        in_specs=[
            pl.BlockSpec((TM, Dp), lambda i: (i, 0)),
            pl.BlockSpec((Dp, E), lambda i: (0, 0)),
            pl.BlockSpec((1, E), lambda i: (0, 0)),
        ],
        out_specs=pl.BlockSpec((TM, E), lambda i: (i, 0)),
        compiler_params=pltpu.CompilerParams(
            dimension_semantics=("parallel",)),
    )(xp_flat.astype(jnp.bfloat16), w_in, b_in)
    return out[:M]


# ---------------- fused transformer (AttentionBlock) kernel -------------------

def _make_block_kernel(S_pad, S, E, nH):
    hd = E // nH
    scale = 1.0 / math.sqrt(hd)
    inv_sqrt2 = 0.7071067811865476

    def kernel(x_ref, ln1g_ref, ln1b_ref, wqkv_ref, bqkv_ref, wo_ref, bo_ref,
               ln2g_ref, ln2b_ref, w1_ref, b1_ref, w2_ref, b2_ref, o_ref):
        x = x_ref[0]                                          # (S_pad, E) f32

        # --- multi-head self-attention (pre-LN) ---
        xn = _layernorm(x, ln1g_ref[...], ln1b_ref[...])
        qkv = jnp.dot(xn.astype(jnp.bfloat16), wqkv_ref[...],
                      preferred_element_type=jnp.float32) + bqkv_ref[...]

        # mask out padded key positions (>= S)
        kmask = jax.lax.broadcasted_iota(jnp.int32, (1, S_pad), 1) < S

        heads = []
        for hi in range(nH):                                  # nH small; B is on grid
            c0 = hi * hd
            qh = qkv[:, c0:c0 + hd].astype(jnp.bfloat16)
            kh = qkv[:, E + c0:E + c0 + hd].astype(jnp.bfloat16)
            vh = qkv[:, 2 * E + c0:2 * E + c0 + hd].astype(jnp.bfloat16)
            s = jax.lax.dot_general(
                qh, kh, (((1,), (1,)), ((), ())),
                preferred_element_type=jnp.float32) * scale   # (S_pad, S_pad)
            s = jnp.where(kmask, s, -1e30)
            s = s - jnp.max(s, axis=-1, keepdims=True)
            p = jnp.exp(s)
            p = p * pl.reciprocal(jnp.sum(p, axis=-1, keepdims=True),
                                  approx=True)
            heads.append(jnp.dot(p.astype(jnp.bfloat16), vh,
                                 preferred_element_type=jnp.float32))
        ctx = jnp.concatenate(heads, axis=-1)                 # (S_pad, E) f32
        attn_out = jnp.dot(ctx.astype(jnp.bfloat16), wo_ref[...],
                           preferred_element_type=jnp.float32) + bo_ref[...]
        x = x + attn_out

        # --- MLP (pre-LN), exact (erf-based) GELU like nn.GELU() ---
        xn2 = _layernorm(x, ln2g_ref[...], ln2b_ref[...])
        h = jnp.dot(xn2.astype(jnp.bfloat16), w1_ref[...],
                    preferred_element_type=jnp.float32) + b1_ref[...]
        h = 0.5 * h * (1.0 + jax.lax.erf(h * inv_sqrt2))
        m = jnp.dot(h.astype(jnp.bfloat16), w2_ref[...],
                    preferred_element_type=jnp.float32) + b2_ref[...]
        o_ref[0] = x + m

    return kernel


def _const_spec(shape):
    # whole-array block, same for every grid step (fetched once, not per step)
    return pl.BlockSpec(shape, lambda b: (0,) * len(shape))


def attention_block(x, layer, *, S, num_heads):
    B, S_pad, E = x.shape
    kernel = _make_block_kernel(S_pad, S, E, num_heads)
    args = (x, layer["ln1_g"], layer["ln1_b"], layer["w_qkv"], layer["b_qkv"],
            layer["w_o"], layer["b_o"], layer["ln2_g"], layer["ln2_b"],
            layer["w1"], layer["b1"], layer["w2"], layer["b2"])
    x_spec = pl.BlockSpec((1, S_pad, E), lambda b: (b, 0, 0))
    in_specs = [x_spec] + [_const_spec(a.shape) for a in args[1:]]
    # NOTE: at real ViT sizes (E=768, Hd=3072) also K/N-tile wqkv/w1/w2 over a
    # second grid axis (or use pl.Buffered(3)) to stay inside v7x's 64 MiB VMEM.
    return pl.pallas_call(
        kernel,
        out_shape=jax.ShapeDtypeStruct((B, S_pad, E), jnp.float32),
        grid=(B,),
        in_specs=in_specs,
        out_specs=x_spec,
        input_output_aliases={0: 0},          # update activations in place
        compiler_params=pltpu.CompilerParams(
            dimension_semantics=("parallel",),
            vmem_limit_bytes=48 * 1024 * 1024),
    )(*args)


# ---------------- classification head kernel: LayerNorm + Linear --------------

def _head_kernel(x_ref, g_ref, b_ref, w_ref, bo_ref, o_ref):
    xn = _layernorm(x_ref[...], g_ref[...], b_ref[...])
    o_ref[...] = jnp.dot(xn.astype(jnp.bfloat16), w_ref[...],
                         preferred_element_type=jnp.float32) + bo_ref[...]


def mlp_head(cls_tok, g, b, w_pad, bo_pad):
    B, _ = cls_tok.shape
    nc_pad = w_pad.shape[1]                   # padded to 128: lane-dense store
    vmem = pl.BlockSpec(memory_space=pltpu.MemorySpace.VMEM)
    return pl.pallas_call(
        _head_kernel,
        out_shape=jax.ShapeDtypeStruct((B, nc_pad), jnp.float32),
        in_specs=[vmem] * 5,
        out_specs=vmem,
    )(cls_tok, g, b, w_pad, bo_pad)


# ---------------- parameters (deterministic synthetic init) -------------------

def init_params(key, *, embed_dim, hidden_dim, num_channels, num_heads,
                num_layers, num_classes, patch_size, num_patches):
    del num_heads
    E, Hd, nc = embed_dim, hidden_dim, num_classes
    Dp = num_channels * patch_size ** 2
    nc_pad = _round_up(nc, 128)
    keys = jax.random.split(key, 4 + num_layers)

    def nrm(k, shape, scale=0.02, dtype=jnp.bfloat16):
        return (scale * jax.random.normal(k, shape)).astype(dtype)

    w_head = nrm(keys[3], (E, nc), dtype=jnp.float32)
    w_head_pad = jnp.zeros((E, nc_pad), jnp.bfloat16)
    w_head_pad = w_head_pad.at[:, :nc].set(w_head.astype(jnp.bfloat16))

    params = {
        "w_in": nrm(keys[0], (Dp, E)),                       # bf16 matmul weight
        "b_in": jnp.zeros((1, E), jnp.float32),
        "cls_token": nrm(keys[1], (1, E), 1.0, jnp.float32),
        "pos_embed": nrm(keys[2], (1 + num_patches, E), 1.0, jnp.float32),
        "head_ln_g": jnp.ones((1, E), jnp.float32),
        "head_ln_b": jnp.zeros((1, E), jnp.float32),
        "w_head_pad": w_head_pad,                            # (E, nc_pad) bf16
        "b_head_pad": jnp.zeros((1, nc_pad), jnp.float32),
        "layers": [],
    }
    for li in range(num_layers):
        lk = jax.random.split(keys[4 + li], 4)
        params["layers"].append({
            "ln1_g": jnp.ones((1, E), jnp.float32),
            "ln1_b": jnp.zeros((1, E), jnp.float32),
            "w_qkv": nrm(lk[0], (E, 3 * E)),   # bf16, in_proj_weight.T layout
            "b_qkv": jnp.zeros((1, 3 * E), jnp.float32),
            "w_o": nrm(lk[1], (E, E)),
            "b_o": jnp.zeros((1, E), jnp.float32),
            "ln2_g": jnp.ones((1, E), jnp.float32),
            "ln2_b": jnp.zeros((1, E), jnp.float32),
            "w1": nrm(lk[2], (E, Hd)),
            "b1": jnp.zeros((1, Hd), jnp.float32),
            "w2": nrm(lk[3], (Hd, E)),
            "b2": jnp.zeros((1, E), jnp.float32),
        })
    return params


# ---------------- full forward pass --------------------------------------------

def vit_forward(x_img, params, *, patch_size, num_heads, num_classes):
    B, C, H, W = x_img.shape
    p = patch_size
    # img_to_patch (pure layout glue, identical to the torch reference)
    xp = x_img.reshape(B, C, H // p, p, W // p, p)
    xp = xp.transpose(0, 2, 4, 1, 3, 5).reshape(
        B * (H // p) * (W // p), C * p * p)
    T = (H // p) * (W // p)
    E = params["w_in"].shape[1]

    emb = patch_embed(xp, params["w_in"], params["b_in"]).reshape(B, T, E)
    cls = jnp.broadcast_to(params["cls_token"][None], (B, 1, E))
    x = jnp.concatenate([cls, emb], axis=1)                  # (B, T+1, E)
    S = T + 1
    x = x + params["pos_embed"][None, :S]
    # dropout_p = 0 -> identity

    # pad sequence to a (8,128)-friendly length; padded keys are masked in the
    # kernel and padded query rows never feed real rows, so semantics match.
    S_pad = _round_up(S, 128)
    x = jnp.pad(x, ((0, 0), (0, S_pad - S), (0, 0)))
    for layer in params["layers"]:
        x = attention_block(x, layer, S=S, num_heads=num_heads)

    cls_out = x[:, 0, :]                                     # (B, E)
    logits = mlp_head(cls_out, params["head_ln_g"], params["head_ln_b"],
                      params["w_head_pad"], params["b_head_pad"])
    return logits[:, :num_classes]


if __name__ == "__main__":
    key = jax.random.PRNGKey(0)
    B, C, Hh, Ww = 2, 4, 16, 16
    patch_size = 4
    num_patches = (Hh // patch_size) * (Ww // patch_size)    # 16 -> S = 17
    cfg = dict(embed_dim=32, hidden_dim=64, num_channels=C, num_heads=4,
               num_layers=2, num_classes=10, patch_size=patch_size,
               num_patches=num_patches)

    pkey, xkey = jax.random.split(key)
    params = init_params(pkey, **cfg)
    x = jax.random.normal(xkey, (B, C, Hh, Ww), dtype=jnp.float32)

    fwd = jax.jit(functools.partial(
        vit_forward, patch_size=patch_size, num_heads=cfg["num_heads"],
        num_classes=cfg["num_classes"]))
    out = jax.block_until_ready(fwd(x, params))
    assert out.shape == (B, cfg["num_classes"]), out.shape
    assert bool(jnp.all(jnp.isfinite(out)))
    print("KERNEL_OK")
</pallas_src>

<mosaic_0001>
module attributes {stable_mosaic.version = 11 : i64} {
  func.func @_embed_kernel(%arg0: i32, %arg1: memref<32x64xbf16, #tpu.memory_space<vmem>>, %arg2: memref<64x32xbf16, #tpu.memory_space<vmem>>, %arg3: memref<1x32xf32, #tpu.memory_space<vmem>>, %arg4: memref<32x32xf32, #tpu.memory_space<vmem>>) attributes {dimension_semantics = [#tpu.dimension_semantics<parallel>], iteration_bounds = array<i64: 1>, scalar_prefetch = 0 : i64, scratch_operands = 0 : i64, tpu.core_type = #tpu.core_type<tc>, window_params = [{transform_indices = @transform_0, window_bounds = array<i64: 32, 64>}, {pipeline_mode = #tpu.pipeline_mode<synchronous>, transform_indices = @transform_1, window_bounds = array<i64: 64, 32>}, {pipeline_mode = #tpu.pipeline_mode<synchronous>, transform_indices = @transform_2, window_bounds = array<i64: 1, 32>}, {transform_indices = @transform_3, window_bounds = array<i64: 32, 32>}]} {
    %c0 = arith.constant 0 : index
    %c0_0 = arith.constant 0 : index
    %0 = vector.load %arg1[%c0, %c0_0] : memref<32x64xbf16, #tpu.memory_space<vmem>>, vector<32x64xbf16>
    %c0_1 = arith.constant 0 : index
    %c0_2 = arith.constant 0 : index
    %1 = vector.load %arg2[%c0_1, %c0_2] : memref<64x32xbf16, #tpu.memory_space<vmem>>, vector<64x32xbf16>
    %cst = arith.constant dense<0.000000e+00> : vector<32x32xf32>
    %2 = tpu.matmul %0, %1, %cst {dimension_numbers = #tpu.dot_dimension_numbers<[1], [0], [0], [1], [0, 0, 1, 1], [], []>} : vector<32x64xbf16>, vector<64x32xbf16>, vector<32x32xf32> -> vector<32x32xf32>
    %c0_3 = arith.constant 0 : index
    %c0_4 = arith.constant 0 : index
    %3 = vector.load %arg3[%c0_3, %c0_4] : memref<1x32xf32, #tpu.memory_space<vmem>>, vector<1x32xf32>
    %4 = vector.broadcast %3 : vector<1x32xf32> to vector<32x32xf32>
    %5 = arith.addf %2, %4 : vector<32x32xf32>
    %c0_5 = arith.constant 0 : index
    %c0_6 = arith.constant 0 : index
    %6 = vector.load %arg4[%c0_5, %c0_6] : memref<32x32xf32, #tpu.memory_space<vmem>>, vector<32x32xf32>
    tpu.vector_store %arg4[%c0_5, %c0_6], %5 {strides = array<i32>} : memref<32x32xf32, #tpu.memory_space<vmem>>, vector<32x32xf32>,
    return
  }
  func.func @transform_0(%arg0: i32) -> (i32, i32) {
    %c0_i32 = arith.constant 0 : i32
    %c0_i32_0 = arith.constant 0 : i32
    return %arg0, %c0_i32 : i32, i32
  }
  func.func @transform_1(%arg0: i32) -> (i32, i32) {
    %c0_i32 = arith.constant 0 : i32
    %c0_i32_0 = arith.constant 0 : i32
    %c0_i32_1 = arith.constant 0 : i32
    return %c0_i32, %c0_i32_0 : i32, i32
  }
  func.func @transform_2(%arg0: i32) -> (i32, i32) {
    %c0_i32 = arith.constant 0 : i32
    %c0_i32_0 = arith.constant 0 : i32
    %c0_i32_1 = arith.constant 0 : i32
    return %c0_i32, %c0_i32_0 : i32, i32
  }
  func.func @transform_3(%arg0: i32) -> (i32, i32) {
    %c0_i32 = arith.constant 0 : i32
    %c0_i32_0 = arith.constant 0 : i32
    return %arg0, %c0_i32 : i32, i32
  }
}

module attributes {stable_mosaic.version = 11 : i64} {
  func.func @kernel(%arg0: i32, %arg1: memref<1x128x32xf32, #tpu.memory_space<vmem>>, %arg2: memref<1x32xf32, #tpu.memory_space<vmem>>, %arg3: memref<1x32xf32, #tpu.memory_space<vmem>>, %arg4: memref<32x96xbf16, #tpu.memory_space<vmem>>, %arg5: memref<1x96xf32, #tpu.memory_space<vmem>>, %arg6: memref<32x32xbf16, #tpu.memory_space<vmem>>, %arg7: memref<1x32xf32, #tpu.memory_space<vmem>>, %arg8: memref<1x32xf32, #tpu.memory_space<vmem>>, %arg9: memref<1x32xf32, #tpu.memory_space<vmem>>, %arg10: memref<32x64xbf16, #tpu.memory_space<vmem>>, %arg11: memref<1x64xf32, #tpu.memory_space<vmem>>, %arg12: memref<64x32xbf16, #tpu.memory_space<vmem>>, %arg13: memref<1x32xf32, #tpu.memory_space<vmem>>, %arg14: memref<1x128x32xf32, #tpu.memory_space<vmem>>) attributes {dimension_semantics = [#tpu.dimension_semantics<parallel>], iteration_bounds = array<i64: 2>, scalar_prefetch = 0 : i64, scratch_operands = 0 : i64, tpu.core_type = #tpu.core_type<tc>, window_params = [{transform_indices = @transform_0, window_bounds = array<i64: 1, 128, 32>}, {pipeline_mode = #tpu.pipeline_mode<synchronous>, transform_indices = @transform_1, window_bounds = array<i64: 1, 32>}, {pipeline_mode = #tpu.pipeline_mode<synchronous>, transform_indices = @transform_2, window_bounds = array<i64: 1, 32>}, {pipeline_mode = #tpu.pipeline_mode<synchronous>, transform_indices = @transform_3, window_bounds = array<i64: 32, 96>}, {pipeline_mode = #tpu.pipeline_mode<synchronous>, transform_indices = @transform_4, window_bounds = array<i64: 1, 96>}, {pipeline_mode = #tpu.pipeline_mode<synchronous>, transform_indices = @transform_5, window_bounds = array<i64: 32, 32>}, {pipeline_mode = #tpu.pipeline_mode<synchronous>, transform_indices = @transform_6, window_bounds = array<i64: 1, 32>}, {pipeline_mode = #tpu.pipeline_mode<synchronous>, transform_indices = @transform_7, window_bounds = array<i64: 1, 32>}, {pipeline_mode = #tpu.pipeline_mode<synchronous>, transform_indices = @transform_8, window_bounds = array<i64: 1, 32>}, {pipeline_mode = #tpu.pipeline_mode<synchronous>, transform_indices = @transform_9, window_bounds = array<i64: 32, 64>}, {pipeline_mode = #tpu.pipeline_mode<synchronous>, transform_indices = @transform_10, window_bounds = array<i64: 1, 64>}, {pipeline_mode = #tpu.pipeline_mode<synchronous>, transform_indices = @transform_11, window_bounds = array<i64: 64, 32>}, {pipeline_mode = #tpu.pipeline_mode<synchronous>, transform_indices = @transform_12, window_bounds = array<i64: 1, 32>}, {transform_indices = @transform_13, window_bounds = array<i64: 1, 128, 32>}]} {
    %c0 = arith.constant 0 : index
    %c0_0 = arith.constant 0 : index
    %c0_1 = arith.constant 0 : index
    %0 = vector.load %arg1[%c0, %c0_0, %c0_1] : memref<1x128x32xf32, #tpu.memory_space<vmem>>, vector<1x128x32xf32>
    %1 = vector.shape_cast %0 : vector<1x128x32xf32> to vector<128x32xf32>
    %c0_2 = arith.constant 0 : index
    %c0_3 = arith.constant 0 : index
    %2 = vector.load %arg2[%c0_2, %c0_3] : memref<1x32xf32, #tpu.memory_space<vmem>>, vector<1x32xf32>
    %c0_4 = arith.constant 0 : index
    %c0_5 = arith.constant 0 : index
    %3 = vector.load %arg3[%c0_4, %c0_5] : memref<1x32xf32, #tpu.memory_space<vmem>>, vector<1x32xf32>
    %cst = arith.constant dense<0.000000e+00> : vector<128xf32>
    %4 = vector.multi_reduction <add>, %1, %cst [1] : vector<128x32xf32> to vector<128xf32>
    %5 = vector.shape_cast %4 : vector<128xf32> to vector<128x1xf32>
    %cst_6 = arith.constant 3.200000e+01 : f32
    %6 = vector.broadcast %cst_6 : f32 to vector<128x1xf32>
    %7 = arith.divf %5, %6 : vector<128x1xf32>
    %8 = vector.broadcast %7 : vector<128x1xf32> to vector<128x32xf32>
    %9 = arith.subf %1, %8 : vector<128x32xf32>
    %10 = arith.mulf %9, %9 : vector<128x32xf32>
    %cst_7 = arith.constant dense<0.000000e+00> : vector<128xf32>
    %11 = vector.multi_reduction <add>, %10, %cst_7 [1] : vector<128x32xf32> to vector<128xf32>
    %12 = vector.shape_cast %11 : vector<128xf32> to vector<128x1xf32>
    %cst_8 = arith.constant 3.200000e+01 : f32
    %13 = vector.broadcast %cst_8 : f32 to vector<128x1xf32>
    %14 = arith.divf %12, %13 : vector<128x1xf32>
    %15 = vector.broadcast %7 : vector<128x1xf32> to vector<128x32xf32>
    %16 = arith.subf %1, %15 : vector<128x32xf32>
    %cst_9 = arith.constant 9.99999974E-6 : f32
    %17 = vector.broadcast %cst_9 : f32 to vector<128x1xf32>
    %18 = arith.addf %14, %17 : vector<128x1xf32>
    %19 = math.rsqrt %18 : vector<128x1xf32>
    %20 = vector.broadcast %19 : vector<128x1xf32> to vector<128x32xf32>
    %21 = arith.mulf %16, %20 : vector<128x32xf32>
    %22 = vector.broadcast %2 : vector<1x32xf32> to vector<128x32xf32>
    %23 = arith.mulf %21, %22 : vector<128x32xf32>
    %24 = vector.broadcast %3 : vector<1x32xf32> to vector<128x32xf32>
    %25 = arith.addf %23, %24 : vector<128x32xf32>
    %26 = arith.truncf %25 : vector<128x32xf32> to vector<128x32xbf16>
    %c0_10 = arith.constant 0 : index
    %c0_11 = arith.constant 0 : index
    %27 = vector.load %arg4[%c0_10, %c0_11] : memref<32x96xbf16, #tpu.memory_space<vmem>>, vector<32x96xbf16>
    %cst_12 = arith.constant dense<0.000000e+00> : vector<128x96xf32>
    %28 = tpu.matmul %26, %27, %cst_12 {dimension_numbers = #tpu.dot_dimension_numbers<[1], [0], [0], [1], [0, 0, 1, 1], [], []>} : vector<128x32xbf16>, vector<32x96xbf16>, vector<128x96xf32> -> vector<128x96xf32>
    %c0_13 = arith.constant 0 : index
    %c0_14 = arith.constant 0 : index
    %29 = vector.load %arg5[%c0_13, %c0_14] : memref<1x96xf32, #tpu.memory_space<vmem>>, vector<1x96xf32>
    %30 = vector.broadcast %29 : vector<1x96xf32> to vector<128x96xf32>
    %31 = arith.addf %28, %30 : vector<128x96xf32>
    %32 = tpu.iota {dimensions = array<i32: 1>} : vector<1x128xi32>
    %c17_i32 = arith.constant 17 : i32
    %33 = vector.broadcast %c17_i32 : i32 to vector<1x128xi32>
    %34 = arith.cmpi slt, %32, %33 : vector<1x128xi32>
    %35 = vector.extract_strided_slice %31 {offsets = [0, 0], sizes = [128, 8], strides = [1, 1]} : vector<128x96xf32> to vector<128x8xf32>
    %36 = arith.truncf %35 : vector<128x8xf32> to vector<128x8xbf16>
    %37 = vector.extract_strided_slice %31 {offsets = [0, 32], sizes = [128, 8], strides = [1, 1]} : vector<128x96xf32> to vector<128x8xf32>
    %38 = arith.truncf %37 : vector<128x8xf32> to vector<128x8xbf16>
    %39 = vector.extract_strided_slice %31 {offsets = [0, 64], sizes = [128, 8], strides = [1, 1]} : vector<128x96xf32> to vector<128x8xf32>
    %40 = arith.truncf %39 : vector<128x8xf32> to vector<128x8xbf16>
    %cst_15 = arith.constant dense<0.000000e+00> : vector<128x128xf32>
    %41 = tpu.matmul %36, %38, %cst_15 {dimension_numbers = #tpu.dot_dimension_numbers<[1], [1], [0], [0], [0, 0, 1, 0], [], []>} : vector<128x8xbf16>, vector<128x8xbf16>, vector<128x128xf32> -> vector<128x128xf32>
    %cst_16 = arith.constant 0.353553385 : f32
    %42 = vector.broadcast %cst_16 : f32 to vector<128x128xf32>
    %43 = arith.mulf %41, %42 : vector<128x128xf32>
    %cst_17 = arith.constant -1.000000e+30 : f32
    %44 = vector.shape_cast %34 : vector<1x128xi1> to vector<1x128xi1>
    %45 = vector.broadcast %44 : vector<1x128xi1> to vector<128x128xi1>
    %46 = vector.broadcast %cst_17 : f32 to vector<128x128xf32>
    %47 = arith.select %45, %43, %46 : vector<128x128xi1>, vector<128x128xf32>
    %cst_18 = arith.constant dense<0xFF800000> : vector<128xf32>
    %48 = vector.multi_reduction <maximumf>, %47, %cst_18 [1] : vector<128x128xf32> to vector<128xf32>
    %49 = vector.shape_cast %48 : vector<128xf32> to vector<128x1xf32>
    %50 = vector.broadcast %49 : vector<128x1xf32> to vector<128x128xf32>
    %51 = arith.subf %47, %50 : vector<128x128xf32>
    %52 = math.exp %51 : vector<128x128xf32>
    %cst_19 = arith.constant dense<0.000000e+00> : vector<128xf32>
    %53 = vector.multi_reduction <add>, %52, %cst_19 [1] : vector<128x128xf32> to vector<128xf32>
    %54 = vector.shape_cast %53 : vector<128xf32> to vector<128x1xf32>
    %55 = tpu.reciprocal %54 {approx = true} : vector<128x1xf32> -> vector<128x1xf32>
    %56 = vector.broadcast %55 : vector<128x1xf32> to vector<128x128xf32>
    %57 = arith.mulf %52, %56 : vector<128x128xf32>
    %58 = arith.truncf %57 : vector<128x128xf32> to vector<128x128xbf16>
    %cst_20 = arith.constant dense<0.000000e+00> : vector<128x8xf32>
    %59 = tpu.matmul %58, %40, %cst_20 {dimension_numbers = #tpu.dot_dimension_numbers<[1], [0], [0], [1], [0, 0, 1, 1], [], []>} : vector<128x128xbf16>, vector<128x8xbf16>, vector<128x8xf32> -> vector<128x8xf32>
    %60 = vector.extract_strided_slice %31 {offsets = [0, 8], sizes = [128, 8], strides = [1, 1]} : vector<128x96xf32> to vector<128x8xf32>
    %61 = arith.truncf %60 : vector<128x8xf32> to vector<128x8xbf16>
    %62 = vector.extract_strided_slice %31 {offsets = [0, 40], sizes = [128, 8], strides = [1, 1]} : vector<128x96xf32> to vector<128x8xf32>
    %63 = arith.truncf %62 : vector<128x8xf32> to vector<128x8xbf16>
    %64 = vector.extract_strided_slice %31 {offsets = [0, 72], sizes = [128, 8], strides = [1, 1]} : vector<128x96xf32> to vector<128x8xf32>
    %65 = arith.truncf %64 : vector<128x8xf32> to vector<128x8xbf16>
    %cst_21 = arith.constant dense<0.000000e+00> : vector<128x128xf32>
    %66 = tpu.matmul %61, %63, %cst_21 {dimension_numbers = #tpu.dot_dimension_numbers<[1], [1], [0], [0], [0, 0, 1, 0], [], []>} : vector<128x8xbf16>, vector<128x8xbf16>, vector<128x128xf32> -> vector<128x128xf32>
    %cst_22 = arith.constant 0.353553385 : f32
    %67 = vector.broadcast %cst_22 : f32 to vector<128x128xf32>
    %68 = arith.mulf %66, %67 : vector<128x128xf32>
    %cst_23 = arith.constant -1.000000e+30 : f32
    %69 = vector.shape_cast %34 : vector<1x128xi1> to vector<1x128xi1>
    %70 = vector.broadcast %69 : vector<1x128xi1> to vector<128x128xi1>
    %71 = vector.broadcast %cst_23 : f32 to vector<128x128xf32>
    %72 = arith.select %70, %68, %71 : vector<128x128xi1>, vector<128x128xf32>
    %cst_24 = arith.constant dense<0xFF800000> : vector<128xf32>
    %73 = vector.multi_reduction <maximumf>, %72, %cst_24 [1] : vector<128x128xf32> to vector<128xf32>
    %74 = vector.shape_cast %73 : vector<128xf32> to vector<128x1xf32>
    %75 = vector.broadcast %74 : vector<128x1xf32> to vector<128x128xf32>
    %76 = arith.subf %72, %75 : vector<128x128xf32>
    %77 = math.exp %76 : vector<128x128xf32>
    %cst_25 = arith.constant dense<0.000000e+00> : vector<128xf32>
    %78 = vector.multi_reduction <add>, %77, %cst_25 [1] : vector<128x128xf32> to vector<128xf32>
    %79 = vector.shape_cast %78 : vector<128xf32> to vector<128x1xf32>
    %80 = tpu.reciprocal %79 {approx = true} : vector<128x1xf32> -> vector<128x1xf32>
    %81 = vector.broadcast %80 : vector<128x1xf32> to vector<128x128xf32>
    %82 = arith.mulf %77, %81 : vector<128x128xf32>
    %83 = arith.truncf %82 : vector<128x128xf32> to vector<128x128xbf16>
    %cst_26 = arith.constant dense<0.000000e+00> : vector<128x8xf32>
    %84 = tpu.matmul %83, %65, %cst_26 {dimension_numbers = #tpu.dot_dimension_numbers<[1], [0], [0], [1], [0, 0, 1, 1], [], []>} : vector<128x128xbf16>, vector<128x8xbf16>, vector<128x8xf32> -> vector<128x8xf32>
    %85 = vector.extract_strided_slice %31 {offsets = [0, 16], sizes = [128, 8], strides = [1, 1]} : vector<128x96xf32> to vector<128x8xf32>
    %86 = arith.truncf %85 : vector<128x8xf32> to vector<128x8xbf16>
    %87 = vector.extract_strided_slice %31 {offsets = [0, 48], sizes = [128, 8], strides = [1, 1]} : vector<128x96xf32> to vector<128x8xf32>
    %88 = arith.truncf %87 : vector<128x8xf32> to vector<128x8xbf16>
    %89 = vector.extract_strided_slice %31 {offsets = [0, 80], sizes = [128, 8], strides = [1, 1]} : vector<128x96xf32> to vector<128x8xf32>
    %90 = arith.truncf %89 : vector<128x8xf32> to vector<128x8xbf16>
    %cst_27 = arith.constant dense<0.000000e+00> : vector<128x128xf32>
    %91 = tpu.matmul %86, %88, %cst_27 {dimension_numbers = #tpu.dot_dimension_numbers<[1], [1], [0], [0], [0, 0, 1, 0], [], []>} : vector<128x8xbf16>, vector<128x8xbf16>, vector<128x128xf32> -> vector<128x128xf32>
    %cst_28 = arith.constant 0.353553385 : f32
    %92 = vector.broadcast %cst_28 : f32 to vector<128x128xf32>
    %93 = arith.mulf %91, %92 : vector<128x128xf32>
    %cst_29 = arith.constant -1.000000e+30 : f32
    %94 = vector.shape_cast %34 : vector<1x128xi1> to vector<1x128xi1>
    %95 = vector.broadcast %94 : vector<1x128xi1> to vector<128x128xi1>
    %96 = vector.broadcast %cst_29 : f32 to vector<128x128xf32>
    %97 = arith.select %95, %93, %96 : vector<128x128xi1>, vector<128x128xf32>
    %cst_30 = arith.constant dense<0xFF800000> : vector<128xf32>
    %98 = vector.multi_reduction <maximumf>, %97, %cst_30 [1] : vector<128x128xf32> to vector<128xf32>
    %99 = vector.shape_cast %98 : vector<128xf32> to vector<128x1xf32>
    %100 = vector.broadcast %99 : vector<128x1xf32> to vector<128x128xf32>
    %101 = arith.subf %97, %100 : vector<128x128xf32>
    %102 = math.exp %101 : vector<128x128xf32>
    %cst_31 = arith.constant dense<0.000000e+00> : vector<128xf32>
    %103 = vector.multi_reduction <add>, %102, %cst_31 [1] : vector<128x128xf32> to vector<128xf32>
    %104 = vector.shape_cast %103 : vector<128xf32> to vector<128x1xf32>
    %105 = tpu.reciprocal %104 {approx = true} : vector<128x1xf32> -> vector<128x1xf32>
    %106 = vector.broadcast %105 : vector<128x1xf32> to vector<128x128xf32>
    %107 = arith.mulf %102, %106 : vector<128x128xf32>
    %108 = arith.truncf %107 : vector<128x128xf32> to vector<128x128xbf16>
    %cst_32 = arith.constant dense<0.000000e+00> : vector<128x8xf32>
    %109 = tpu.matmul %108, %90, %cst_32 {dimension_numbers = #tpu.dot_dimension_numbers<[1], [0], [0], [1], [0, 0, 1, 1], [], []>} : vector<128x128xbf16>, vector<128x8xbf16>, vector<128x8xf32> -> vector<128x8xf32>
    %110 = vector.extract_strided_slice %31 {offsets = [0, 24], sizes = [128, 8], strides = [1, 1]} : vector<128x96xf32> to vector<128x8xf32>
    %111 = arith.truncf %110 : vector<128x8xf32> to vector<128x8xbf16>
    %112 = vector.extract_strided_slice %31 {offsets = [0, 56], sizes = [128, 8], strides = [1, 1]} : vector<128x96xf32> to vector<128x8xf32>
    %113 = arith.truncf %112 : vector<128x8xf32> to vector<128x8xbf16>
    %114 = vector.extract_strided_slice %31 {offsets = [0, 88], sizes = [128, 8], strides = [1, 1]} : vector<128x96xf32> to vector<128x8xf32>
    %115 = arith.truncf %114 : vector<128x8xf32> to vector<128x8xbf16>
    %cst_33 = arith.constant dense<0.000000e+00> : vector<128x128xf32>
    %116 = tpu.matmul %111, %113, %cst_33 {dimension_numbers = #tpu.dot_dimension_numbers<[1], [1], [0], [0], [0, 0, 1, 0], [], []>} : vector<128x8xbf16>, vector<128x8xbf16>, vector<128x128xf32> -> vector<128x128xf32>
    %cst_34 = arith.constant 0.353553385 : f32
    %117 = vector.broadcast %cst_34 : f32 to vector<128x128xf32>
    %118 = arith.mulf %116, %117 : vector<128x128xf32>
    %cst_35 = arith.constant -1.000000e+30 : f32
    %119 = vector.shape_cast %34 : vector<1x128xi1> to vector<1x128xi1>
    %120 = vector.broadcast %119 : vector<1x128xi1> to vector<128x128xi1>
    %121 = vector.broadcast %cst_35 : f32 to vector<128x128xf32>
    %122 = arith.select %120, %118, %121 : vector<128x128xi1>, vector<128x128xf32>
    %cst_36 = arith.constant dense<0xFF800000> : vector<128xf32>
    %123 = vector.multi_reduction <maximumf>, %122, %cst_36 [1] : vector<128x128xf32> to vector<128xf32>
    %124 = vector.shape_cast %123 : vector<128xf32> to vector<128x1xf32>
    %125 = vector.broadcast %124 : vector<128x1xf32> to vector<128x128xf32>
    %126 = arith.subf %122, %125 : vector<128x128xf32>
    %127 = math.exp %126 : vector<128x128xf32>
    %cst_37 = arith.constant dense<0.000000e+00> : vector<128xf32>
    %128 = vector.multi_reduction <add>, %127, %cst_37 [1] : vector<128x128xf32> to vector<128xf32>
    %129 = vector.shape_cast %128 : vector<128xf32> to vector<128x1xf32>
    %130 = tpu.reciprocal %129 {approx = true} : vector<128x1xf32> -> vector<128x1xf32>
    %131 = vector.broadcast %130 : vector<128x1xf32> to vector<128x128xf32>
    %132 = arith.mulf %127, %131 : vector<128x128xf32>
    %133 = arith.truncf %132 : vector<128x128xf32> to vector<128x128xbf16>
    %cst_38 = arith.constant dense<0.000000e+00> : vector<128x8xf32>
    %134 = tpu.matmul %133, %115, %cst_38 {dimension_numbers = #tpu.dot_dimension_numbers<[1], [0], [0], [1], [0, 0, 1, 1], [], []>} : vector<128x128xbf16>, vector<128x8xbf16>, vector<128x8xf32> -> vector<128x8xf32>
    %135 = tpu.concatenate %59, %84, %109, %134 in 1 : vector<128x8xf32>, vector<128x8xf32>, vector<128x8xf32>, vector<128x8xf32> -> vector<128x32xf32>
    %136 = arith.truncf %135 : vector<128x32xf32> to vector<128x32xbf16>
    %c0_39 = arith.constant 0 : index
    %c0_40 = arith.constant 0 : index
    %137 = vector.load %arg6[%c0_39, %c0_40] : memref<32x32xbf16, #tpu.memory_space<vmem>>, vector<32x32xbf16>
    %cst_41 = arith.constant dense<0.000000e+00> : vector<128x32xf32>
    %138 = tpu.matmul %136, %137, %cst_41 {dimension_numbers = #tpu.dot_dimension_numbers<[1], [0], [0], [1], [0, 0, 1, 1], [], []>} : vector<128x32xbf16>, vector<32x32xbf16>, vector<128x32xf32> -> vector<128x32xf32>
    %c0_42 = arith.constant 0 : index
    %c0_43 = arith.constant 0 : index
    %139 = vector.load %arg7[%c0_42, %c0_43] : memref<1x32xf32, #tpu.memory_space<vmem>>, vector<1x32xf32>
    %140 = vector.broadcast %139 : vector<1x32xf32> to vector<128x32xf32>
    %141 = arith.addf %138, %140 : vector<128x32xf32>
    %142 = arith.addf %1, %141 : vector<128x32xf32>
    %c0_44 = arith.constant 0 : index
    %c0_45 = arith.constant 0 : index
    %143 = vector.load %arg8[%c0_44, %c0_45] : memref<1x32xf32, #tpu.memory_space<vmem>>, vector<1x32xf32>
    %c0_46 = arith.constant 0 : index
    %c0_47 = arith.constant 0 : index
    %144 = vector.load %arg9[%c0_46, %c0_47] : memref<1x32xf32, #tpu.memory_space<vmem>>, vector<1x32xf32>
    %cst_48 = arith.constant dense<0.000000e+00> : vector<128xf32>
    %145 = vector.multi_reduction <add>, %142, %cst_48 [1] : vector<128x32xf32> to vector<128xf32>
    %146 = vector.shape_cast %145 : vector<128xf32> to vector<128x1xf32>
    %cst_49 = arith.constant 3.200000e+01 : f32
    %147 = vector.broadcast %cst_49 : f32 to vector<128x1xf32>
    %148 = arith.divf %146, %147 : vector<128x1xf32>
    %149 = vector.broadcast %148 : vector<128x1xf32> to vector<128x32xf32>
    %150 = arith.subf %142, %149 : vector<128x32xf32>
    %151 = arith.mulf %150, %150 : vector<128x32xf32>
    %cst_50 = arith.constant dense<0.000000e+00> : vector<128xf32>
    %152 = vector.multi_reduction <add>, %151, %cst_50 [1] : vector<128x32xf32> to vector<128xf32>
    %153 = vector.shape_cast %152 : vector<128xf32> to vector<128x1xf32>
    %cst_51 = arith.constant 3.200000e+01 : f32
    %154 = vector.broadcast %cst_51 : f32 to vector<128x1xf32>
    %155 = arith.divf %153, %154 : vector<128x1xf32>
    %156 = vector.broadcast %148 : vector<128x1xf32> to vector<128x32xf32>
    %157 = arith.subf %142, %156 : vector<128x32xf32>
    %cst_52 = arith.constant 9.99999974E-6 : f32
    %158 = vector.broadcast %cst_52 : f32 to vector<128x1xf32>
    %159 = arith.addf %155, %158 : vector<128x1xf32>
    %160 = math.rsqrt %159 : vector<128x1xf32>
    %161 = vector.broadcast %160 : vector<128x1xf32> to vector<128x32xf32>
    %162 = arith.mulf %157, %161 : vector<128x32xf32>
    %163 = vector.broadcast %143 : vector<1x32xf32> to vector<128x32xf32>
    %164 = arith.mulf %162, %163 : vector<128x32xf32>
    %165 = vector.broadcast %144 : vector<1x32xf32> to vector<128x32xf32>
    %166 = arith.addf %164, %165 : vector<128x32xf32>
    %167 = arith.truncf %166 : vector<128x32xf32> to vector<128x32xbf16>
    %c0_53 = arith.constant 0 : index
    %c0_54 = arith.constant 0 : index
    %168 = vector.load %arg10[%c0_53, %c0_54] : memref<32x64xbf16, #tpu.memory_space<vmem>>, vector<32x64xbf16>
    %cst_55 = arith.constant dense<0.000000e+00> : vector<128x64xf32>
    %169 = tpu.matmul %167, %168, %cst_55 {dimension_numbers = #tpu.dot_dimension_numbers<[1], [0], [0], [1], [0, 0, 1, 1], [], []>} : vector<128x32xbf16>, vector<32x64xbf16>, vector<128x64xf32> -> vector<128x64xf32>
    %c0_56 = arith.constant 0 : index
    %c0_57 = arith.constant 0 : index
    %170 = vector.load %arg11[%c0_56, %c0_57] : memref<1x64xf32, #tpu.memory_space<vmem>>, vector<1x64xf32>
    %171 = vector.broadcast %170 : vector<1x64xf32> to vector<128x64xf32>
    %172 = arith.addf %169, %171 : vector<128x64xf32>
    %cst_58 = arith.constant 5.000000e-01 : f32
    %173 = vector.broadcast %cst_58 : f32 to vector<128x64xf32>
    %174 = arith.mulf %173, %172 : vector<128x64xf32>
    %cst_59 = arith.constant 0.707106769 : f32
    %175 = vector.broadcast %cst_59 : f32 to vector<128x64xf32>
    %176 = arith.mulf %172, %175 : vector<128x64xf32>
    %177 = math.erf %176 : vector<128x64xf32>
    %cst_60 = arith.constant 1.000000e+00 : f32
    %178 = vector.broadcast %cst_60 : f32 to vector<128x64xf32>
    %179 = arith.addf %178, %177 : vector<128x64xf32>
    %180 = arith.mulf %174, %179 : vector<128x64xf32>
    %181 = arith.truncf %180 : vector<128x64xf32> to vector<128x64xbf16>
    %c0_61 = arith.constant 0 : index
    %c0_62 = arith.constant 0 : index
    %182 = vector.load %arg12[%c0_61, %c0_62] : memref<64x32xbf16, #tpu.memory_space<vmem>>, vector<64x32xbf16>
    %cst_63 = arith.constant dense<0.000000e+00> : vector<128x32xf32>
    %183 = tpu.matmul %181, %182, %cst_63 {dimension_numbers = #tpu.dot_dimension_numbers<[1], [0], [0], [1], [0, 0, 1, 1], [], []>} : vector<128x64xbf16>, vector<64x32xbf16>, vector<128x32xf32> -> vector<128x32xf32>
    %c0_64 = arith.constant 0 : index
    %c0_65 = arith.constant 0 : index
    %184 = vector.load %arg13[%c0_64, %c0_65] : memref<1x32xf32, #tpu.memory_space<vmem>>, vector<1x32xf32>
    %185 = vector.broadcast %184 : vector<1x32xf32> to vector<128x32xf32>
    %186 = arith.addf %183, %185 : vector<128x32xf32>
    %187 = arith.addf %142, %186 : vector<128x32xf32>
    %c0_66 = arith.constant 0 : index
    %c0_67 = arith.constant 0 : index
    %c0_68 = arith.constant 0 : index
    %188 = vector.load %arg14[%c0_66, %c0_67, %c0_68] : memref<1x128x32xf32, #tpu.memory_space<vmem>>, vector<1x128x32xf32>
    %189 = vector.shape_cast %188 : vector<1x128x32xf32> to vector<128x32xf32>
    %190 = vector.shape_cast %187 : vector<128x32xf32> to vector<1x128x32xf32>
    tpu.vector_store %arg14[%c0_66, %c0_67, %c0_68], %190 {strides = array<i32>} : memref<1x128x32xf32, #tpu.memory_space<vmem>>, vector<1x128x32xf32>,
    return
  }
  func.func @transform_0(%arg0: i32) -> (i32, i32, i32) {
    %c0_i32 = arith.constant 0 : i32
    %c0_i32_0 = arith.constant 0 : i32
    %c0_i32_1 = arith.constant 0 : i32
    return %arg0, %c0_i32, %c0_i32_0 : i32, i32, i32
  }
  func.func @transform_1(%arg0: i32) -> (i32, i32) {
    %c0_i32 = arith.constant 0 : i32
    %c0_i32_0 = arith.constant 0 : i32
    %c0_i32_1 = arith.constant 0 : i32
    return %c0_i32, %c0_i32_0 : i32, i32
  }
  func.func @transform_2(%arg0: i32) -> (i32, i32) {
    %c0_i32 = arith.constant 0 : i32
    %c0_i32_0 = arith.constant 0 : i32
    %c0_i32_1 = arith.constant 0 : i32
    return %c0_i32, %c0_i32_0 : i32, i32
  }
  func.func @transform_3(%arg0: i32) -> (i32, i32) {
    %c0_i32 = arith.constant 0 : i32
    %c0_i32_0 = arith.constant 0 : i32
    %c0_i32_1 = arith.constant 0 : i32
    return %c0_i32, %c0_i32_0 : i32, i32
  }
  func.func @transform_4(%arg0: i32) -> (i32, i32) {
    %c0_i32 = arith.constant 0 : i32
    %c0_i32_0 = arith.constant 0 : i32
    %c0_i32_1 = arith.constant 0 : i32
    return %c0_i32, %c0_i32_0 : i32, i32
  }
  func.func @transform_5(%arg0: i32) -> (i32, i32) {
    %c0_i32 = arith.constant 0 : i32
    %c0_i32_0 = arith.constant 0 : i32
    %c0_i32_1 = arith.constant 0 : i32
    return %c0_i32, %c0_i32_0 : i32, i32
  }
  func.func @transform_6(%arg0: i32) -> (i32, i32) {
    %c0_i32 = arith.constant 0 : i32
    %c0_i32_0 = arith.constant 0 : i32
    %c0_i32_1 = arith.constant 0 : i32
    return %c0_i32, %c0_i32_0 : i32, i32
  }
  func.func @transform_7(%arg0: i32) -> (i32, i32) {
    %c0_i32 = arith.constant 0 : i32
    %c0_i32_0 = arith.constant 0 : i32
    %c0_i32_1 = arith.constant 0 : i32
    return %c0_i32, %c0_i32_0 : i32, i32
  }
  func.func @transform_8(%arg0: i32) -> (i32, i32) {
    %c0_i32 = arith.constant 0 : i32
    %c0_i32_0 = arith.constant 0 : i32
    %c0_i32_1 = arith.constant 0 : i32
    return %c0_i32, %c0_i32_0 : i32, i32
  }
  func.func @transform_9(%arg0: i32) -> (i32, i32) {
    %c0_i32 = arith.constant 0 : i32
    %c0_i32_0 = arith.constant 0 : i32
    %c0_i32_1 = arith.constant 0 : i32
    return %c0_i32, %c0_i32_0 : i32, i32
  }
  func.func @transform_10(%arg0: i32) -> (i32, i32) {
    %c0_i32 = arith.constant 0 : i32
    %c0_i32_0 = arith.constant 0 : i32
    %c0_i32_1 = arith.constant 0 : i32
    return %c0_i32, %c0_i32_0 : i32, i32
  }
  func.func @transform_11(%arg0: i32) -> (i32, i32) {
    %c0_i32 = arith.constant 0 : i32
    %c0_i32_0 = arith.constant 0 : i32
    %c0_i32_1 = arith.constant 0 : i32
    return %c0_i32, %c0_i32_0 : i32, i32
  }
  func.func @transform_12(%arg0: i32) -> (i32, i32) {
    %c0_i32 = arith.constant 0 : i32
    %c0_i32_0 = arith.constant 0 : i32
    %c0_i32_1 = arith.constant 0 : i32
    return %c0_i32, %c0_i32_0 : i32, i32
  }
  func.func @transform_13(%arg0: i32) -> (i32, i32, i32) {
    %c0_i32 = arith.constant 0 : i32
    %c0_i32_0 = arith.constant 0 : i32
    %c0_i32_1 = arith.constant 0 : i32
    return %arg0, %c0_i32, %c0_i32_0 : i32, i32, i32
  }
}

module attributes {stable_mosaic.version = 11 : i64} {
  func.func @_head_kernel(%arg0: memref<2x32xf32, #tpu.memory_space<vmem>>, %arg1: memref<1x32xf32, #tpu.memory_space<vmem>>, %arg2: memref<1x32xf32, #tpu.memory_space<vmem>>, %arg3: memref<32x128xbf16, #tpu.memory_space<vmem>>, %arg4: memref<1x128xf32, #tpu.memory_space<vmem>>, %arg5: memref<2x128xf32, #tpu.memory_space<vmem>>) attributes {dimension_semantics = [], scalar_prefetch = 0 : i64, scratch_operands = 0 : i64, tpu.core_type = #tpu.core_type<tc>} {
    %c0 = arith.constant 0 : index
    %c0_0 = arith.constant 0 : index
    %0 = vector.load %arg0[%c0, %c0_0] : memref<2x32xf32, #tpu.memory_space<vmem>>, vector<2x32xf32>
    %c0_1 = arith.constant 0 : index
    %c0_2 = arith.constant 0 : index
    %1 = vector.load %arg1[%c0_1, %c0_2] : memref<1x32xf32, #tpu.memory_space<vmem>>, vector<1x32xf32>
    %c0_3 = arith.constant 0 : index
    %c0_4 = arith.constant 0 : index
    %2 = vector.load %arg2[%c0_3, %c0_4] : memref<1x32xf32, #tpu.memory_space<vmem>>, vector<1x32xf32>
    %cst = arith.constant dense<0.000000e+00> : vector<2xf32>
    %3 = vector.multi_reduction <add>, %0, %cst [1] : vector<2x32xf32> to vector<2xf32>
    %4 = vector.shape_cast %3 : vector<2xf32> to vector<2x1xf32>
    %cst_5 = arith.constant 3.200000e+01 : f32
    %5 = vector.broadcast %cst_5 : f32 to vector<2x1xf32>
    %6 = arith.divf %4, %5 : vector<2x1xf32>
    %7 = vector.broadcast %6 : vector<2x1xf32> to vector<2x32xf32>
    %8 = arith.subf %0, %7 : vector<2x32xf32>
    %9 = arith.mulf %8, %8 : vector<2x32xf32>
    %cst_6 = arith.constant dense<0.000000e+00> : vector<2xf32>
    %10 = vector.multi_reduction <add>, %9, %cst_6 [1] : vector<2x32xf32> to vector<2xf32>
    %11 = vector.shape_cast %10 : vector<2xf32> to vector<2x1xf32>
    %cst_7 = arith.constant 3.200000e+01 : f32
    %12 = vector.broadcast %cst_7 : f32 to vector<2x1xf32>
    %13 = arith.divf %11, %12 : vector<2x1xf32>
    %14 = vector.broadcast %6 : vector<2x1xf32> to vector<2x32xf32>
    %15 = arith.subf %0, %14 : vector<2x32xf32>
    %cst_8 = arith.constant 9.99999974E-6 : f32
    %16 = vector.broadcast %cst_8 : f32 to vector<2x1xf32>
    %17 = arith.addf %13, %16 : vector<2x1xf32>
    %18 = math.rsqrt %17 : vector<2x1xf32>
    %19 = vector.broadcast %18 : vector<2x1xf32> to vector<2x32xf32>
    %20 = arith.mulf %15, %19 : vector<2x32xf32>
    %21 = vector.broadcast %1 : vector<1x32xf32> to vector<2x32xf32>
    %22 = arith.mulf %20, %21 : vector<2x32xf32>
    %23 = vector.broadcast %2 : vector<1x32xf32> to vector<2x32xf32>
    %24 = arith.addf %22, %23 : vector<2x32xf32>
    %25 = arith.truncf %24 : vector<2x32xf32> to vector<2x32xbf16>
    %c0_9 = arith.constant 0 : index
    %c0_10 = arith.constant 0 : index
    %26 = vector.load %arg3[%c0_9, %c0_10] : memref<32x128xbf16, #tpu.memory_space<vmem>>, vector<32x128xbf16>
    %cst_11 = arith.constant dense<0.000000e+00> : vector<2x128xf32>
    %27 = tpu.matmul %25, %26, %cst_11 {dimension_numbers = #tpu.dot_dimension_numbers<[1], [0], [0], [1], [0, 0, 1, 1], [], []>} : vector<2x32xbf16>, vector<32x128xbf16>, vector<2x128xf32> -> vector<2x128xf32>
    %c0_12 = arith.constant 0 : index
    %c0_13 = arith.constant 0 : index
    %28 = vector.load %arg4[%c0_12, %c0_13] : memref<1x128xf32, #tpu.memory_space<vmem>>, vector<1x128xf32>
    %29 = vector.broadcast %28 : vector<1x128xf32> to vector<2x128xf32>
    %30 = arith.addf %27, %29 : vector<2x128xf32>
    %c0_14 = arith.constant 0 : index
    %c0_15 = arith.constant 0 : index
    %31 = vector.load %arg5[%c0_14, %c0_15] : memref<2x128xf32, #tpu.memory_space<vmem>>, vector<2x128xf32>
    tpu.vector_store %arg5[%c0_14, %c0_15], %30 {strides = array<i32>} : memref<2x128xf32, #tpu.memory_space<vmem>>, vector<2x128xf32>,
    return
  }
}

</mosaic_0001>

<bundles_post_ra>
// kernel: vit_forward.7
= control target key start
LH: loop header
LB: loop body
LE: loop exit
PB: predicated region body
PF: predicated region fallthrough
CT: control target
= control target key end

     0   :  { %vm25_vm0 = vcmask 254976   ;;  %s219_s0 = inlined_call_operand.vmem [shape: f32[2,32], index: 0, kind: input, shape index: {}]   ;;  %s220_s1 = inlined_call_operand.vmem [shape: f32[1,32], index: 1, kind: input, shape index: {}]   ;;  %s221_s2 = inlined_call_operand.vmem [shape: f32[1,32], index: 2, kind: input, shape index: {}]   ;;  %s222_s3 = inlined_call_operand.vmem [shape: bf16[32,128], index: 3, kind: input, shape index: {}]   ;;  %s223_s4 = inlined_call_operand.vmem [shape: f32[1,128], index: 4, kind: input, shape index: {}]   ;;  %s224_s5 = inlined_call_operand.hbm [shape: f32[2,128], index: 5, kind: output, shape index: {}]  }
   0x1   :  { %v22_v0 = vld [vmem:[%s219_s0] sm:$0x3] }
   0x2   :  { %v26_v1 = vsel %vm25_vm0, %v22_v0, 0.0 }
   0x3   :  { %27 = vadd.xlane.f32.xlu0 %v26_v1 }
   0x4   :  { %10 = vsyncpa [#allocation3], 0  ;;  %v164_v2 = vmov 32.0   ;;  %v128_v14 = vld [vmem:[%s222_s3 + $0x8] sm:$0xff]  ;;  %v127_v15 = vld [vmem:[%s222_s3] sm:$0xff]  ;;  %vm84_vm5 = vcmask 261120  }
   0x5   :  { %134 = vrcp.f32 %v164_v2  ;;  %94 = vmatpush.bf16.msra.mxu0 %v128_v14  ;;  %v131_v25 = vld [vmem:[%s220_s1] ss:$0 sm:$0xff]  ;;  %s165_s28 = smov [#allocation2]   ;;  %s109_s1 = sshll.u32 %s224_s5, 4  ;;  %s110_s1 = int_to_ptr.hbm [resolvable:$true] %s109_s1 }
   0x6   :  { %v132_v28 = vld [vmem:[%s221_s2] ss:$0 sm:$0xff]  ;;  %s107_s29 = sshll.u32 %s165_s28, 4  ;;  %s108_s29 = int_to_ptr.vmem [resolvable:$true] %s107_s29 }
   0x7   :  { %v133_v32 = vld [vmem:[%s223_s4] ss:$0 sm:$0xff] }
   0x9   :  { %95 = vmatpush.bf16.msra.mxu0 %v127_v15 }
   0xb   :  { %v135_v3 = vpop.eup %134 }
   0xc   :  { %v30_v4 = vmul.f32 32.0, %v135_v3  ;;  %vm34_vm1 = vweird.f32 %v135_v3 }
   0xe   :  { %v31_v5 = vsub.f32 1.0, %v30_v4 }
  0x10   :  { %v32_v6 = vmul.f32 %v135_v3, %v31_v5 }
  0x12   :  { %v33_v7 = vadd.f32 %v135_v3, %v32_v6 }
  0x14   :  { %v35_v8 = vsel %vm34_vm1, %v135_v3, %v33_v7 }
  0x76   :  { %v28_v9 = vpop.xlane.xlu0 %27 }
  0x77   :  { %v36_v10 = vmul.f32 %v35_v8, %v28_v9 }
  0x79   :  { %v37_v11 = vsub.f32 %v22_v0, %v36_v10 }
  0x7b   :  { %v38_v12 = vmul.f32 %v37_v11, %v37_v11 }
  0x7d   :  { %v39_v13 = vsel %vm25_vm0, %v38_v12, 0.0 }
  0x7e   :  { %40 = vadd.xlane.f32.xlu0 %v39_v13 }
  0xf1   :  { %v41_v16 = vpop.xlane.xlu0 %40 }
  0xf2   :  { %v42_v17 = vmul.f32 %v41_v16, %v35_v8 }
  0xf4   :  { %v43_v18 = vadd.f32 1e-05, %v42_v17 }
  0xf6   :  { %136 = vrsqrt.f32 %v43_v18  ;;  %vm50_vm3 = vweird.f32 %v43_v18 }
  0xfc   :  { %v137_v19 = vpop.eup %136 }
  0xfd   :  { %v45_v20 = vmul.f32 %v137_v19, %v43_v18  ;;  %vm51_vm2 = vweird.f32 %v137_v19 }
  0xfe   :  { %vm52_vm4 = vmor %vm50_vm3, %vm51_vm2 }
  0xff   :  { %v46_v21 = vmul.f32 %v137_v19, %v45_v20 }
 0x101   :  { %v47_v22 = vmul.f32 0.5, %v46_v21 }
 0x103   :  { %v48_v23 = vsub.f32 1.5, %v47_v22 }
 0x105   :  { %v49_v24 = vmul.f32 %v137_v19, %v48_v23 }
 0x107   :  { %v53_v26 = vsel %vm52_vm4, %v137_v19, %v49_v24 }
 0x108   :  { %v54_v27 = vmul.f32 %v53_v26, %v37_v11 }
 0x10a   :  { %v58_v29 = vmul.f32 %v131_v25, %v54_v27 }
 0x10c   :  { %v62_v30 = vadd.f32 %v132_v28, %v58_v29 }
 0x10e   :  { %v63_v31 = vpack.c.bf16 %v62_v30, %v62_v30 }
 0x110   :  { %126 = vmatmul.msk.bf16.vlgmr.msra.gmra.mxu0 %vm84_vm5, %v63_v31 }
 0x18d   :  { %v97_v33 = vpop.f32.mrf.mxu0 }
 0x18e   :  { %v98_v34 = vadd.f32 %v133_v32, %v97_v33 }
 0x190   :  { %101 = vst [vmem:[#allocation2] sm:$0x3] %v98_v34 }
 0x191   :  { %112 = dma.vmem_to_hbm [thread:$0]  %s108_s29, 32, %s110_s1, [#allocation3]  }
 0x195   :  { %v99_v35 = vpop.f32.mrf.mxu0 }
 0x196   :  { %162 = dma.done.wait [#allocation3], 32  }
 0x197   :  { %163 = vsyncadd [#allocation3], 4294967264 }
 0x198   :  { %117 = vsyncpa [#allocation3], 1 }

// kernel: vit_forward.4
= control target key start
LH: loop header
LB: loop body
LE: loop exit
PB: predicated region body
PF: predicated region fallthrough
CT: control target
= control target key end

     0   :  { %vm65_vm0 = vcmask 523264   ;;  %vm91_vm1 = vcmask 261120   ;;  %s190_s1 = inlined_call_operand.vmem [shape: bf16[64,32], index: 1, kind: input, shape index: {}]   ;;  %s191_s2 = inlined_call_operand.vmem [shape: f32[1,32], index: 2, kind: input, shape index: {}]   ;;  %s192_s0 = inlined_call_operand.vmem [shape: bf16[32,64], index: 0, kind: input, shape index: {}]   ;;  %s193_s3 = inlined_call_operand.vmem [shape: f32[32,32], index: 3, kind: output, shape index: {}]  }
   0x1   :  { %v131_v0 = vld [vmem:[%s190_s1 + $0x18] sm:$0xff]  ;;  %v130_v1 = vld [vmem:[%s190_s1 + $0x10] sm:$0xff]  ;;  %v129_v2 = vld [vmem:[%s190_s1 + $0x8] sm:$0xff] }
   0x2   :  { %76 = vmatpush.bf16.msra.mxu0 %v131_v0  ;;  %132 = vmatpush.bf16.msra.mxu1 %v131_v0  ;;  %v128_v3 = vld [vmem:[%s190_s1] sm:$0xff]  ;;  %v127_v5 = vld [vmem:[%s192_s0 + $0x8] sm:$0xff] }
   0x3   :  { %v126_v4 = vld [vmem:[%s192_s0] sm:$0xff] }
   0x4   :  { %v136_v6 = vld [vmem:[%s191_s2] ss:$0 sm:$0xff] }
   0x6   :  { %77 = vmatpush.bf16.msra.mxu0 %v130_v1  ;;  %133 = vmatpush.bf16.msra.mxu1 %v130_v1 }
   0xa   :  { %78 = vmatpush.bf16.msra.mxu0 %v129_v2  ;;  %134 = vmatpush.bf16.msra.mxu1 %v129_v2 }
   0xe   :  { %79 = vmatpush.bf16.msra.mxu0 %v128_v3  ;;  %135 = vmatpush.bf16.msra.mxu1 %v128_v3 }
  0x11   :  { %124 = vmatmul.msk.bf16.vlgmr.msra.gmra.mxu0 %vm65_vm0, %v126_v4  ;;  %125 = vmatmul.msk.bf16.vlgmr.msra.gmra.mxu1 %vm65_vm0, %v127_v5 }
  0x8e   :  { %v81_v7 = vpop.f32.mrf.mxu0  ;;  %v86_v8 = vpop.f32.mrf.mxu1 }
  0x8f   :  { %v82_v9 = vadd.f32 %v136_v6, %v81_v7  ;;  %v87_v10 = vadd.f32 %v136_v6, %v86_v8 }
  0x91   :  { %92 = vst.msk [vmem:[%s193_s3] sm:$0xff] %vm91_vm1, %v82_v9 }
  0x92   :  { %94 = vst.msk [vmem:[%s193_s3 + $0x10] sm:$0xff] %vm91_vm1, %v87_v10 }
  0x96   :  { %v83_v11 = vpop.f32.mrf.mxu0  ;;  %v88_v12 = vpop.f32.mrf.mxu1 }
  0x97   :  { %v84_v13 = vadd.f32 %v136_v6, %v83_v11  ;;  %v89_v14 = vadd.f32 %v136_v6, %v88_v12 }
  0x99   :  { %93 = vst.msk [vmem:[%s193_s3 + $0x8] sm:$0xff] %vm91_vm1, %v84_v13 }
  0x9a   :  { %95 = vst.msk [vmem:[%s193_s3 + $0x18] sm:$0xff] %vm91_vm1, %v89_v14 }

// kernel: vit_forward.5
= control target key start
LH: loop header
LB: loop body
LE: loop exit
PB: predicated region body
PF: predicated region fallthrough
CT: control target
= control target key end

     0   :  { %s5036_s25 = smov 0   ;;  %s7634_s0 = inlined_call_operand.vmem [shape: f32[2,128,32], index: 0, kind: input, shape index: {}, may-alias: {0,13}]   ;;  %s7635_s1 = inlined_call_operand.vmem [shape: f32[1,32], index: 1, kind: input, shape index: {}]   ;;  %s7636_s2 = inlined_call_operand.vmem [shape: f32[1,32], index: 2, kind: input, shape index: {}]   ;;  %s7637_s3 = inlined_call_operand.vmem [shape: bf16[32,96], index: 3, kind: input, shape index: {}]   ;;  %s7638_s4 = inlined_call_operand.vmem [shape: f32[1,96], index: 4, kind: input, shape index: {}]   ;;  %s7639_s5 = inlined_call_operand.vmem [shape: bf16[32,32], index: 5, kind: input, shape index: {}]   ;;  %s7640_s6 = inlined_call_operand.vmem [shape: f32[1,32], index: 6, kind: input, shape index: {}]   ;;  %s7641_s7 = inlined_call_operand.vmem [shape: f32[1,32], index: 7, kind: input, shape index: {}]   ;;  %s7642_s8 = inlined_call_operand.vmem [shape: f32[1,32], index: 8, kind: input, shape index: {}]   ;;  %s7643_s9 = inlined_call_operand.vmem [shape: bf16[32,64], index: 9, kind: input, shape index: {}]   ;;  %s7644_s10 = inlined_call_operand.vmem [shape: f32[1,64], index: 10, kind: input, shape index: {}]   ;;  %s7645_s11 = inlined_call_operand.vmem [shape: bf16[64,32], index: 11, kind: input, shape index: {}]   ;;  %s7646_s12 = inlined_call_operand.vmem [shape: f32[1,32], index: 12, kind: input, shape index: {}]   ;;  %s7647_s13 = inlined_call_operand.vmem [shape: f32[2,128,32], index: 13, kind: output, shape index: {}, may-alias: {0,13}]  }
   0x1 LB: > { %s4270_s26 = sadd.s32 4294967295, %s4949_s25   ;;  %p4274_p0 = scmp.ge.s32.totalorder %s4949_s25, 1  ;;  %s4949_s25 = sphi %s5036_s25, %s23_s25  }
   0x2   : > { %p387_p1 = scmp.lt.s32.totalorder %s4949_s25, 3 }
   0x4   : > { %p388_p2 = pnand %p4274_p0, %p387_p1 }
   0x6   : > { %391 = sbr.rel (%p388_p2) target bundleno = 3245 (0xcad), region = 72 }
   0xb   : > { %p431_p3 = scmp.lt.s32.totalorder %s4270_s26, 1  ;;  %vm460_vm0 = vcmask 261120   ;;  %v4951_v14 = vmov 32.0   ;;  %s4952_s24 = smov 96  }
   0xc   : > { %4570 = vrcp.f32 %v4951_v14  ;;  %s4953_s28 = smov 88   ;;  %s4954_s29 = smov 64  }
   0xd   : > { %s7714_s26 = smov (!%p431_p3, %s4270_s26), 1  ;;  %s4955_s14 = smov 120  }
   0xe   : > { %s4401_s27 = sshll.u32 %s7714_s26, 7  ;;  %s4956_s15 = smov 80  }
   0xf   : > { %s5052_s30 = scalar_lea.vmem %s7634_s0, %s4401_s27  ;;  %s4957_s16 = smov 72  }
  0x10   : > { %v444_v0 = vld [vmem:[%s5052_s30 + $0x10] sm:$0xff]  ;;  %v442_v1 = vld [vmem:[%s5052_s30] sm:$0xff]  ;;  %v445_v6 = vld [vmem:[%s5052_s30 + $0x18] sm:$0xff]  ;;  %s4958_s17 = smov 112   ;;  %s4959_s18 = smov 104  }
  0x11   : > { %v467_v2 = vsel %vm460_vm0, %v444_v0, 0.0  ;;  %v461_v3 = vsel %vm460_vm0, %v442_v1, 0.0  ;;  %v446_v4 = vld [vmem:[%s5052_s30 + $0x20] sm:$0xff]  ;;  %v443_v7 = vld [vmem:[%s5052_s30 + $0x8] sm:$0xff]  ;;  %v470_v9 = vsel %vm460_vm0, %v445_v6, 0.0  ;;  %v448_v12 = vld [vmem:[%s5052_s30 + $0x30] sm:$0xff] }
  0x12   : > { %468 = vadd.xlane.f32.xlu1 %v467_v2  ;;  %462 = vadd.xlane.f32.xlu0 %v461_v3  ;;  %v473_v5 = vsel %vm460_vm0, %v446_v4, 0.0  ;;  %v447_v8 = vld [vmem:[%s5052_s30 + $0x28] sm:$0xff]  ;;  %v464_v10 = vsel %vm460_vm0, %v443_v7, 0.0  ;;  %v479_v13 = vsel %vm460_vm0, %v448_v12, 0.0  ;;  %v4571_v15 = vpop.eup %4570  ;;  %v5081_v34 = vld [vmem:[%s5052_s30 + $0x38] sm:$0xff]  ;;  %v5103_v47 = vld [vmem:[%s5052_s30 + $0x40] sm:$0xff] }
  0x13   : > { %474 = vadd.xlane.f32.xlu2 %v473_v5  ;;  %v476_v11 = vsel %vm460_vm0, %v447_v8, 0.0  ;;  %v510_v16 = vmul.f32 32.0, %v4571_v15  ;;  %vm514_vm1 = vweird.f32 %v4571_v15  ;;  %v482_v40 = vsel %vm460_vm0, %v5081_v34, 0.0  ;;  %v5117_v56 = vld [vmem:[%s5052_s30 + $0x58] sm:$0xff]  ;;  %v5120_v57 = vld [vmem:[%s5052_s30 + $0x48] sm:$0xff]  ;;  %v5132_v63 = vld [vmem:[%s5052_s30 + $0x60] sm:$0xff] }
  0x14   : > { %v485_v51 = vsel %vm460_vm0, %v5103_v47, 0.0  ;;  %v494_v59 = vsel %vm460_vm0, %v5117_v56, 0.0  ;;  %v488_v61 = vsel %vm460_vm0, %v5120_v57, 0.0  ;;  %s4960_s19 = smov 56   ;;  %s4961_s20 = smov 40  }
  0x15   : > { %v511_v17 = vsub.f32 1.0, %v510_v16  ;;  %s4962_s21 = smov 48  }
  0x17   : > { %v512_v18 = vmul.f32 %v4571_v15, %v511_v17 }
  0x19   : > { %v513_v19 = vadd.f32 %v4571_v15, %v512_v18 }
  0x1a   : > { %471 = vadd.xlane.f32.xlu1 %v470_v9  ;;  %465 = vadd.xlane.f32.xlu0 %v464_v10  ;;  %v4404_v9 = vld [vmem:[%s7637_s3 + $0x8] sm:$0xff] }
  0x1b   : > { %477 = vadd.xlane.f32.xlu2 %v476_v11  ;;  %v5068_v20 = vsel %vm514_vm1, %v4571_v15, %v513_v19  ;;  %916 = vmatpush.bf16.msra.mxu0 %v4404_v9 }
  0x1c   : > { %7657 = vst [vmem:[#allocation2_spill] sm:$0xff] %v5068_v20 }
  0x23   : > { %480 = vadd.xlane.f32.xlu2 %v479_v13 }
  0x85   : > { %v469_v21 = vpop.xlane.xlu1 %468  ;;  %v463_v22 = vpop.xlane.xlu0 %462 }
  0x86   : > { %v516_v23 = vmul.f32 %v5068_v20, %v463_v22  ;;  %v475_v24 = vpop.xlane.xlu2 %474  ;;  %v518_v33 = vmul.f32 %v5068_v20, %v469_v21 }
  0x87   : > { %v520_v32 = vmul.f32 %v5068_v20, %v475_v24 }
  0x88   : > { %v5071_v25 = vsub.f32 %v442_v1, %v516_v23  ;;  %v5095_v42 = vsub.f32 %v444_v0, %v518_v33  ;;  %v5135_v0 = vld [vmem:[%s5052_s30 + $0x50] sm:$0xff]  ;;  %v497_v1 = vsel %vm460_vm0, %v5132_v63, 0.0 }
  0x89   : > { %v5087_v38 = vsub.f32 %v446_v4, %v520_v32  ;;  %v491_v3 = vsel %vm460_vm0, %v5135_v0, 0.0  ;;  %v5143_v4 = vld [vmem:[%s5052_s30 + $0x68] sm:$0xff] }
  0x8a   : > { %v548_v26 = vmul.f32 %v5071_v25, %v5071_v25  ;;  %v550_v48 = vmul.f32 %v5095_v42, %v5095_v42  ;;  %v500_v5 = vsel %vm460_vm0, %v5143_v4, 0.0 }
  0x8b   : > { %v552_v46 = vmul.f32 %v5087_v38, %v5087_v38 }
  0x8c   : > { %v564_v27 = vsel %vm460_vm0, %v548_v26, 0.0  ;;  %v570_v52 = vsel %vm460_vm0, %v550_v48, 0.0 }
  0x8d   : > { %v472_v28 = vpop.xlane.xlu1 %471  ;;  %565 = vadd.xlane.f32.xlu0 %v564_v27  ;;  %v466_v29 = vpop.xlane.xlu0 %465  ;;  %v576_v50 = vsel %vm460_vm0, %v552_v46, 0.0 }
  0x8e   : > { %v519_v30 = vmul.f32 %v5068_v20, %v472_v28  ;;  %v517_v31 = vmul.f32 %v5068_v20, %v466_v29  ;;  %v478_v37 = vpop.xlane.xlu2 %477 }
  0x8f   : > { %v521_v45 = vmul.f32 %v5068_v20, %v478_v37 }
  0x90   : > { %v5083_v35 = vsub.f32 %v445_v6, %v519_v30  ;;  %v5085_v36 = vsub.f32 %v443_v7, %v517_v31  ;;  %v5148_v6 = vld [vmem:[%s5052_s30 + $0x70] sm:$0xff] }
  0x91   : > { %v5107_v49 = vsub.f32 %v447_v8, %v521_v45  ;;  %v503_v7 = vsel %vm460_vm0, %v5148_v6, 0.0 }
  0x92   : > { %v551_v39 = vmul.f32 %v5083_v35, %v5083_v35  ;;  %v549_v41 = vmul.f32 %v5085_v36, %v5085_v36 }
  0x93   : > { %v553_v55 = vmul.f32 %v5107_v49, %v5107_v49 }
  0x94   : > { %v573_v43 = vsel %vm460_vm0, %v551_v39, 0.0  ;;  %v567_v44 = vsel %vm460_vm0, %v549_v41, 0.0 }
  0x95   : > { %574 = vadd.xlane.f32.xlu2 %v573_v43  ;;  %483 = vadd.xlane.f32.xlu0 %v482_v40  ;;  %v579_v60 = vsel %vm460_vm0, %v553_v55, 0.0 }
  0x96   : > { %568 = vadd.xlane.f32.xlu1 %v567_v44  ;;  %v481_v53 = vpop.xlane.xlu2 %480 }
  0x97   : > { %v522_v54 = vmul.f32 %v5068_v20, %v481_v53 }
  0x99   : > { %v5122_v58 = vsub.f32 %v448_v12, %v522_v54  ;;  %v4403_v12 = vld [vmem:[%s7637_s3] sm:$0xff] }
  0x9a   : > { %917 = vmatpush.bf16.msra.mxu0 %v4403_v12 }
  0x9b   : > { %v554_v62 = vmul.f32 %v5122_v58, %v5122_v58 }
  0x9d   : > { %577 = vadd.xlane.f32.xlu2 %v576_v50  ;;  %486 = vadd.xlane.f32.xlu0 %v485_v51  ;;  %v582_v2 = vsel %vm460_vm0, %v554_v62, 0.0 }
  0x9e   : > { %571 = vadd.xlane.f32.xlu1 %v570_v52 }
  0xa5   : > { %495 = vadd.xlane.f32.xlu2 %v494_v59  ;;  %580 = vadd.xlane.f32.xlu0 %v579_v60 }
  0xa6   : > { %489 = vadd.xlane.f32.xlu1 %v488_v61 }
  0xad   : > { %498 = vadd.xlane.f32.xlu2 %v497_v1  ;;  %583 = vadd.xlane.f32.xlu0 %v582_v2 }
  0xae   : > { %492 = vadd.xlane.f32.xlu1 %v491_v3 }
  0xb5   : > { %501 = vadd.xlane.f32.xlu0 %v500_v5 }
  0xbd   : > { %504 = vadd.xlane.f32.xlu0 %v503_v7 }
 0x100   : > { %v566_v8 = vpop.xlane.xlu0 %565 }
 0x101   : > { %v612_v10 = vmul.f32 %v566_v8, %v5068_v20 }
 0x103   : > { %v628_v11 = vadd.f32 1e-05, %v612_v10 }
 0x105   : > { %4572 = vrsqrt.f32 %v628_v11  ;;  %vm650_vm3 = vweird.f32 %v628_v11 }
 0x108   : > { %v575_v13 = vpop.xlane.xlu2 %574  ;;  %v484_v14 = vpop.xlane.xlu0 %483 }
 0x109   : > { %v615_v15 = vmul.f32 %v575_v13, %v5068_v20  ;;  %v569_v16 = vpop.xlane.xlu1 %568  ;;  %v523_v17 = vmul.f32 %v5068_v20, %v484_v14  ;;  %v5220_v14 = vld [vmem:[%s7635_s1] ss:$0 sm:$0xff] }
 0x10a   : > { %v613_v18 = vmul.f32 %v569_v16, %v5068_v20 }
 0x10b   : > { %v4573_v19 = vpop.eup %4572  ;;  %v5162_v21 = vadd.f32 1e-05, %v615_v15  ;;  %v5165_v22 = vsub.f32 %v5081_v34, %v523_v17 }
 0x10c   : > { %v645_v23 = vmul.f32 %v4573_v19, %v628_v11  ;;  %v629_v24 = vadd.f32 1e-05, %v613_v18  ;;  %vm651_vm2 = vweird.f32 %v4573_v19  ;;  %v5211_v11 = vld [vmem:[%s5052_s30 + $0x78] sm:$0xff] }
 0x10d   : > { %4574 = vrsqrt.f32 %v5162_v21  ;;  %v555_v26 = vmul.f32 %v5165_v22, %v5165_v22  ;;  %vm5188_vm4 = vmor %vm650_vm3, %vm651_vm2  ;;  %vm680_vm8 = vweird.f32 %v5162_v21 }
 0x10e   : > { %v646_v27 = vmul.f32 %v4573_v19, %v645_v23  ;;  %4576 = vrsqrt.f32 %v629_v24  ;;  %vm660_vm6 = vweird.f32 %v629_v24 }
 0x10f   : > { %v585_v28 = vsel %vm460_vm0, %v555_v26, 0.0 }
 0x110   : > { %v647_v29 = vmul.f32 0.5, %v646_v27  ;;  %v578_v30 = vpop.xlane.xlu2 %577  ;;  %586 = vadd.xlane.f32.xlu1 %v585_v28  ;;  %v487_v31 = vpop.xlane.xlu0 %486 }
 0x111   : > { %v572_v32 = vpop.xlane.xlu1 %571  ;;  %v524_v33 = vmul.f32 %v5068_v20, %v487_v31  ;;  %v616_v43 = vmul.f32 %v578_v30, %v5068_v20 }
 0x112   : > { %v648_v34 = vsub.f32 1.5, %v647_v29  ;;  %v614_v37 = vmul.f32 %v572_v32, %v5068_v20  ;;  %v5239_v32 = vld [vmem:[%s7636_s2] ss:$0 sm:$0xff] }
 0x113   : > { %v5173_v39 = vpop.eup %4574  ;;  %v5176_v40 = vsub.f32 %v5103_v47, %v524_v33  ;;  %v5186_v47 = vadd.f32 1e-05, %v616_v43 }
 0x114   : > { %v4577_v41 = vpop.eup %4576  ;;  %v5179_v44 = vadd.f32 1e-05, %v614_v37  ;;  %v649_v46 = vmul.f32 %v4573_v19, %v648_v34  ;;  %v675_v48 = vmul.f32 %v5173_v39, %v5162_v21  ;;  %vm681_vm9 = vweird.f32 %v5173_v39 }
 0x115   : > { %v655_v45 = vmul.f32 %v4577_v41, %v629_v24  ;;  %v556_v51 = vmul.f32 %v5176_v40, %v5176_v40  ;;  %vm661_vm5 = vweird.f32 %v4577_v41  ;;  %vm5263_vm12 = vmor %vm680_vm8, %vm681_vm9  ;;  %vm690_vm1 = vweird.f32 %v5186_v47 }
 0x116   : > { %4578 = vrsqrt.f32 %v5179_v44  ;;  %v653_v1 = vsel %vm5188_vm4, %v4573_v19, %v649_v46  ;;  %v676_v2 = vmul.f32 %v5173_v39, %v675_v48  ;;  %vm662_vm7 = vmor %vm660_vm6, %vm661_vm5  ;;  %v506_v19 = vsel %vm460_vm0, %v5211_v11, 0.0 }
 0x117   : > { %v656_v50 = vmul.f32 %v4577_v41, %v655_v45  ;;  %v588_v61 = vsel %vm460_vm0, %v556_v51, 0.0  ;;  %4580 = vrsqrt.f32 %v5186_v47  ;;  %vm670_vm11 = vweird.f32 %v5179_v44 }
 0x118   : > { %v496_v52 = vpop.xlane.xlu2 %495  ;;  %v581_v53 = vpop.xlane.xlu0 %580  ;;  %589 = vadd.xlane.f32.xlu1 %v588_v61  ;;  %v677_v15 = vmul.f32 0.5, %v676_v2 }
 0x119   : > { %v657_v55 = vmul.f32 0.5, %v656_v50  ;;  %v527_v59 = vmul.f32 %v5068_v20, %v496_v52  ;;  %v490_v60 = vpop.xlane.xlu1 %489  ;;  %v617_v62 = vmul.f32 %v581_v53, %v5068_v20 }
 0x11a   : > { %v525_v3 = vmul.f32 %v5068_v20, %v490_v60  ;;  %v678_v34 = vsub.f32 1.5, %v677_v15 }
 0x11b   : > { %v658_v5 = vsub.f32 1.5, %v657_v55  ;;  %v5200_v7 = vsub.f32 %v5117_v56, %v527_v59  ;;  %v5202_v8 = vadd.f32 1e-05, %v617_v62  ;;  %v804_v56 = vmul.f32 %v653_v1, %v5071_v25 }
 0x11c   : > { %v5204_v9 = vpop.eup %4578  ;;  %v5208_v10 = vsub.f32 %v5120_v57, %v525_v3  ;;  %v679_v52 = vmul.f32 %v5173_v39, %v678_v34 }
 0x11d   : > { %v659_v12 = vmul.f32 %v4577_v41, %v658_v5  ;;  %v665_v13 = vmul.f32 %v5204_v9, %v5179_v44  ;;  %4582 = vrsqrt.f32 %v5202_v8  ;;  %v559_v57 = vmul.f32 %v5200_v7, %v5200_v7  ;;  %v5241_v33 = vpop.eup %4580 }
 0x11e   : > { %v557_v18 = vmul.f32 %v5208_v10, %v5208_v10  ;;  %v823_v31 = vmul.f32 %v5220_v14, %v804_v56  ;;  %vm671_vm10 = vweird.f32 %v5204_v9  ;;  %v685_v53 = vmul.f32 %v5241_v33, %v5186_v47 }
 0x11f   : > { %v663_v16 = vsel %vm662_vm7, %v4577_v41, %v659_v12  ;;  %v666_v17 = vmul.f32 %v5204_v9, %v665_v13  ;;  %v597_v23 = vsel %vm460_vm0, %v559_v57, 0.0  ;;  %vm672_vm13 = vmor %vm670_vm11, %vm671_vm10  ;;  %v683_v2 = vsel %vm5263_vm12, %v5173_v39, %v679_v52 }
 0x120   : > { %v499_v25 = vpop.xlane.xlu2 %498  ;;  %v5230_v24 = vpop.xlane.xlu0 %583  ;;  %v805_v26 = vmul.f32 %v663_v16, %v5085_v36  ;;  %598 = vadd.xlane.f32.xlu0 %v597_v23  ;;  %v591_v29 = vsel %vm460_vm0, %v557_v18, 0.0  ;;  %507 = vadd.xlane.f32.xlu1 %v506_v19  ;;  %v842_v21 = vadd.f32 %v5239_v32, %v823_v31  ;;  %v686_v3 = vmul.f32 %v5241_v33, %v685_v53 }
 0x121   : > { %v667_v27 = vmul.f32 0.5, %v666_v17  ;;  %v528_v28 = vmul.f32 %v5068_v20, %v499_v25  ;;  %v493_v30 = vpop.xlane.xlu1 %492  ;;  %592 = vadd.xlane.f32.xlu2 %v591_v29  ;;  %v807_v56 = vmul.f32 %v683_v2, %v5083_v35  ;;  %vm700_vm14 = vweird.f32 %v5202_v8 }
 0x122   : > { %v526_v36 = vmul.f32 %v5068_v20, %v493_v30  ;;  %v824_v37 = vmul.f32 %v5220_v14, %v805_v26  ;;  %v687_v15 = vmul.f32 0.5, %v686_v3  ;;  %vm691_vm2 = vweird.f32 %v5241_v33 }
 0x123   : > { %v5245_v41 = vpop.eup %4582  ;;  %v668_v43 = vsub.f32 1.5, %v667_v27  ;;  %v5250_v45 = vsub.f32 %v5132_v63, %v528_v28  ;;  %vm692_vm4 = vmor %vm690_vm1, %vm691_vm2 }
 0x124   : > { %v695_v46 = vmul.f32 %v5245_v41, %v5202_v8  ;;  %v5256_v48 = vsub.f32 %v5135_v0, %v526_v36  ;;  %v843_v51 = vadd.f32 %v5239_v32, %v824_v37  ;;  %v688_v19 = vsub.f32 1.5, %v687_v15 }
 0x125   : > { %v669_v50 = vmul.f32 %v5204_v9, %v668_v43  ;;  %v560_v54 = vmul.f32 %v5250_v45, %v5250_v45  ;;  %vm701_vm15 = vweird.f32 %v5245_v41 }
 0x126   : > { %v558_v0 = vmul.f32 %v5256_v48, %v5256_v48  ;;  %v858_v44 = vpack.c.bf16 %v843_v51, %v842_v21  ;;  %v696_v59 = vmul.f32 %v5245_v41, %v695_v46  ;;  %vm702_vm3 = vmor %vm700_vm14, %vm701_vm15  ;;  %v689_v26 = vmul.f32 %v5241_v33, %v688_v19 }
 0x127   : > { %v673_v55 = vsel %vm672_vm13, %v5204_v9, %v669_v50  ;;  %v600_v61 = vsel %vm460_vm0, %v560_v54, 0.0 }
 0x128   : > { %v594_v60 = vsel %vm460_vm0, %v558_v0, 0.0  ;;  %v502_v62 = vpop.xlane.xlu0 %501  ;;  %4287 = vmatmul.msk.bf16.vlgmr.msra.gmra.mxu0 %vm460_vm0, %v858_v44  ;;  %601 = vadd.xlane.f32.xlu1 %v600_v61  ;;  %v806_v9 = vmul.f32 %v673_v55, %v5095_v42  ;;  %v697_v12 = vmul.f32 0.5, %v696_v59  ;;  %v693_v47 = vsel %vm692_vm4, %v5241_v33, %v689_v26 }
 0x129   : > { %v529_v1 = vmul.f32 %v5068_v20, %v502_v62  ;;  %595 = vadd.xlane.f32.xlu2 %v594_v60  ;;  %v808_v30 = vmul.f32 %v693_v47, %v5087_v38 }
 0x12a   : > { %v825_v39 = vmul.f32 %v5220_v14, %v806_v9  ;;  %v698_v16 = vsub.f32 1.5, %v697_v12 }
 0x12b   : > { %v5284_v5 = vsub.f32 %v5143_v4, %v529_v1  ;;  %v826_v4 = vmul.f32 %v5220_v14, %v807_v56  ;;  %v827_v34 = vmul.f32 %v5220_v14, %v808_v30 }
 0x12c   : > { %v844_v35 = vadd.f32 %v5239_v32, %v825_v39  ;;  %v699_v25 = vmul.f32 %v5245_v41, %v698_v16 }
 0x12d   : > { %v561_v13 = vmul.f32 %v5284_v5, %v5284_v5  ;;  %v845_v23 = vadd.f32 %v5239_v32, %v826_v4  ;;  %v846_v37 = vadd.f32 %v5239_v32, %v827_v34 }
 0x12e   : > { %v703_v28 = vsel %vm702_vm3, %v5245_v41, %v699_v25  ;;  %v618_v41 = vmul.f32 %v5230_v24, %v5068_v20 }
 0x12f   : > { %v603_v57 = vsel %vm460_vm0, %v561_v13, 0.0  ;;  %v859_v27 = vpack.c.bf16 %v845_v23, %v844_v35  ;;  %v809_v29 = vmul.f32 %v703_v28, %v5107_v49 }
 0x130   : > { %v505_v17 = vpop.xlane.xlu0 %504  ;;  %v634_v46 = vadd.f32 1e-05, %v618_v41 }
 0x131   : > { %v530_v18 = vmul.f32 %v5068_v20, %v505_v17  ;;  %604 = vadd.xlane.f32.xlu2 %v603_v57  ;;  %v828_v31 = vmul.f32 %v5220_v14, %v809_v29 }
 0x132   : > { %4584 = vrsqrt.f32 %v634_v46  ;;  %vm710_vm5 = vweird.f32 %v634_v46 }
 0x133   : > { %v5297_v42 = vsub.f32 %v5148_v6, %v530_v18  ;;  %v847_v36 = vadd.f32 %v5239_v32, %v828_v31 }
 0x135   : > { %v562_v8 = vmul.f32 %v5297_v42, %v5297_v42  ;;  %v860_v43 = vpack.c.bf16 %v847_v36, %v846_v37 }
 0x137   : > { %v606_v6 = vsel %vm460_vm0, %v562_v8, 0.0 }
 0x138   : > { %607 = vadd.xlane.f32.xlu0 %v606_v6  ;;  %4288 = vmatmul.msk.bf16.gmra.mxu0 %vm460_vm0, %v859_v27  ;;  %v4585_v33 = vpop.eup %4584 }
 0x139   : > { %v705_v49 = vmul.f32 %v4585_v33, %v634_v46  ;;  %vm711_vm6 = vweird.f32 %v4585_v33 }
 0x13a   : > { %vm5322_vm7 = vmor %vm710_vm5, %vm711_vm6 }
 0x13b   : > { %v706_v38 = vmul.f32 %v4585_v33, %v705_v49 }
 0x13d   : > { %v707_v52 = vmul.f32 0.5, %v706_v38 }
 0x13f   : > { %v708_v63 = vsub.f32 1.5, %v707_v52 }
 0x141   : > { %v709_v24 = vmul.f32 %v4585_v33, %v708_v63 }
 0x143   : > { %v713_v62 = vsel %vm5322_vm7, %v4585_v33, %v709_v24 }
 0x144   : > { %v810_v39 = vmul.f32 %v713_v62, %v5122_v58 }
 0x146   : > { %v829_v8 = vmul.f32 %v5220_v14, %v810_v39 }
 0x148   : > { %4289 = vmatmul.msk.bf16.gmra.mxu0 %vm460_vm0, %v860_v43  ;;  %v848_v30 = vadd.f32 %v5239_v32, %v829_v8 }
 0x183   : > { %v587_v50 = vpop.xlane.xlu1 %586 }
 0x184   : > { %v619_v21 = vmul.f32 %v587_v50, %v5068_v20 }
 0x186   : > { %v635_v51 = vadd.f32 1e-05, %v619_v21 }
 0x188   : > { %4586 = vrsqrt.f32 %v635_v51  ;;  %vm720_vm9 = vweird.f32 %v635_v51 }
 0x18b   : > { %v590_v53 = vpop.xlane.xlu1 %589 }
 0x18c   : > { %v620_v54 = vmul.f32 %v590_v53, %v5068_v20 }
 0x18e   : > { %v4587_v0 = vpop.eup %4586  ;;  %v636_v55 = vadd.f32 1e-05, %v620_v54 }
 0x18f   : > { %v715_v44 = vmul.f32 %v4587_v0, %v635_v51  ;;  %vm721_vm8 = vweird.f32 %v4587_v0 }
 0x190   : > { %4588 = vrsqrt.f32 %v636_v55  ;;  %vm722_vm10 = vmor %vm720_vm9, %vm721_vm8  ;;  %vm730_vm11 = vweird.f32 %v636_v55 }
 0x191   : > { %v716_v60 = vmul.f32 %v4587_v0, %v715_v44 }
 0x193   : > { %v717_v61 = vmul.f32 0.5, %v716_v60  ;;  %v599_v1 = vpop.xlane.xlu0 %598  ;;  %v508_v9 = vpop.xlane.xlu1 %507 }
 0x194   : > { %v593_v3 = vpop.xlane.xlu2 %592  ;;  %v623_v12 = vmul.f32 %v599_v1, %v5068_v20  ;;  %v531_v56 = vmul.f32 %v5068_v20, %v508_v9 }
 0x195   : > { %v718_v2 = vsub.f32 1.5, %v717_v61  ;;  %v621_v13 = vmul.f32 %v593_v3, %v5068_v20 }
 0x196   : > { %v5331_v57 = vadd.f32 1e-05, %v623_v12  ;;  %v4589_v16 = vpop.eup %4588  ;;  %v5335_v18 = vsub.f32 %v5211_v11, %v531_v56 }
 0x197   : > { %v719_v15 = vmul.f32 %v4587_v0, %v718_v2  ;;  %v637_v17 = vadd.f32 1e-05, %v621_v13  ;;  %v725_v19 = vmul.f32 %v4589_v16, %v636_v55  ;;  %vm731_vm12 = vweird.f32 %v4589_v16 }
 0x198   : > { %4590 = vrsqrt.f32 %v5331_v57  ;;  %v563_v35 = vmul.f32 %v5335_v18, %v5335_v18  ;;  %vm732_vm13 = vmor %vm730_vm11, %vm731_vm12  ;;  %vm760_vm2 = vweird.f32 %v5331_v57 }
 0x199   : > { %v723_v4 = vsel %vm722_vm10, %v4587_v0, %v719_v15  ;;  %4592 = vrsqrt.f32 %v637_v17  ;;  %v726_v25 = vmul.f32 %v4589_v16, %v725_v19  ;;  %vm740_vm15 = vweird.f32 %v637_v17 }
 0x19a   : > { %v811_v23 = vmul.f32 %v723_v4, %v5165_v22  ;;  %v609_v58 = vsel %vm460_vm0, %v563_v35, 0.0 }
 0x19b   : > { %v727_v26 = vmul.f32 0.5, %v726_v25  ;;  %610 = vadd.xlane.f32.xlu1 %v609_v58  ;;  %v602_v11 = vpop.xlane.xlu1 %601 }
 0x19c   : > { %v596_v27 = vpop.xlane.xlu2 %595  ;;  %v830_v6 = vmul.f32 %v5220_v14, %v811_v23  ;;  %v624_v36 = vmul.f32 %v602_v11, %v5068_v20 }
 0x19d   : > { %v622_v28 = vmul.f32 %v596_v27, %v5068_v20  ;;  %v728_v29 = vsub.f32 1.5, %v727_v26 }
 0x19e   : > { %v5345_v47 = vpop.eup %4590  ;;  %v849_v31 = vadd.f32 %v5239_v32, %v830_v6  ;;  %v5353_v49 = vadd.f32 1e-05, %v624_v36 }
 0x19f   : > { %v4593_v22 = vpop.eup %4592  ;;  %v638_v34 = vadd.f32 1e-05, %v622_v28  ;;  %v729_v37 = vmul.f32 %v4589_v16, %v728_v29  ;;  %v755_v41 = vmul.f32 %v5345_v47, %v5331_v57  ;;  %vm761_vm3 = vweird.f32 %v5345_v47 }
 0x1a0   : > { %v735_v43 = vmul.f32 %v4593_v22, %v637_v17  ;;  %v861_v46 = vpack.c.bf16 %v849_v31, %v848_v30  ;;  %vm741_vm14 = vweird.f32 %v4593_v22  ;;  %vm762_vm6 = vmor %vm760_vm2, %vm761_vm3  ;;  %vm770_vm10 = vweird.f32 %v5353_v49 }
 0x1a1   : > { %4594 = vrsqrt.f32 %v638_v34  ;;  %v733_v50 = vsel %vm732_vm13, %v4589_v16, %v729_v37  ;;  %v756_v21 = vmul.f32 %v5345_v47, %v755_v41  ;;  %vm742_vm1 = vmor %vm740_vm15, %vm741_vm14  ;;  %vm750_vm4 = vweird.f32 %v638_v34 }
 0x1a2   : > { %v736_v33 = vmul.f32 %v4593_v22, %v735_v43  ;;  %4290 = vmatmul.msk.bf16.gmra.mxu0 %vm460_vm0, %v861_v46  ;;  %4596 = vrsqrt.f32 %v5353_v49  ;;  %v812_v54 = vmul.f32 %v733_v50, %v5176_v40 }
 0x1a3   : > { %v757_v24 = vmul.f32 0.5, %v756_v21 }
 0x1a4   : > { %v737_v38 = vmul.f32 0.5, %v736_v33  ;;  %v605_v51 = vpop.xlane.xlu2 %604  ;;  %v831_v62 = vmul.f32 %v5220_v14, %v812_v54 }
 0x1a5   : > { %v625_v52 = vmul.f32 %v605_v51, %v5068_v20  ;;  %v758_v1 = vsub.f32 1.5, %v757_v24  ;;  %v5385_v33 = vpop.f32.mrf.mxu0 }
 0x1a6   : > { %v738_v63 = vsub.f32 1.5, %v737_v38  ;;  %v850_v13 = vadd.f32 %v5239_v32, %v831_v62 }
 0x1a7   : > { %v4595_v53 = vpop.eup %4594  ;;  %v641_v0 = vadd.f32 1e-05, %v625_v52 }
 0x1a8   : > { %v739_v44 = vmul.f32 %v4593_v22, %v738_v63  ;;  %v745_v55 = vmul.f32 %v4595_v53, %v638_v34  ;;  %v4597_v3 = vpop.eup %4596  ;;  %vm751_vm5 = vweird.f32 %v4595_v53 }
 0x1a9   : > { %4598 = vrsqrt.f32 %v641_v0  ;;  %v765_v39 = vmul.f32 %v4597_v3, %v5353_v49  ;;  %vm752_vm7 = vmor %vm750_vm4, %vm751_vm5  ;;  %vm780_vm8 = vweird.f32 %v641_v0  ;;  %vm771_vm11 = vweird.f32 %v4597_v3 }
 0x1aa   : > { %v743_v59 = vsel %vm742_vm1, %v4593_v22, %v739_v44  ;;  %v746_v60 = vmul.f32 %v4595_v53, %v745_v55  ;;  %vm772_vm13 = vmor %vm770_vm10, %vm771_vm11  ;;  %vm994_vm5 = vcmask 64512  }
 0x1ab   : > { %v813_v61 = vmul.f32 %v743_v59, %v5208_v10  ;;  %v759_v10 = vmul.f32 %v5345_v47, %v758_v1  ;;  %v766_v35 = vmul.f32 %v4597_v3, %v765_v39  ;;  %v608_v50 = vpop.xlane.xlu0 %607 }
 0x1ac   : > { %v747_v2 = vmul.f32 0.5, %v746_v60 }
 0x1ad   : > { %v832_v40 = vmul.f32 %v5220_v14, %v813_v61  ;;  %v763_v19 = vsel %vm762_vm6, %v5345_v47, %v759_v10  ;;  %v767_v58 = vmul.f32 0.5, %v766_v35  ;;  %v5387_v49 = vpop.f32.mrf.mxu0 }
 0x1ae   : > { %v748_v9 = vsub.f32 1.5, %v747_v2  ;;  %v815_v8 = vmul.f32 %v763_v19, %v5200_v7 }
 0x1af   : > { %v4599_v12 = vpop.eup %4598  ;;  %v851_v56 = vadd.f32 %v5239_v32, %v832_v40  ;;  %v768_v6 = vsub.f32 1.5, %v767_v58 }
 0x1b0   : > { %v749_v15 = vmul.f32 %v4595_v53, %v748_v9  ;;  %v775_v16 = vmul.f32 %v4599_v12, %v641_v0  ;;  %v834_v11 = vmul.f32 %v5220_v14, %v815_v8  ;;  %vm781_vm9 = vweird.f32 %v4599_v12 }
 0x1b1   : > { %v862_v57 = vpack.c.bf16 %v851_v56, %v850_v13  ;;  %vm782_vm12 = vmor %vm780_vm8, %vm781_vm9  ;;  %v769_v29 = vmul.f32 %v4597_v3, %v768_v6  ;;  %vm2734_vm8 = vcmask 195584  }
 0x1b2   : > { %v753_v17 = vsel %vm752_vm7, %v4595_v53, %v749_v15  ;;  %v776_v4 = vmul.f32 %v4599_v12, %v775_v16  ;;  %vm2717_vm7 = vcmask 130048  }
 0x1b3   : > { %4291 = vmatmul.msk.bf16.gmra.mxu0 %vm460_vm0, %v862_v57  ;;  %v814_v25 = vmul.f32 %v753_v17, %v5256_v48  ;;  %v853_v48 = vadd.f32 %v5239_v32, %v834_v11  ;;  %v773_v31 = vsel %vm772_vm13, %v4597_v3, %v769_v29 }
 0x1b4   : > { %v777_v23 = vmul.f32 0.5, %v776_v4  ;;  %v816_v34 = vmul.f32 %v773_v31, %v5250_v45  ;;  %v626_v45 = vmul.f32 %v608_v50, %v5068_v20 }
 0x1b5   : > { %v833_v26 = vmul.f32 %v5220_v14, %v814_v25  ;;  %v5389_v38 = vpop.f32.mrf.mxu0 }
 0x1b6   : > { %v778_v27 = vsub.f32 1.5, %v777_v23  ;;  %v835_v37 = vmul.f32 %v5220_v14, %v816_v34 }
 0x1b7   : > { %v852_v28 = vadd.f32 %v5239_v32, %v833_v26 }
 0x1b8   : > { %v779_v47 = vmul.f32 %v4599_v12, %v778_v27  ;;  %v854_v41 = vadd.f32 %v5239_v32, %v835_v37 }
 0x1b9   : > { %v863_v7 = vpack.c.bf16 %v853_v48, %v852_v28 }
 0x1ba   : > { %v783_v30 = vsel %vm782_vm12, %v4599_v12, %v779_v47 }
 0x1bb   : > { %v817_v22 = vmul.f32 %v783_v30, %v5284_v5  ;;  %v642_v5 = vadd.f32 1e-05, %v626_v45 }
 0x1bd   : > { %v836_v36 = vmul.f32 %v5220_v14, %v817_v22  ;;  %4600 = vrsqrt.f32 %v642_v5  ;;  %v926_v21 = vpop.f32.mrf.mxu0  ;;  %vm790_vm14 = vweird.f32 %v642_v5 }
 0x1bf   : > { %v855_v43 = vadd.f32 %v5239_v32, %v836_v36 }
 0x1c1   : > { %v864_v46 = vpack.c.bf16 %v855_v43, %v854_v41 }
 0x1c3   : > { %4292 = vmatmul.msk.bf16.gmra.mxu0 %vm460_vm0, %v863_v7  ;;  %v4601_v51 = vpop.eup %4600 }
 0x1c4   : > { %v785_v52 = vmul.f32 %v4601_v51, %v642_v5  ;;  %vm791_vm15 = vweird.f32 %v4601_v51 }
 0x1c5   : > { %v929_v63 = vpop.f32.mrf.mxu0  ;;  %vm792_vm1 = vmor %vm790_vm14, %vm791_vm15 }
 0x1c6   : > { %v786_v53 = vmul.f32 %v4601_v51, %v785_v52 }
 0x1c8   : > { %v787_v24 = vmul.f32 0.5, %v786_v53 }
 0x1ca   : > { %v788_v55 = vsub.f32 1.5, %v787_v24 }
 0x1cc   : > { %v789_v61 = vmul.f32 %v4601_v51, %v788_v55 }
 0x1cd   : > { %v931_v59 = vpop.f32.mrf.mxu0 }
 0x1ce   : > { %v793_v2 = vsel %vm792_vm1, %v4601_v51, %v789_v61 }
 0x1cf   : > { %v818_v12 = vmul.f32 %v793_v2, %v5297_v42  ;;  %v5403_v42 = vld [vmem:[%s7638_s4] ss:$0 sm:$0xff] }
 0x1d0   : > { %v930_v8 = vadd.f32 %v5403_v42, %v929_v63  ;;  %v927_v28 = vadd.f32 %v5403_v42, %v926_v21  ;;  %v925_v29 = vadd.f32 %v5403_v42, %v5389_v38  ;;  %v922_v43 = vadd.f32 %v5403_v42, %v5387_v49 }
 0x1d1   : > { %v837_v15 = vmul.f32 %v5220_v14, %v818_v12  ;;  %v920_v41 = vadd.f32 %v5403_v42, %v5385_v33 }
 0x1d2   : > { %v5430_v30 = vpack.c.bf16 %v927_v28, %v925_v29 }
 0x1d3   : > { %4293 = vmatmul.msk.bf16.gmra.mxu0 %vm460_vm0, %v864_v46  ;;  %v856_v57 = vadd.f32 %v5239_v32, %v837_v15  ;;  %v5454_v46 = vpack.c.bf16 %v922_v43, %v920_v41 }
 0x1d4   : > { %7664 = vst [vmem:[#allocation3_spill] sm:$0xff] %v5430_v30 }
 0x1d5   : > { %7665 = vst [vmem:[#allocation4_spill] sm:$0xff] %v5454_v46 }
 0x20e   : > { %v611_v0 = vpop.xlane.xlu1 %610 }
 0x20f   : > { %v627_v54 = vmul.f32 %v611_v0, %v5068_v20 }
 0x211   : > { %v643_v44 = vadd.f32 1e-05, %v627_v54 }
 0x213   : > { %4602 = vrsqrt.f32 %v643_v44  ;;  %vm800_vm2 = vweird.f32 %v643_v44 }
 0x219   : > { %v4603_v60 = vpop.eup %4602 }
 0x21a   : > { %v795_v62 = vmul.f32 %v4603_v60, %v643_v44  ;;  %vm801_vm3 = vweird.f32 %v4603_v60 }
 0x21b   : > { %vm802_vm4 = vmor %vm800_vm2, %vm801_vm3 }
 0x21c   : > { %v796_v1 = vmul.f32 %v4603_v60, %v795_v62 }
 0x21e   : > { %v797_v3 = vmul.f32 0.5, %v796_v1 }
 0x21f   : > { %v934_v40 = vpop.f32.mrf.mxu0 }
 0x220   : > { %v798_v9 = vsub.f32 1.5, %v797_v3  ;;  %v935_v7 = vadd.f32 %v5403_v42, %v934_v40 }
 0x222   : > { %v799_v13 = vmul.f32 %v4603_v60, %v798_v9 }
 0x224   : > { %v803_v56 = vsel %vm802_vm4, %v4603_v60, %v799_v13 }
 0x225   : > { %v819_v10 = vmul.f32 %v803_v56, %v5335_v18 }
 0x227   : > { %v936_v39 = vpop.f32.mrf.mxu0  ;;  %v838_v16 = vmul.f32 %v5220_v14, %v819_v10  ;;  %v932_v14 = vadd.f32 %v5403_v42, %v931_v59 }
 0x228   : > { %v937_v47 = vadd.f32 %v5403_v42, %v936_v39 }
 0x229   : > { %v857_v17 = vadd.f32 %v5239_v32, %v838_v16  ;;  %v5413_v58 = vpack.c.bf16 %v932_v14, %v930_v8 }
 0x22a   : > { %v5432_v31 = vpack.c.bf16 %v937_v47, %v935_v7 }
 0x22b   : > { %v865_v4 = vpack.c.bf16 %v857_v17, %v856_v57 }
 0x22d   : > { %4294 = vmatmul.msk.bf16.gmra.mxu0 %vm460_vm0, %v865_v4 }
 0x230   : > { %v939_v19 = vpop.f32.mrf.mxu0 }
 0x231   : > { %v940_v18 = vadd.f32 %v5403_v42, %v939_v19 }
 0x238   : > { %v941_v35 = vpop.f32.mrf.mxu0 }
 0x239   : > { %v942_v25 = vadd.f32 %v5403_v42, %v941_v35 }
 0x23b   : > { %v5407_v23 = vpack.c.bf16 %v942_v25, %v940_v18 }
 0x23d   : > { %986 = vrot.lane.b32.xlu2 %v5407_v23, %s4952_s24 }
 0x240   : > { %v944_v32 = vpop.f32.mrf.mxu0 }
 0x241   : > { %v945_v27 = vadd.f32 %v5403_v42, %v944_v32 }
 0x245   : > { %982 = vrot.lane.b32.xlu2 %v5413_v58, %s4952_s24 }
 0x248   : > { %v946_v26 = vpop.f32.mrf.mxu0 }
 0x249   : > { %v947_v11 = vadd.f32 %v5403_v42, %v946_v26 }
 0x24b   : > { %v5419_v6 = vpack.c.bf16 %v947_v11, %v945_v27 }
 0x24d   : > { %1375 = vrot.lane.b32.xlu2 %v5407_v23, %s4953_s28  ;;  %988 = vrot.lane.b32.xlu1 %v5419_v6, %s4952_s24 }
 0x250   : > { %v949_v48 = vpop.f32.mrf.mxu0 }
 0x251   : > { %v950_v34 = vadd.f32 %v5403_v42, %v949_v48 }
 0x255   : > { %1373 = vrot.lane.b32.xlu2 %v5432_v31, %s4953_s28  ;;  %980 = vrot.lane.b32.xlu1 %v5430_v30, %s4952_s24 }
 0x258   : > { %v951_v22 = vpop.f32.mrf.mxu0 }
 0x259   : > { %v952_v36 = vadd.f32 %v5403_v42, %v951_v22 }
 0x25b   : > { %v5440_v37 = vpack.c.bf16 %v952_v36, %v950_v34 }
 0x25d   : > { %990 = vrot.lane.b32.xlu0 %v5440_v37, %s4952_s24  ;;  %1377 = vrot.lane.b32.xlu1 %v5419_v6, %s4953_s28 }
 0x265   : > { %984 = vrot.lane.b32.xlu0 %v5432_v31, %s4952_s24  ;;  %1284 = vrot.lane.b32.xlu1 %v5432_v31, %s4954_s29 }
 0x26d   : > { %978 = vrot.lane.b32.xlu0 %v5454_v46, %s4952_s24  ;;  %1369 = vrot.lane.b32.xlu1 %v5430_v30, %s4953_s28 }
 0x275   : > { %1379 = vrot.lane.b32.xlu0 %v5440_v37, %s4953_s28  ;;  %1351 = vrot.lane.b32.xlu1 %v5454_v46, %s4955_s14 }
 0x27d   : > { %1371 = vrot.lane.b32.xlu0 %v5413_v58, %s4953_s28  ;;  %1355 = vrot.lane.b32.xlu1 %v5413_v58, %s4955_s14 }
 0x285   : > { %1280 = vrot.lane.b32.xlu0 %v5430_v30, %s4954_s29  ;;  %1765 = vrot.lane.b32.xlu1 %v5440_v37, %s4956_s15 }
 0x28d   : > { %1367 = vrot.lane.b32.xlu0 %v5454_v46, %s4953_s28  ;;  %2149 = vrot.lane.b32.xlu1 %v5419_v6, %s4957_s16 }
 0x295   : > { %1357 = vrot.lane.b32.xlu0 %v5432_v31, %s4955_s14  ;;  %1761 = vrot.lane.b32.xlu1 %v5407_v23, %s4956_s15 }
 0x297   : > { %v987_v63 = vpop.permute.xlu2 %986 }
 0x298   : > { %v1032_v15 = vsel %vm994_vm5, %v987_v63, 0 }
 0x29d   : > { %2147 = vrot.lane.b32.xlu0 %v5407_v23, %s4957_s16  ;;  %1759 = vrot.lane.b32.xlu1 %v5432_v31, %s4956_s15 }
 0x29f   : > { %v983_v0 = vpop.permute.xlu2 %982 }
 0x2a5   : > { %1737 = vrot.lane.b32.xlu0 %v5454_v46, %s4958_s17  ;;  %1363 = vrot.lane.b32.xlu1 %v5440_v37, %s4955_s14 }
 0x2a7   : > { %v5554_v24 = vpop.permute.xlu2 %1375 }
 0x2aa   : > { %v954_v33 = vpop.f32.mrf.mxu0 }
 0x2ab   : > { %v955_v50 = vadd.f32 %v5403_v42, %v954_v33 }
 0x2ad   : > { %1739 = vrot.lane.b32.xlu0 %v5430_v30, %s4958_s17  ;;  %2145 = vrot.lane.b32.xlu1 %v5432_v31, %s4957_s16 }
 0x2af   : > { %v5564_v59 = vpop.permute.xlu2 %1373 }
 0x2b0   : > { %v1417_v63 = vsel %vm994_vm5, %v5564_v59, 0 }
 0x2b2   : > { %v956_v49 = vpop.f32.mrf.mxu0 }
 0x2b3   : > { %v957_v38 = vadd.f32 %v5403_v42, %v956_v49  ;;  %v1026_v42 = vsel %vm994_vm5, %v983_v0, 0 }
 0x2b5   : > { %2127 = vrot.lane.b32.xlu0 %v5413_v58, %s4959_s18  ;;  %2141 = vrot.lane.b32.xlu1 %v5430_v30, %s4957_s16  ;;  %v5498_v45 = vpack.c.bf16 %v957_v38, %v955_v50 }
 0x2b7   : > { %992 = vrot.lane.b32.xlu2 %v5498_v45, %s4952_s24  ;;  %s4963_s24 = smov 8  }
 0x2bd   : > { %2133 = vrot.lane.b32.xlu0 %v5419_v6, %s4959_s18  ;;  %2125 = vrot.lane.b32.xlu1 %v5430_v30, %s4959_s18 }
 0x2bf   : > { %1290 = vrot.lane.b32.xlu2 %v5440_v37, %s4954_s29  ;;  %v989_v9 = vpop.permute.xlu1 %988 }
 0x2c0   : > { %v1035_v13 = vsel %vm994_vm5, %v989_v9, 0 }
 0x2c5   : > { %1676 = vrot.lane.b32.xlu0 %v5440_v37, %s4960_s19  ;;  %1743 = vrot.lane.b32.xlu1 %v5432_v31, %s4958_s17 }
 0x2c7   : > { %1288 = vrot.lane.b32.xlu2 %v5419_v6, %s4954_s29  ;;  %v981_v16 = vpop.permute.xlu1 %980 }
 0x2c8   : > { %v1023_v14 = vsel %vm994_vm5, %v981_v16, 0 }
 0x2cd   : > { %1674 = vrot.lane.b32.xlu0 %v5419_v6, %s4960_s19  ;;  %1747 = vrot.lane.b32.xlu1 %v5419_v6, %s4958_s17 }
 0x2cf   : > { %v991_v5 = vpop.permute.xlu0 %990  ;;  %1286 = vrot.lane.b32.xlu2 %v5407_v23, %s4954_s29  ;;  %v1378_v35 = vpop.permute.xlu1 %1377 }
 0x2d0   : > { %v1038_v3 = vsel %vm994_vm5, %v991_v5, 0  ;;  %v1423_v38 = vsel %vm994_vm5, %v1378_v35, 0 }
 0x2d5   : > { %1749 = vrot.lane.b32.xlu0 %v5440_v37, %s4958_s17  ;;  %1670 = vrot.lane.b32.xlu1 %v5432_v31, %s4960_s19 }
 0x2d7   : > { %v985_v21 = vpop.permute.xlu0 %984  ;;  %1282 = vrot.lane.b32.xlu2 %v5413_v58, %s4954_s29  ;;  %v1285_v32 = vpop.permute.xlu1 %1284 }
 0x2d8   : > { %v1029_v17 = vsel %vm994_vm5, %v985_v21, 0 }
 0x2dd   : > { %1672 = vrot.lane.b32.xlu0 %v5407_v23, %s4960_s19 }
 0x2df   : > { %v5528_v51 = vpop.permute.xlu0 %978  ;;  %1278 = vrot.lane.b32.xlu2 %v5454_v46, %s4954_s29  ;;  %v1370_v28 = vpop.permute.xlu1 %1369 }
 0x2e0   : > { %v1020_v27 = vsel %vm994_vm5, %v5528_v51, 0  ;;  %v1420_v51 = vsel %vm994_vm5, %v5554_v24, 0  ;;  %v1411_v9 = vsel %vm994_vm5, %v1370_v28, 0 }
 0x2e5   : > { %1668 = vrot.lane.b32.xlu0 %v5413_v58, %s4960_s19 }
 0x2e7   : > { %v5534_v52 = vpop.permute.xlu0 %1379  ;;  %1353 = vrot.lane.b32.xlu2 %v5430_v30, %s4955_s14  ;;  %v1352_v29 = vpop.permute.xlu1 %1351 }
 0x2e8   : > { %v1426_v33 = vsel %vm994_vm5, %v5534_v52, 0 }
 0x2ed   : > { %1381 = vrot.lane.b32.xlu0 %v5498_v45, %s4953_s28  ;;  %s4964_s28 = smov 24  }
 0x2ef   : > { %v5540_v53 = vpop.permute.xlu0 %1371  ;;  %1359 = vrot.lane.b32.xlu2 %v5407_v23, %s4955_s14  ;;  %v5632_v43 = vpop.permute.xlu1 %1355 }
 0x2f0   : > { %v1414_v24 = vsel %vm994_vm5, %v5540_v53, 0 }
 0x2f5   : > { %1292 = vrot.lane.b32.xlu0 %v5498_v45, %s4954_s29  ;;  %s4965_s29 = smov 16  }
 0x2f7   : > { %v5546_v54 = vpop.permute.xlu0 %1280  ;;  %2151 = vrot.lane.b32.xlu2 %v5440_v37, %s4957_s16  ;;  %v1766_v50 = vpop.permute.xlu1 %1765 }
 0x2f8   : > { %v1812_v59 = vsel %vm994_vm5, %v1766_v50, 0 }
 0x2fd   : > { %1767 = vrot.lane.b32.xlu0 %v5498_v45, %s4956_s15 }
 0x2ff   : > { %v5552_v44 = vpop.permute.xlu0 %1367  ;;  %1763 = vrot.lane.b32.xlu2 %v5419_v6, %s4956_s15  ;;  %v2150_v21 = vpop.permute.xlu1 %2149 }
 0x305   : > { %2153 = vrot.lane.b32.xlu0 %v5498_v45, %s4957_s16 }
 0x307   : > { %v5560_v55 = vpop.permute.xlu0 %1357  ;;  %1361 = vrot.lane.b32.xlu2 %v5419_v6, %s4955_s14 }
 0x30d   : > { %1365 = vrot.lane.b32.xlu0 %v5498_v45, %s4955_s14 }
 0x30f   : > { %v5568_v60 = vpop.permute.xlu0 %2147  ;;  %1757 = vrot.lane.b32.xlu2 %v5413_v58, %s4956_s15 }
 0x311   : > { %v993_v61 = vpop.permute.xlu2 %992 }
 0x312   : > { %v1041_v62 = vsel %vm994_vm5, %v993_v61, 0  ;;  %v1762_v61 = vpop.permute.xlu1 %1761 }
 0x313   : > { %1043 = vmatpush.bf16.xpose.msra.mxu1 %v1041_v62 }
 0x317   : > { %v5573_v1 = vpop.permute.xlu0 %1737  ;;  %2143 = vrot.lane.b32.xlu2 %v5413_v58, %s4957_s16 }
 0x319   : > { %v1291_v2 = vpop.permute.xlu2 %1290 }
 0x31b   : > { %1044 = vmatpush.bf16.xpose.msra.mxu1 %v1038_v3 }
 0x31f   : > { %v5578_v40 = vpop.permute.xlu0 %1739  ;;  %1755 = vrot.lane.b32.xlu2 %v5430_v30, %s4956_s15 }
 0x321   : > { %v1289_v12 = vpop.permute.xlu2 %1288 }
 0x323   : > { %1045 = vmatpush.bf16.xpose.msra.mxu1 %v1035_v13 }
 0x327   : > { %v5583_v56 = vpop.permute.xlu0 %2127  ;;  %1753 = vrot.lane.b32.xlu2 %v5454_v46, %s4956_s15 }
 0x329   : > { %v1287_v10 = vpop.permute.xlu2 %1286 }
 0x32b   : > { %1046 = vmatpush.bf16.xpose.msra.mxu1 %v1032_v15  ;;  %v1408_v15 = vsel %vm994_vm5, %v5552_v44, 0 }
 0x32f   : > { %v5588_v39 = vpop.permute.xlu0 %2133  ;;  %2139 = vrot.lane.b32.xlu2 %v5454_v46, %s4957_s16 }
 0x331   : > { %v1283_v57 = vpop.permute.xlu2 %1282 }
 0x333   : > { %1047 = vmatpush.bf16.xpose.msra.mxu1 %v1029_v17  ;;  %v1806_v17 = vsel %vm994_vm5, %v1762_v61, 0 }
 0x337   : > { %v5593_v4 = vpop.permute.xlu0 %1676  ;;  %2123 = vrot.lane.b32.xlu2 %v5454_v46, %s4959_s18 }
 0x339   : > { %v1279_v19 = vpop.permute.xlu2 %1278 }
 0x33b   : > { %1048 = vmatpush.bf16.xpose.msra.mxu1 %v1026_v42 }
 0x33f   : > { %v5598_v18 = vpop.permute.xlu0 %1674  ;;  %1741 = vrot.lane.b32.xlu2 %v5413_v58, %s4958_s17 }
 0x341   : > { %v5602_v25 = vpop.permute.xlu2 %1353 }
 0x343   : > { %1049 = vmatpush.bf16.xpose.msra.mxu1 %v1023_v14  ;;  %v2195_v14 = vsel %vm994_vm5, %v2150_v21, 0 }
 0x347   : > { %v5605_v8 = vpop.permute.xlu0 %1749  ;;  %2129 = vrot.lane.b32.xlu2 %v5432_v31, %s4959_s18 }
 0x349   : > { %v5609_v26 = vpop.permute.xlu2 %1359 }
 0x34b   : > { %1050 = vmatpush.bf16.xpose.msra.mxu1 %v1020_v27 }
 0x34f   : > { %v5613_v11 = vpop.permute.xlu0 %1672  ;;  %1745 = vrot.lane.b32.xlu2 %v5407_v23, %s4958_s17 }
 0x351   : > { %v5617_v47 = vpop.permute.xlu2 %2151 }
 0x352   : > { %4295 = vmatmul.msk.bf16.vlgmr.msra.gmra.mxu1 %vm994_vm5, %v5454_v46  ;;  %v2198_v42 = vsel %vm994_vm5, %v5617_v47, 0  ;;  %v2192_v47 = vsel %vm994_vm5, %v5568_v60, 0 }
 0x357   : > { %v5621_v48 = vpop.permute.xlu0 %1668  ;;  %2131 = vrot.lane.b32.xlu2 %v5407_v23, %s4959_s18 }
 0x359   : > { %v1764_v7 = vpop.permute.xlu2 %1763 }
 0x35a   : > { %v1809_v13 = vsel %vm994_vm5, %v1764_v7, 0 }
 0x35f   : > { %v1382_v22 = vpop.permute.xlu0 %1381  ;;  %2135 = vrot.lane.b32.xlu2 %v5440_v37, %s4959_s18 }
 0x360   : > { %v1429_v34 = vsel %vm994_vm5, %v1382_v22, 0 }
 0x361   : > { %1431 = vmatpush.bf16.xpose.msra.mxu3 %v1429_v34  ;;  %v5628_v36 = vpop.permute.xlu2 %1361 }
 0x362   : > { %4296 = vmatmul.msk.bf16.gmra.mxu1 %vm994_vm5, %v5430_v30 }
 0x367   : > { %v1293_v41 = vpop.permute.xlu0 %1292  ;;  %1678 = vrot.lane.b32.xlu2 %v5498_v45, %s4960_s19 }
 0x368   : > { %1302 = vmatpush.bf16.msra.mxu2 %v1293_v41 }
 0x369   : > { %1432 = vmatpush.bf16.xpose.msra.mxu3 %v1426_v33  ;;  %v1758_v49 = vpop.permute.xlu2 %1757 }
 0x36a   : > { %v1800_v28 = vsel %vm994_vm5, %v1758_v49, 0 }
 0x36c   : > { %1303 = vmatpush.bf16.msra.mxu2 %v1291_v2 }
 0x36f   : > { %v1768_v0 = vpop.permute.xlu0 %1767 }
 0x370   : > { %1304 = vmatpush.bf16.msra.mxu2 %v1289_v12  ;;  %v1815_v2 = vsel %vm994_vm5, %v1768_v0, 0 }
 0x371   : > { %1433 = vmatpush.bf16.xpose.msra.mxu3 %v1423_v38  ;;  %v5639_v5 = vpop.permute.xlu2 %2143  ;;  %v959_v38 = vlaneseq }
 0x372   : > { %4297 = vmatmul.msk.bf16.gmra.mxu1 %vm994_vm5, %v5413_v58  ;;  %v2186_v33 = vsel %vm994_vm5, %v5639_v5, 0 }
 0x374   : > { %1305 = vmatpush.bf16.msra.mxu2 %v1287_v10 }
 0x377   : > { %v2154_v53 = vpop.permute.xlu0 %2153 }
 0x378   : > { %1306 = vmatpush.bf16.msra.mxu2 %v1285_v32  ;;  %v2201_v16 = vsel %vm994_vm5, %v2154_v53, 0 }
 0x379   : > { %1434 = vmatpush.bf16.xpose.msra.mxu3 %v1420_v51  ;;  %v1756_v52 = vpop.permute.xlu2 %1755 }
 0x37a   : > { %v1797_v22 = vsel %vm994_vm5, %v1756_v52, 0 }
 0x37c   : > { %1307 = vmatpush.bf16.msra.mxu2 %v1283_v57 }
 0x380   : > { %1308 = vmatpush.bf16.msra.mxu2 %v5546_v54  ;;  %v1760_v54 = vpop.permute.xlu1 %1759 }
 0x381   : > { %1435 = vmatpush.bf16.xpose.msra.mxu3 %v1417_v63  ;;  %v1754_v62 = vpop.permute.xlu2 %1753  ;;  %v1803_v44 = vsel %vm994_vm5, %v1760_v54, 0 }
 0x382   : > { %4298 = vmatmul.msk.bf16.gmra.mxu1 %vm994_vm5, %v5432_v31 }
 0x384   : > { %1309 = vmatpush.bf16.msra.mxu2 %v1279_v19 }
 0x388   : > { %1817 = vmatpush.bf16.xpose.msrb.mxu2 %v1815_v2  ;;  %v5662_v10 = vpop.permute.xlu1 %1363 }
 0x389   : > { %1436 = vmatpush.bf16.xpose.msra.mxu3 %v1414_v24  ;;  %v5653_v3 = vpop.permute.xlu2 %2139 }
 0x390   : > { %1818 = vmatpush.bf16.xpose.msrb.mxu2 %v1812_v59  ;;  %v2146_v19 = vpop.permute.xlu1 %2145 }
 0x391   : > { %1437 = vmatpush.bf16.xpose.msra.mxu3 %v1411_v9  ;;  %v5657_v12 = vpop.permute.xlu2 %2123  ;;  %v2189_v34 = vsel %vm994_vm5, %v2146_v19, 0 }
 0x392   : > { %4299 = vmatmul.msk.bf16.gmra.mxu1 %vm994_vm5, %v5407_v23 }
 0x398   : > { %1819 = vmatpush.bf16.xpose.msrb.mxu2 %v1809_v13  ;;  %v2142_v32 = vpop.permute.xlu1 %2141 }
 0x399   : > { %1438 = vmatpush.bf16.xpose.msra.mxu3 %v1408_v15  ;;  %v5667_v57 = vpop.permute.xlu2 %1741  ;;  %v2183_v21 = vsel %vm994_vm5, %v2142_v32, 0 }
 0x3a0   : > { %1820 = vmatpush.bf16.xpose.msrb.mxu2 %v1806_v17  ;;  %4303 = vmatmul.msk.bf16.vlgmr.msra.gmra.mxu3 %vm994_vm5, %v1352_v29  ;;  %v5690_v7 = vpop.permute.xlu1 %2125 }
 0x3a1   : > { %2203 = vmatpush.bf16.xpose.msrb.mxu3 %v2201_v16  ;;  %v5673_v35 = vpop.permute.xlu2 %2129 }
 0x3a2   : > { %4300 = vmatmul.msk.bf16.gmra.mxu1 %vm994_vm5, %v5419_v6 }
 0x3a8   : > { %1821 = vmatpush.bf16.xpose.msrb.mxu2 %v1803_v44  ;;  %v5697_v60 = vpop.permute.xlu1 %1743 }
 0x3a9   : > { %2204 = vmatpush.bf16.xpose.msrb.mxu3 %v2198_v42  ;;  %v5679_v27 = vpop.permute.xlu2 %1745 }
 0x3b0   : > { %1822 = vmatpush.bf16.xpose.msrb.mxu2 %v1800_v28  ;;  %4304 = vmatmul.msk.bf16.gmra.mxu3 %vm994_vm5, %v5602_v25  ;;  %v1794_v25 = vsel %vm994_vm5, %v1754_v62, 0  ;;  %v5706_v50 = vpop.permute.xlu1 %1747 }
 0x3b1   : > { %2205 = vmatpush.bf16.xpose.msrb.mxu3 %v2195_v14  ;;  %v5686_v29 = vpop.permute.xlu2 %2131 }
 0x3b2   : > { %4301 = vmatmul.msk.bf16.gmra.mxu1 %vm994_vm5, %v5440_v37 }
 0x3b8   : > { %1823 = vmatpush.bf16.xpose.msrb.mxu2 %v1797_v22  ;;  %v1671_v52 = vpop.permute.xlu1 %1670 }
 0x3b9   : > { %2206 = vmatpush.bf16.xpose.msrb.mxu3 %v2192_v47  ;;  %v5694_v41 = vpop.permute.xlu2 %2135 }
 0x3c0   : > { %1824 = vmatpush.bf16.xpose.msrb.mxu2 %v1794_v25  ;;  %4305 = vmatmul.msk.bf16.gmra.mxu3 %vm994_vm5, %v5632_v43  ;;  %v5710_v43 = vand.u32 127, %v959_v38 }
 0x3c1   : > { %2207 = vmatpush.bf16.xpose.msrb.mxu3 %v2189_v34  ;;  %v1679_v49 = vpop.permute.xlu2 %1678 }
 0x3c2   : > { %4302 = vmatmul.msk.bf16.gmra.mxu1 %vm994_vm5, %v5498_v45  ;;  %1688 = vmatpush.bf16.msrb.mxu0 %v1679_v49  ;;  %vm961_vm6 = vcmp.lt.s32.totalorder %v5710_v43, 17 }
 0x3c6   : > { %1689 = vmatpush.bf16.msrb.mxu0 %v5593_v4  ;;  %v2180_v4 = vsel %vm994_vm5, %v5653_v3, 0  ;;  %v1366_v3 = vpop.permute.xlu0 %1365 }
 0x3c9   : > { %2208 = vmatpush.bf16.xpose.msrb.mxu3 %v2186_v33 }
 0x3ca   : > { %1690 = vmatpush.bf16.msrb.mxu0 %v5598_v18 }
 0x3ce   : > { %1691 = vmatpush.bf16.msrb.mxu0 %v5613_v11 }
 0x3cf   : > { %v1052_v5 = vpop.f32.mrf.mxu1 }
 0x3d0   : > { %4306 = vmatmul.msk.bf16.gmra.mxu3 %vm994_vm5, %v5560_v55  ;;  %v1092_v51 = vmul.f32 0.35355338, %v1052_v5 }
 0x3d1   : > { %2209 = vmatpush.bf16.xpose.msrb.mxu3 %v2183_v21 }
 0x3d2   : > { %1692 = vmatpush.bf16.msrb.mxu0 %v1671_v52  ;;  %v5720_v18 = vsel %vm961_vm6, %v1092_v51, -1e+30 }
 0x3d3   : > { %1126 = vmax.xlane.f32.xlu2 %v5720_v18 }
 0x3d6   : > { %1693 = vmatpush.bf16.msrb.mxu0 %v5621_v48 }
 0x3d7   : > { %v1054_v11 = vpop.f32.mrf.mxu1 }
 0x3d8   : > { %v1093_v63 = vmul.f32 0.35355338, %v1054_v11 }
 0x3d9   : > { %2210 = vmatpush.bf16.xpose.msrb.mxu3 %v2180_v4 }
 0x3da   : > { %v5726_v55 = vsel %vm961_vm6, %v1093_v63, -1e+30 }
 0x3db   : > { %1128 = vmax.xlane.f32.xlu1 %v5726_v55 }
 0x3df   : > { %v1057_v0 = vpop.f32.mrf.mxu1 }
 0x3e0   : > { %4307 = vmatmul.msk.bf16.gmra.mxu3 %vm994_vm5, %v5609_v26  ;;  %v1094_v53 = vmul.f32 0.35355338, %v1057_v0 }
 0x3e2   : > { %v5751_v17 = vsel %vm961_vm6, %v1094_v53, -1e+30 }
 0x3e7   : > { %v1059_v61 = vpop.f32.mrf.mxu1 }
 0x3e8   : > { %v1095_v47 = vmul.f32 0.35355338, %v1059_v61 }
 0x3ea   : > { %v5775_v25 = vsel %vm961_vm6, %v1095_v47, -1e+30 }
 0x3ef   : > { %v1062_v62 = vpop.f32.mrf.mxu1 }
 0x3f0   : > { %4308 = vmatmul.msk.bf16.gmra.mxu3 %vm994_vm5, %v5628_v36  ;;  %v1096_v49 = vmul.f32 0.35355338, %v1062_v62 }
 0x3f2   : > { %v5787_v51 = vsel %vm961_vm6, %v1096_v49, -1e+30 }
 0x3f7   : > { %v1064_v2 = vpop.f32.mrf.mxu1 }
 0x3f8   : > { %v1097_v42 = vmul.f32 0.35355338, %v1064_v2 }
 0x3fa   : > { %v5763_v32 = vsel %vm961_vm6, %v1097_v42, -1e+30 }
 0x3ff   : > { %v1067_v24 = vpop.f32.mrf.mxu1 }
 0x400   : > { %4309 = vmatmul.msk.bf16.gmra.mxu3 %vm994_vm5, %v5662_v10  ;;  %v1098_v52 = vmul.f32 0.35355338, %v1067_v24 }
 0x407   : > { %v1069_v48 = vpop.f32.mrf.mxu1 }
 0x40f   : > { %v5735_v54 = vpop.f32.mrf.mxu1 }
 0x410   : > { %4310 = vmatmul.msk.bf16.gmra.mxu3 %vm994_vm5, %v1366_v3  ;;  %v1100_v42 = vmul.f32 0.35355338, %v5735_v54 }
 0x417   : > { %v5738_v59 = vpop.f32.mrf.mxu1 }
 0x41f   : > { %v5740_v9 = vpop.f32.mrf.mxu1 }
 0x420   : > { %4319 = vmatmul.msk.bf16.vlgmr.msrb.gmra.mxu3 %vm994_vm5, %v5657_v12 }
 0x423   : > { %v1440_v26 = vpop.f32.mrf.mxu3 }
 0x424   : > { %v1480_v36 = vmul.f32 0.35355338, %v1440_v26 }
 0x426   : > { %v5746_v13 = vsel %vm961_vm6, %v1480_v36, -1e+30  ;;  %v1099_v36 = vmul.f32 0.35355338, %v1069_v48  ;;  %v5832_v48 = vsel %vm961_vm6, %v1100_v42, -1e+30 }
 0x427   : > { %1512 = vmax.xlane.f32.xlu0 %v5746_v13  ;;  %v1079_v10 = vpop.f32.mrf.mxu1 }
 0x42b   : > { %v1442_v15 = vpop.f32.mrf.mxu3 }
 0x42c   : > { %v1481_v16 = vmul.f32 0.35355338, %v1442_v15 }
 0x42e   : > { %v5755_v19 = vsel %vm961_vm6, %v1481_v16, -1e+30 }
 0x42f   : > { %1130 = vmax.xlane.f32.xlu0 %v5751_v17  ;;  %1514 = vmax.xlane.f32.xlu1 %v5755_v19  ;;  %v1082_v12 = vpop.f32.mrf.mxu1 }
 0x430   : > { %4320 = vmatmul.msk.bf16.gmra.mxu3 %vm994_vm5, %v5690_v7  ;;  %v1104_v47 = vmul.f32 0.35355338, %v1082_v12 }
 0x432   : > { %v5844_v54 = vsel %vm961_vm6, %v1104_v47, -1e+30 }
 0x433   : > { %v1445_v44 = vpop.f32.mrf.mxu3 }
 0x434   : > { %v1482_v14 = vmul.f32 0.35355338, %v1445_v44  ;;  %v1103_v44 = vmul.f32 0.35355338, %v1079_v10 }
 0x436   : > { %v5767_v28 = vsel %vm961_vm6, %v1482_v14, -1e+30  ;;  %v5837_v14 = vsel %vm961_vm6, %v1103_v44, -1e+30 }
 0x437   : > { %1136 = vmax.xlane.f32.xlu1 %v5763_v32  ;;  %1516 = vmax.xlane.f32.xlu2 %v5767_v28  ;;  %v5771_v22 = vpop.f32.mrf.mxu1 }
 0x43b   : > { %v1447_v7 = vpop.f32.mrf.mxu3 }
 0x43c   : > { %v1483_v34 = vmul.f32 0.35355338, %v1447_v7 }
 0x43e   : > { %v5779_v33 = vsel %vm961_vm6, %v1483_v34, -1e+30 }
 0x43f   : > { %1132 = vmax.xlane.f32.xlu2 %v5775_v25  ;;  %1518 = vmax.xlane.f32.xlu0 %v5779_v33  ;;  %v1087_v5 = vpop.f32.mrf.mxu1 }
 0x440   : > { %4321 = vmatmul.msk.bf16.gmra.mxu3 %vm994_vm5, %v5583_v56  ;;  %v5797_v56 = vsel %vm961_vm6, %v1098_v52, -1e+30  ;;  %v1106_v7 = vmul.f32 0.35355338, %v1087_v5 }
 0x442   : > { %v5852_v49 = vsel %vm961_vm6, %v1106_v7, -1e+30 }
 0x443   : > { %v1450_v38 = vpop.f32.mrf.mxu3 }
 0x444   : > { %v1484_v21 = vmul.f32 0.35355338, %v1450_v38  ;;  %v1101_v38 = vmul.f32 0.35355338, %v5738_v59 }
 0x446   : > { %v5791_v4 = vsel %vm961_vm6, %v1484_v21, -1e+30 }
 0x447   : > { %1134 = vmax.xlane.f32.xlu0 %v5787_v51  ;;  %1520 = vmax.xlane.f32.xlu2 %v5791_v4  ;;  %v1089_v61 = vpop.f32.mrf.mxu1 }
 0x448   : > { %v1107_v62 = vmul.f32 0.35355338, %v1089_v61 }
 0x44a   : > { %v5809_v3 = vsel %vm961_vm6, %v1107_v62, -1e+30 }
 0x44b   : > { %v1452_v11 = vpop.f32.mrf.mxu3 }
 0x44c   : > { %v1485_v63 = vmul.f32 0.35355338, %v1452_v11  ;;  %v5865_v11 = vsel %vm961_vm6, %v1101_v38, -1e+30 }
 0x44e   : > { %v5801_v0 = vsel %vm961_vm6, %v1485_v63, -1e+30  ;;  %v1129_v21 = vpop.xlane.xlu1 %1128 }
 0x44f   : > { %1138 = vmax.xlane.f32.xlu0 %v5797_v56  ;;  %1522 = vmax.xlane.f32.xlu1 %v5801_v0  ;;  %v1159_v52 = vsub.f32 %v5726_v55, %v1129_v21 }
 0x450   : > { %4322 = vmatmul.msk.bf16.gmra.mxu3 %vm994_vm5, %v5673_v35  ;;  %v5819_v35 = vsel %vm961_vm6, %v1099_v36, -1e+30 }
 0x451   : > { %v1176_v63 = vmul.f32 1.442695, %v1159_v52 }
 0x453   : > { %v1455_v2 = vpop.f32.mrf.mxu3 }
 0x454   : > { %v1486_v24 = vmul.f32 0.35355338, %v1455_v2 }
 0x456   : > { %v5813_v26 = vsel %vm961_vm6, %v1486_v24, -1e+30 }
 0x457   : > { %1156 = vmax.xlane.f32.xlu1 %v5809_v3  ;;  %1524 = vmax.xlane.f32.xlu2 %v5813_v26 }
 0x45b   : > { %v1457_v53 = vpop.f32.mrf.mxu3 }
 0x45c   : > { %v1487_v15 = vmul.f32 0.35355338, %v1457_v53 }
 0x45e   : > { %v5823_v16 = vsel %vm961_vm6, %v1487_v15, -1e+30 }
 0x45f   : > { %1140 = vmax.xlane.f32.xlu2 %v5819_v35  ;;  %1526 = vmax.xlane.f32.xlu0 %v5823_v16 }
 0x460   : > { %4323 = vmatmul.msk.bf16.gmra.mxu3 %vm994_vm5, %v5686_v29  ;;  %v1127_v29 = vpop.xlane.xlu2 %1126 }
 0x461   : > { %v1158_v10 = vsub.f32 %v5720_v18, %v1127_v29 }
 0x463   : > { %v1174_v34 = vmul.f32 1.442695, %v1158_v10 }
 0x465   : > { %4604 = vpow2.f32 %v1174_v34 }
 0x467   : > { %1142 = vmax.xlane.f32.xlu0 %v5832_v48 }
 0x46f   : > { %1148 = vmax.xlane.f32.xlu0 %v5837_v14 }
 0x470   : > { %4324 = vmatmul.msk.bf16.gmra.mxu3 %vm994_vm5, %v5588_v39  ;;  %v5857_v39 = vpop.eup %4604 }
 0x477   : > { %1666 = vrot.lane.b32.xlu2 %v5430_v30, %s4960_s19  ;;  %1150 = vmax.xlane.f32.xlu0 %v5844_v54 }
 0x47f   : > { %1154 = vmax.xlane.f32.xlu0 %v5852_v49 }
 0x480   : > { %4325 = vmatmul.msk.bf16.gmra.mxu3 %vm994_vm5, %v5694_v41  ;;  %v1102_v41 = vmul.f32 0.35355338, %v5740_v9  ;;  %v1105_v9 = vmul.f32 0.35355338, %v5771_v22 }
 0x482   : > { %v5875_v55 = vsel %vm961_vm6, %v1102_v41, -1e+30 }
 0x487   : > { %1206 = vadd.xlane.f32.xlu0 %v5857_v39 }
 0x49a   : > { %v1513_v12 = vpop.xlane.xlu0 %1512 }
 0x49b   : > { %v1544_v18 = vsub.f32 %v5746_v13, %v1513_v12 }
 0x49d   : > { %v1560_v5 = vmul.f32 1.442695, %v1544_v18 }
 0x49f   : > { %4606 = vpow2.f32 %v1560_v5  ;;  %v1460_v5 = vpop.f32.mrf.mxu3 }
 0x4a0   : > { %1144 = vmax.xlane.f32.xlu2 %v5865_v11  ;;  %4608 = vpow2.f32 %v1176_v63 }
 0x4a2   : > { %v1131_v61 = vpop.xlane.xlu0 %1130  ;;  %v1515_v59 = vpop.xlane.xlu1 %1514 }
 0x4a3   : > { %v1160_v13 = vsub.f32 %v5751_v17, %v1131_v61  ;;  %v1545_v2 = vsub.f32 %v5755_v19, %v1515_v59  ;;  %v5887_v17 = vsel %vm961_vm6, %v1105_v9, -1e+30 }
 0x4a5   : > { %v5869_v62 = vpop.eup %4606  ;;  %v1178_v36 = vmul.f32 1.442695, %v1160_v13  ;;  %v1562_v15 = vmul.f32 1.442695, %v1545_v2 }
 0x4a6   : > { %1592 = vadd.xlane.f32.xlu1 %v5869_v62  ;;  %v5882_v53 = vpop.eup %4608 }
 0x4a7   : > { %4610 = vpow2.f32 %v1178_v36  ;;  %v5910_v13 = vpop.f32.mrf.mxu3 }
 0x4a8   : > { %1146 = vmax.xlane.f32.xlu2 %v5875_v55  ;;  %4612 = vpow2.f32 %v1562_v15 }
 0x4aa   : > { %v5879_v24 = vpop.xlane.xlu2 %1516  ;;  %v1137_v12 = vpop.xlane.xlu1 %1136 }
 0x4ad   : > { %v5891_v47 = vpop.eup %4610 }
 0x4ae   : > { %1208 = vadd.xlane.f32.xlu1 %v5882_v53  ;;  %v5894_v29 = vpop.eup %4612 }
 0x4b0   : > { %1152 = vmax.xlane.f32.xlu2 %v5887_v17 }
 0x4b2   : > { %v1133_v42 = vpop.xlane.xlu2 %1132  ;;  %v1519_v19 = vpop.xlane.xlu0 %1518 }
 0x4b3   : > { %v1161_v44 = vsub.f32 %v5775_v25, %v1133_v42  ;;  %v1163_v25 = vsub.f32 %v5763_v32, %v1137_v12 }
 0x4b5   : > { %v1180_v22 = vmul.f32 1.442695, %v1161_v44  ;;  %v1184_v21 = vmul.f32 1.442695, %v1163_v25 }
 0x4b6   : > { %1210 = vadd.xlane.f32.xlu1 %v5891_v47 }
 0x4b7   : > { %4614 = vpow2.f32 %v1180_v22 }
 0x4b8   : > { %1594 = vadd.xlane.f32.xlu2 %v5894_v29 }
 0x4ba   : > { %v1135_v10 = vpop.xlane.xlu0 %1134  ;;  %v1521_v18 = vpop.xlane.xlu2 %1520 }
 0x4bb   : > { %v1162_v7 = vsub.f32 %v5787_v51, %v1135_v10 }
 0x4bd   : > { %v5898_v34 = vpop.eup %4614  ;;  %v1182_v38 = vmul.f32 1.442695, %v1162_v7 }
 0x4be   : > { %1212 = vadd.xlane.f32.xlu0 %v5898_v34 }
 0x4bf   : > { %4616 = vpow2.f32 %v1182_v38 }
 0x4c0   : > { %4618 = vpow2.f32 %v1184_v21 }
 0x4c2   : > { %v1139_v52 = vpop.xlane.xlu0 %1138 }
 0x4c3   : > { %v1164_v51 = vsub.f32 %v5797_v56, %v1139_v52  ;;  %v1465_v56 = vpop.f32.mrf.mxu3 }
 0x4c5   : > { %v5902_v41 = vpop.eup %4616  ;;  %v1186_v61 = vmul.f32 1.442695, %v1164_v51  ;;  %v1547_v51 = vsub.f32 %v5779_v33, %v1519_v19  ;;  %v1548_v19 = vsub.f32 %v5791_v4, %v1521_v18 }
 0x4c6   : > { %1214 = vadd.xlane.f32.xlu0 %v5902_v41  ;;  %v5908_v59 = vpop.eup %4618 }
 0x4c7   : > { %4620 = vpow2.f32 %v1186_v61  ;;  %v1488_v61 = vmul.f32 0.35355338, %v1460_v5  ;;  %v1523_v5 = vpop.xlane.xlu1 %1522 }
 0x4ca   : > { %v5906_v63 = vpop.xlane.xlu2 %1524 }
 0x4cb   : > { %v1467_v38 = vpop.f32.mrf.mxu3 }
 0x4cd   : > { %v5916_v15 = vpop.eup %4620 }
 0x4ce   : > { %1216 = vadd.xlane.f32.xlu0 %v5908_v59 }
 0x4d2   : > { %v1141_v32 = vpop.xlane.xlu2 %1140  ;;  %v5913_v2 = vpop.xlane.xlu0 %1526 }
 0x4d3   : > { %v1165_v9 = vsub.f32 %v5819_v35, %v1141_v32  ;;  %v1566_v32 = vmul.f32 1.442695, %v1547_v51  ;;  %v5957_v51 = vpop.xlane.xlu1 %1156 }
 0x4d5   : > { %v1188_v36 = vmul.f32 1.442695, %v1165_v9 }
 0x4d6   : > { %1218 = vadd.xlane.f32.xlu0 %v5916_v15 }
 0x4d7   : > { %4622 = vpow2.f32 %v1188_v36 }
 0x4da   : > { %v1667_v42 = vpop.permute.xlu2 %1666  ;;  %v1143_v44 = vpop.xlane.xlu0 %1142 }
 0x4db   : > { %v1166_v22 = vsub.f32 %v5832_v48, %v1143_v44  ;;  %1694 = vmatpush.bf16.msrb.mxu0 %v1667_v42  ;;  %v5929_v48 = vpop.f32.mrf.mxu3  ;;  %v1490_v42 = vmul.f32 0.35355338, %v1465_v56  ;;  %v1549_v56 = vsub.f32 %v5801_v0, %v1523_v5 }
 0x4dd   : > { %v5920_v10 = vpop.eup %4622  ;;  %v1190_v7 = vmul.f32 1.442695, %v1166_v22  ;;  %v5947_v33 = vsel %vm961_vm6, %v1490_v42, -1e+30  ;;  %v1550_v42 = vsub.f32 %v5813_v26, %v5906_v63 }
 0x4de   : > { %1220 = vadd.xlane.f32.xlu0 %v5920_v10 }
 0x4df   : > { %4624 = vpow2.f32 %v1190_v7  ;;  %v1491_v7 = vmul.f32 0.35355338, %v1467_v38  ;;  %v1572_v0 = vmul.f32 1.442695, %v1550_v42 }
 0x4e2   : > { %v1149_v12 = vpop.xlane.xlu0 %1148 }
 0x4e3   : > { %v1169_v35 = vsub.f32 %v5837_v14, %v1149_v12  ;;  %v5935_v14 = vsel %vm961_vm6, %v1488_v61, -1e+30  ;;  %v5938_v9 = vpop.f32.mrf.mxu3  ;;  %v1568_v12 = vmul.f32 1.442695, %v1548_v19 }
 0x4e5   : > { %v5924_v25 = vpop.eup %4624  ;;  %v1196_v21 = vmul.f32 1.442695, %v1169_v35 }
 0x4e6   : > { %1222 = vadd.xlane.f32.xlu2 %v5924_v25 }
 0x4e7   : > { %4626 = vpow2.f32 %v1196_v21  ;;  %v5953_v21 = vsel %vm961_vm6, %v1491_v7, -1e+30 }
 0x4e8   : > { %4628 = vpow2.f32 %v1566_v32  ;;  %v1570_v32 = vmul.f32 1.442695, %v1549_v56 }
 0x4e9   : > { %4630 = vpow2.f32 %v1568_v12 }
 0x4ea   : > { %v1151_v22 = vpop.xlane.xlu0 %1150  ;;  %4632 = vpow2.f32 %v1570_v32 }
 0x4eb   : > { %v5943_v44 = vpop.f32.mrf.mxu3  ;;  %v1170_v7 = vsub.f32 %v5844_v54, %v1151_v22 }
 0x4ed   : > { %v5927_v52 = vpop.eup %4626  ;;  %v1198_v56 = vmul.f32 1.442695, %v1170_v7 }
 0x4ee   : > { %1228 = vadd.xlane.f32.xlu1 %v5927_v52  ;;  %v5940_v36 = vpop.eup %4628 }
 0x4ef   : > { %v5962_v38 = vpop.eup %4630 }
 0x4f0   : > { %v5973_v30 = vpop.eup %4632 }
 0x4f2   : > { %v5959_v61 = vpop.xlane.xlu0 %1154 }
 0x4f3   : > { %v1477_v35 = vpop.f32.mrf.mxu3 }
 0x4f6   : > { %1528 = vmax.xlane.f32.xlu1 %v5935_v14 }
 0x4fb   : > { %v5966_v19 = vpop.f32.mrf.mxu3 }
 0x4fe   : > { %1598 = vadd.xlane.f32.xlu1 %v5940_v36 }
 0x503   : > { %v2214_v63 = vpop.f32.mrf.mxu3 }
 0x506   : > { %1532 = vmax.xlane.f32.xlu1 %v5947_v33 }
 0x50e   : > { %1534 = vmax.xlane.f32.xlu1 %v5953_v21 }
 0x513   : > { %v1145_v4 = vpop.xlane.xlu2 %1144 }
 0x514   : > { %v1167_v18 = vsub.f32 %v5865_v11, %v1145_v4  ;;  %v1207_v11 = vpop.xlane.xlu0 %1206 }
 0x516   : > { %v1192_v12 = vmul.f32 1.442695, %v1167_v18  ;;  %1600 = vadd.xlane.f32.xlu1 %v5962_v38 }
 0x518   : > { %4634 = vpow2.f32 %v1192_v12 }
 0x519   : > { %v5970_v5 = vpop.xlane.xlu1 %1592  ;;  %4636 = vpow2.f32 %v1572_v0 }
 0x51a   : > { %4638 = vpow2.f32 %v1198_v56  ;;  %v1495_v56 = vmul.f32 0.35355338, %v1477_v35  ;;  %v2253_v35 = vmul.f32 0.35355338, %v2214_v63 }
 0x51b   : > { %v1147_v20 = vpop.xlane.xlu2 %1146  ;;  %4640 = vrcp.f32 %v1207_v11 }
 0x51c   : > { %v1168_v4 = vsub.f32 %v5875_v55, %v1147_v20 }
 0x51e   : > { %v5975_v26 = vpop.eup %4634  ;;  %v1194_v54 = vmul.f32 1.442695, %v1168_v4  ;;  %1602 = vadd.xlane.f32.xlu1 %v5973_v30 }
 0x51f   : > { %1224 = vadd.xlane.f32.xlu2 %v5975_v26  ;;  %v5979_v32 = vpop.eup %4636 }
 0x520   : > { %4642 = vpow2.f32 %v1194_v54  ;;  %v5981_v20 = vpop.eup %4638  ;;  %v5991_v54 = vpop.f32.mrf.mxu3 }
 0x521   : > { %v1209_v22 = vpop.xlane.xlu1 %1208  ;;  %v4641_v42 = vpop.eup %4640 }
 0x522   : > { %4644 = vrcp.f32 %v1209_v22  ;;  %v1254_v11 = vmul.f32 %v4641_v42, %v5857_v39  ;;  %v6003_v42 = vsel %vm961_vm6, %v2253_v35, -1e+30  ;;  %v1173_v35 = vsub.f32 %v5809_v3, %v5957_v51 }
 0x523   : > { %v1153_v18 = vpop.xlane.xlu2 %1152 }
 0x524   : > { %v1171_v55 = vsub.f32 %v5887_v17, %v1153_v18  ;;  %v5995_v18 = vsel %vm961_vm6, %v1495_v56, -1e+30 }
 0x525   : > { %7666 = vst [vmem:[#allocation5_spill] sm:$0xff] %v5995_v18 }
 0x526   : > { %v5984_v7 = vpop.eup %4642  ;;  %v1200_v12 = vmul.f32 1.442695, %v1171_v55  ;;  %1604 = vadd.xlane.f32.xlu1 %v5979_v32 }
 0x527   : > { %1226 = vadd.xlane.f32.xlu0 %v5984_v7  ;;  %1230 = vadd.xlane.f32.xlu2 %v5981_v20 }
 0x528   : > { %v4645_v0 = vpop.eup %4644  ;;  %4646 = vpow2.f32 %v1200_v12 }
 0x529   : > { %v1255_v4 = vmul.f32 %v4645_v0, %v5882_v53  ;;  %v1211_v22 = vpop.xlane.xlu1 %1210  ;;  %v2219_v53 = vpop.f32.mrf.mxu3 }
 0x52a   : > { %4648 = vrcp.f32 %v1211_v22  ;;  %v2255_v56 = vmul.f32 0.35355338, %v2219_v53 }
 0x52b   : > { %v1270_v17 = vpack.c.bf16 %v1255_v4, %v1254_v11 }
 0x52c   : > { %v6010_v63 = vsel %vm961_vm6, %v2255_v56, -1e+30 }
 0x52d   : > { %1310 = vmatmul.bf16.vlgmr.msra.gmra.mxu2 %v1270_v17  ;;  %7667 = vst [vmem:[#allocation6_spill] sm:$0xff] %v6010_v63 }
 0x52e   : > { %v5997_v55 = vpop.eup %4646  ;;  %1542 = vmax.xlane.f32.xlu1 %v5995_v18 }
 0x52f   : > { %1232 = vadd.xlane.f32.xlu0 %v5997_v55 }
 0x530   : > { %v4649_v12 = vpop.eup %4648 }
 0x531   : > { %v1213_v39 = vpop.xlane.xlu0 %1212  ;;  %v1256_v11 = vmul.f32 %v4649_v12, %v5891_v47  ;;  %v2222_v22 = vpop.f32.mrf.mxu3 }
 0x532   : > { %4650 = vrcp.f32 %v1213_v39  ;;  %v2256_v39 = vmul.f32 0.35355338, %v2222_v22 }
 0x536   : > { %2286 = vmax.xlane.f32.xlu1 %v6003_v42 }
 0x538   : > { %v4651_v0 = vpop.eup %4650 }
 0x539   : > { %v1257_v4 = vmul.f32 %v4651_v0, %v5898_v34  ;;  %v1215_v17 = vpop.xlane.xlu0 %1214  ;;  %v1204_v34 = vmul.f32 1.442695, %v1173_v35  ;;  %v1546_v35 = vsub.f32 %v5767_v28, %v5879_v24  ;;  %v1493_v24 = vmul.f32 0.35355338, %v5938_v9 }
 0x53a   : > { %4652 = vrcp.f32 %v1215_v17 }
 0x53b   : > { %v1271_v18 = vpack.c.bf16 %v1257_v4, %v1256_v11 }
 0x53d   : > { %1315 = vmatmul.bf16.gmra.mxu2 %v1271_v18  ;;  %v6021_v18 = vsel %vm961_vm6, %v2256_v39, -1e+30 }
 0x53e   : > { %2290 = vmax.xlane.f32.xlu1 %v6010_v63  ;;  %7668 = vst [vmem:[#allocation7_spill] sm:$0xff] %v6021_v18 }
 0x53f   : > { %1664 = vrot.lane.b32.xlu2 %v5454_v46, %s4960_s19 }
 0x540   : > { %v4653_v53 = vpop.eup %4652 }
 0x541   : > { %v1217_v47 = vpop.xlane.xlu0 %1216  ;;  %v1258_v12 = vmul.f32 %v4653_v53, %v5902_v41 }
 0x542   : > { %4654 = vrcp.f32 %v1217_v47 }
 0x543   : > { %1751 = vrot.lane.b32.xlu0 %v5498_v45, %s4958_s17  ;;  %4656 = vpow2.f32 %v1204_v34  ;;  %v1172_v34 = vsub.f32 %v5852_v49, %v5959_v61  ;;  %v6050_v49 = vsel %vm961_vm6, %v1493_v24, -1e+30  ;;  %v1494_v61 = vmul.f32 0.35355338, %v5943_v44  ;;  %v1595_v44 = vpop.xlane.xlu2 %1594 }
 0x545   : > { %v6060_v9 = vsel %vm961_vm6, %v1494_v61, -1e+30 }
 0x546   : > { %2292 = vmax.xlane.f32.xlu1 %v6021_v18 }
 0x548   : > { %v4655_v3 = vpop.eup %4654 }
 0x549   : > { %v1219_v51 = vpop.xlane.xlu0 %1218  ;;  %v1259_v0 = vmul.f32 %v4655_v3, %v5908_v59  ;;  %v6026_v11 = vpop.eup %4656  ;;  %v1564_v59 = vmul.f32 1.442695, %v1546_v35  ;;  %v1202_v3 = vmul.f32 1.442695, %v1172_v34 }
 0x54a   : > { %4658 = vrcp.f32 %v1219_v51 }
 0x54b   : > { %v1272_v56 = vpack.c.bf16 %v1259_v0, %v1258_v12 }
 0x54d   : > { %1320 = vmatmul.bf16.gmra.mxu2 %v1272_v56 }
 0x54e   : > { %1236 = vadd.xlane.f32.xlu1 %v6026_v11 }
 0x550   : > { %v4659_v17 = vpop.eup %4658 }
 0x551   : > { %v1221_v4 = vpop.xlane.xlu0 %1220  ;;  %v1260_v39 = vmul.f32 %v4659_v17, %v5916_v15 }
 0x552   : > { %4660 = vrcp.f32 %v1221_v4 }
 0x553   : > { %4662 = vpow2.f32 %v1564_v59 }
 0x554   : > { %4664 = vpow2.f32 %v1202_v3 }
 0x558   : > { %v4661_v22 = vpop.eup %4660 }
 0x559   : > { %v1261_v41 = vmul.f32 %v4661_v22, %v5920_v10  ;;  %v6035_v51 = vpop.eup %4662  ;;  %v1223_v56 = vpop.xlane.xlu2 %1222 }
 0x55a   : > { %v6043_v15 = vpop.eup %4664  ;;  %4666 = vrcp.f32 %v1223_v56 }
 0x55b   : > { %v1273_v47 = vpack.c.bf16 %v1261_v41, %v1260_v39  ;;  %v6075_v39 = vpop.f32.mrf.mxu3 }
 0x55d   : > { %1325 = vmatmul.bf16.gmra.mxu2 %v1273_v47 }
 0x560   : > { %v4667_v35 = vpop.eup %4666 }
 0x561   : > { %v1229_v53 = vpop.xlane.xlu1 %1228  ;;  %v1262_v59 = vmul.f32 %v4667_v35, %v5924_v25 }
 0x563   : > { %v2227_v63 = vpop.f32.mrf.mxu3 }
 0x564   : > { %v2258_v46 = vmul.f32 0.35355338, %v2227_v63 }
 0x567   : > { %2450 = vrot.lane.b32.xlu1 %v5498_v45, %s4961_s20 }
 0x568   : > { %1596 = vadd.xlane.f32.xlu2 %v6035_v51 }
 0x569   : > { %v6040_v28 = vpop.xlane.xlu1 %1528 }
 0x56d   : > { %1234 = vadd.xlane.f32.xlu0 %v6043_v15 }
 0x56f   : > { %2446 = vrot.lane.b32.xlu1 %v5419_v6, %s4961_s20 }
 0x570   : > { %1538 = vmax.xlane.f32.xlu2 %v6050_v49 }
 0x571   : > { %v6053_v10 = vpop.xlane.xlu1 %1598 }
 0x577   : > { %2444 = vrot.lane.b32.xlu1 %v5407_v23, %s4961_s20 }
 0x578   : > { %1540 = vmax.xlane.f32.xlu2 %v6060_v9 }
 0x579   : > { %v6063_v12 = vpop.xlane.xlu1 %1532 }
 0x57f   : > { %2056 = vrot.lane.b32.xlu1 %v5432_v31, %s4962_s21 }
 0x581   : > { %v6067_v0 = vpop.xlane.xlu1 %1534  ;;  %2137 = vrot.lane.b32.xlu0 %v5498_v45, %s4959_s18  ;;  %s7421_s18 = scalar_lea.vmem %s7647_s13, %s4401_s27 }
 0x589   : > { %v6071_v4 = vpop.xlane.xlu1 %1600 }
 0x591   : > { %v6073_v22 = vpop.xlane.xlu1 %1602 }
 0x592   : > { %v1225_v17 = vpop.xlane.xlu2 %1224 }
 0x593   : > { %4668 = vrcp.f32 %v1225_v17 }
 0x594   : > { %4670 = vrcp.f32 %v1595_v44 }
 0x595   : > { %4672 = vrcp.f32 %v5970_v5 }
 0x599   : > { %v4669_v41 = vpop.eup %4668  ;;  %v6080_v17 = vpop.xlane.xlu1 %1604 }
 0x59a   : > { %v1231_v47 = vpop.xlane.xlu2 %1230  ;;  %v1263_v34 = vmul.f32 %v4669_v41, %v5975_v26  ;;  %v1227_v3 = vpop.xlane.xlu0 %1226  ;;  %v1489_v26 = vmul.f32 0.35355338, %v5910_v13  ;;  %v1551_v13 = vsub.f32 %v5823_v16, %v5913_v2  ;;  %v1552_v16 = vsub.f32 %v5935_v14, %v6040_v28 }
 0x59b   : > { %v4671_v61 = vpop.eup %4670  ;;  %4674 = vrcp.f32 %v1227_v3 }
 0x59c   : > { %v1274_v24 = vpack.c.bf16 %v1263_v34, %v1262_v59  ;;  %v4673_v56 = vpop.eup %4672  ;;  %v1641_v18 = vmul.f32 %v4671_v61, %v5894_v29  ;;  %4676 = vrcp.f32 %v1229_v53  ;;  %v6087_v59 = vsel %vm961_vm6, %v2258_v46, -1e+30 }
 0x59d   : > { %v1640_v5 = vmul.f32 %v4673_v56, %v5869_v62  ;;  %v6095_v62 = vsel %vm961_vm6, %v1489_v26, -1e+30  ;;  %v1492_v53 = vmul.f32 0.35355338, %v5929_v48  ;;  %v1576_v61 = vmul.f32 1.442695, %v1552_v16 }
 0x59e   : > { %1330 = vmatmul.bf16.gmra.mxu2 %v1274_v24 }
 0x59f   : > { %v1656_v25 = vpack.c.bf16 %v1641_v18, %v1640_v5  ;;  %v6104_v3 = vsel %vm961_vm6, %v1492_v53, -1e+30 }
 0x5a1   : > { %v4675_v35 = vpop.eup %4674  ;;  %v6090_v29 = vpop.xlane.xlu1 %1542 }
 0x5a2   : > { %v1665_v44 = vpop.permute.xlu2 %1664  ;;  %v4677_v41 = vpop.eup %4676  ;;  %v1264_v34 = vmul.f32 %v4675_v35, %v5984_v7  ;;  %v1574_v7 = vmul.f32 1.442695, %v1551_v13 }
 0x5a3   : > { %1695 = vmatpush.bf16.msrb.mxu0 %v1665_v44  ;;  %v1265_v63 = vmul.f32 %v4677_v41, %v5927_v52  ;;  %v1233_v18 = vpop.xlane.xlu0 %1232  ;;  %v1554_v44 = vsub.f32 %v5947_v33, %v6063_v12 }
 0x5a4   : > { %4678 = vrcp.f32 %v1233_v18 }
 0x5a5   : > { %v1275_v46 = vpack.c.bf16 %v1265_v63, %v1264_v34  ;;  %4680 = vrcp.f32 %v1231_v47  ;;  %v1580_v14 = vmul.f32 1.442695, %v1554_v44 }
 0x5a6   : > { %1696 = vmatmul.bf16.vlgmr.msrb.gmra.mxu0 %v1656_v25  ;;  %4682 = vpow2.f32 %v1574_v7 }
 0x5a7   : > { %4684 = vpow2.f32 %v1576_v61 }
 0x5a8   : > { %4686 = vpow2.f32 %v1580_v14 }
 0x5a9   : > { %2296 = vmax.xlane.f32.xlu1 %v6087_v59  ;;  %v6106_v24 = vpop.xlane.xlu1 %2286  ;;  %4688 = vrcp.f32 %v6053_v10 }
 0x5aa   : > { %v4679_v2 = vpop.eup %4678 }
 0x5ab   : > { %1530 = vmax.xlane.f32.xlu0 %v6095_v62  ;;  %v4681_v52 = vpop.eup %4680  ;;  %v1267_v48 = vmul.f32 %v4679_v2, %v5997_v55 }
 0x5ac   : > { %v6112_v56 = vpop.eup %4682  ;;  %v1266_v47 = vmul.f32 %v4681_v52, %v5981_v20 }
 0x5ad   : > { %v6120_v28 = vpop.eup %4684 }
 0x5ae   : > { %1335 = vmatmul.bf16.gmra.mxu2 %v1275_v46  ;;  %v1276_v5 = vpack.c.bf16 %v1267_v48, %v1266_v47  ;;  %v6127_v55 = vpop.eup %4686 }
 0x5af   : > { %v4689_v41 = vpop.eup %4688 }
 0x5b0   : > { %v1643_v18 = vmul.f32 %v4689_v41, %v5940_v36  ;;  %v6135_v16 = vpop.f32.mrf.mxu2 }
 0x5b1   : > { %v6118_v25 = vpop.xlane.xlu1 %2290 }
 0x5b3   : > { %1536 = vmax.xlane.f32.xlu0 %v6104_v3 }
 0x5b5   : > { %v6130_v12 = vpop.permute.xlu0 %1751 }
 0x5b8   : > { %v6141_v48 = vpop.f32.mrf.mxu2 }
 0x5b9   : > { %v6125_v20 = vpop.xlane.xlu1 %2292 }
 0x5bb   : > { %1606 = vadd.xlane.f32.xlu0 %v6112_v56 }
 0x5be   : > { %1340 = vmatmul.bf16.gmra.mxu2 %v1276_v5 }
 0x5c1   : > { %v1237_v33 = vpop.xlane.xlu1 %1236 }
 0x5c2   : > { %2440 = vrot.lane.b32.xlu1 %v5413_v58, %s4961_s20 }
 0x5c3   : > { %1608 = vadd.xlane.f32.xlu0 %v6120_v28 }
 0x5cb   : > { %1612 = vadd.xlane.f32.xlu0 %v6127_v55 }
 0x5d9   : > { %v2451_v35 = vpop.permute.xlu1 %2450 }
 0x5da   : > { %2460 = vmatpush.bf16.msra.mxu0 %v2451_v35 }
 0x5db   : > { %v1597_v26 = vpop.xlane.xlu2 %1596 }
 0x5dc   : > { %4690 = vrcp.f32 %v1597_v26 }
 0x5dd   : > { %4692 = vrcp.f32 %v1237_v33 }
 0x5e0   : > { %v1235_v34 = vpop.xlane.xlu0 %1234 }
 0x5e1   : > { %4694 = vrcp.f32 %v1235_v34  ;;  %v1555_v34 = vsub.f32 %v5953_v21, %v6067_v0  ;;  %v2257_v0 = vmul.f32 0.35355338, %v6075_v39 }
 0x5e2   : > { %v4691_v63 = vpop.eup %4690  ;;  %4696 = vrcp.f32 %v6073_v22 }
 0x5e3   : > { %v1642_v13 = vmul.f32 %v4691_v63, %v6035_v51  ;;  %v4693_v46 = vpop.eup %4692  ;;  %4698 = vrcp.f32 %v6071_v4 }
 0x5e4   : > { %v1269_v2 = vmul.f32 %v4693_v46, %v6026_v11 }
 0x5e5   : > { %v1657_v53 = vpack.c.bf16 %v1643_v18, %v1642_v13 }
 0x5e7   : > { %v4695_v7 = vpop.eup %4694  ;;  %1701 = vmatmul.bf16.gmra.mxu0 %v1657_v53 }
 0x5e8   : > { %v1268_v10 = vmul.f32 %v4695_v7, %v6043_v15  ;;  %v4697_v61 = vpop.eup %4696  ;;  %v6146_v15 = vpop.f32.mrf.mxu2 }
 0x5e9   : > { %v4699_v51 = vpop.eup %4698  ;;  %v1645_v36 = vmul.f32 %v4697_v61, %v5973_v30  ;;  %7669 = vst [vmem:[#allocation8_spill] sm:$0xff] %v6146_v15  ;;  %v6193_v61 = vsel %vm961_vm6, %v2257_v0, -1e+30 }
 0x5ea   : > { %v1277_v52 = vpack.c.bf16 %v1269_v2, %v1268_v10  ;;  %v1644_v44 = vmul.f32 %v4699_v51, %v5962_v38 }
 0x5ec   : > { %1345 = vmatmul.bf16.gmra.mxu2 %v1277_v52  ;;  %v1658_v22 = vpack.c.bf16 %v1645_v36, %v1644_v44 }
 0x5f0   : > { %v6150_v11 = vpop.f32.mrf.mxu2 }
 0x5f3   : > { %v2138_v47 = vpop.permute.xlu0 %2137 }
 0x5f4   : > { %4326 = vmatmul.msk.bf16.gmra.mxu3 %vm994_vm5, %v2138_v47 }
 0x5f7   : > { %1706 = vmatmul.bf16.gmra.mxu0 %v1658_v22 }
 0x5f8   : > { %v6154_v4 = vpop.f32.mrf.mxu2 }
 0x5f9   : > { %7670 = vst [vmem:[#allocation9_spill] sm:$0xff] %v6154_v4 }
 0x5fc   : > { %4311 = vmatmul.msk.bf16.vlgmr.msrb.gmra.mxu2 %vm994_vm5, %v5573_v1  ;;  %v1539_v1 = vpop.xlane.xlu2 %1538 }
 0x600   : > { %v6156_v30 = vpop.f32.mrf.mxu2 }
 0x601   : > { %7671 = vst [vmem:[#allocation10_spill] sm:$0xff] %v6156_v30 }
 0x604   : > { %v1541_v13 = vpop.xlane.xlu2 %1540 }
 0x605   : > { %v1558_v21 = vsub.f32 %v6060_v9, %v1541_v13  ;;  %v1557_v9 = vsub.f32 %v6050_v49, %v1539_v1 }
 0x607   : > { %v1588_v10 = vmul.f32 1.442695, %v1558_v21  ;;  %v1586_v39 = vmul.f32 1.442695, %v1557_v9 }
 0x608   : > { %v6161_v33 = vpop.f32.mrf.mxu2 }
 0x609   : > { %7672 = vst [vmem:[#allocation11_spill] sm:$0xff] %v6161_v33 }
 0x60c   : > { %4312 = vmatmul.msk.bf16.gmra.mxu2 %vm994_vm5, %v5578_v40 }
 0x61c   : > { %4313 = vmatmul.msk.bf16.gmra.mxu2 %vm994_vm5, %v5667_v57  ;;  %v2252_v57 = vmul.f32 0.35355338, %v5966_v19 }
 0x61e   : > { %v1531_v38 = vpop.xlane.xlu0 %1530  ;;  %v6179_v46 = vsel %vm961_vm6, %v2252_v57, -1e+30 }
 0x61f   : > { %v1553_v5 = vsub.f32 %v6095_v62, %v1531_v38  ;;  %v6173_v62 = vpop.f32.mrf.mxu2 }
 0x620   : > { %7673 = vst [vmem:[#allocation12_spill] sm:$0xff] %v6173_v62 }
 0x621   : > { %v1578_v14 = vmul.f32 1.442695, %v1553_v5 }
 0x623   : > { %4700 = vpow2.f32 %v1578_v14 }
 0x626   : > { %v1537_v35 = vpop.xlane.xlu0 %1536 }
 0x627   : > { %v1556_v26 = vsub.f32 %v6104_v3, %v1537_v35  ;;  %v1582_v3 = vmul.f32 1.442695, %v1555_v34 }
 0x629   : > { %v6164_v41 = vpop.eup %4700  ;;  %v1584_v40 = vmul.f32 1.442695, %v1556_v26 }
 0x62a   : > { %1610 = vadd.xlane.f32.xlu2 %v6164_v41 }
 0x62b   : > { %4702 = vpow2.f32 %v1584_v40 }
 0x62c   : > { %4314 = vmatmul.msk.bf16.gmra.mxu2 %vm994_vm5, %v5697_v60  ;;  %4704 = vrcp.f32 %v6080_v17  ;;  %v6185_v17 = vpop.f32.mrf.mxu2 }
 0x62d   : > { %7674 = vst [vmem:[#allocation13_spill] sm:$0xff] %v6185_v17 }
 0x62e   : > { %v1607_v63 = vpop.xlane.xlu0 %1606 }
 0x62f   : > { %4706 = vrcp.f32 %v1607_v63 }
 0x630   : > { %4708 = vpow2.f32 %v1582_v3 }
 0x631   : > { %v6175_v18 = vpop.eup %4702  ;;  %4710 = vpow2.f32 %v1588_v10 }
 0x632   : > { %2284 = vmax.xlane.f32.xlu2 %v6179_v46  ;;  %1616 = vadd.xlane.f32.xlu0 %v6175_v18  ;;  %v4705_v60 = vpop.eup %4704  ;;  %4712 = vpow2.f32 %v1586_v39 }
 0x633   : > { %v1646_v53 = vmul.f32 %v4705_v60, %v5979_v32  ;;  %v2254_v32 = vmul.f32 0.35355338, %v5991_v54 }
 0x635   : > { %v4707_v19 = vpop.eup %4706  ;;  %v6207_v36 = vsel %vm961_vm6, %v2254_v32, -1e+30 }
 0x636   : > { %v1647_v7 = vmul.f32 %v4707_v19, %v6112_v56  ;;  %v6189_v52 = vpop.eup %4708  ;;  %v6201_v56 = vpop.f32.mrf.mxu2 }
 0x637   : > { %7675 = vst [vmem:[#allocation14_spill] sm:$0xff] %v6201_v56  ;;  %v6203_v51 = vpop.eup %4710 }
 0x638   : > { %v1659_v2 = vpack.c.bf16 %v1647_v7, %v1646_v53  ;;  %v6211_v49 = vpop.eup %4712 }
 0x63a   : > { %1614 = vadd.xlane.f32.xlu2 %v6189_v52  ;;  %2294 = vmax.xlane.f32.xlu0 %v6193_v61 }
 0x63b   : > { %1711 = vmatmul.bf16.gmra.mxu0 %v1659_v2 }
 0x63c   : > { %4315 = vmatmul.msk.bf16.gmra.mxu2 %vm994_vm5, %v5679_v27 }
 0x63e   : > { %v6213_v47 = vpop.f32.mrf.mxu2 }
 0x63f   : > { %7676 = vst [vmem:[#allocation15_spill] sm:$0xff] %v6213_v47 }
 0x642   : > { %2288 = vmax.xlane.f32.xlu2 %v6207_v36  ;;  %1620 = vadd.xlane.f32.xlu0 %v6203_v51 }
 0x646   : > { %v6218_v27 = vpop.f32.mrf.mxu2 }
 0x647   : > { %7677 = vst [vmem:[#allocation16_spill] sm:$0xff] %v6218_v27 }
 0x64a   : > { %1618 = vadd.xlane.f32.xlu2 %v6211_v49 }
 0x64c   : > { %4316 = vmatmul.msk.bf16.gmra.mxu2 %vm994_vm5, %v5706_v50 }
 0x64e   : > { %v6224_v54 = vpop.f32.mrf.mxu2 }
 0x64f   : > { %7678 = vst [vmem:[#allocation17_spill] sm:$0xff] %v6224_v54 }
 0x656   : > { %2448 = vrot.lane.b32.xlu0 %v5440_v37, %s4961_s20  ;;  %v6230_v44 = vpop.f32.mrf.mxu2 }
 0x657   : > { %7679 = vst [vmem:[#allocation18_spill] sm:$0xff] %v6230_v44 }
 0x65c   : > { %4317 = vmatmul.msk.bf16.gmra.mxu2 %vm994_vm5, %v5605_v8 }
 0x65e   : > { %2442 = vrot.lane.b32.xlu0 %v5432_v31, %s4961_s20  ;;  %v7682_v31 = vld [vmem:[#allocation5_spill] sm:$0xff] }
 0x65f   : > { %v1559_v22 = vsub.f32 %v7682_v31, %v6090_v29 }
 0x662   : > { %2064 = vrot.lane.b32.xlu2 %v5498_v45, %s4962_s21  ;;  %v1590_v45 = vmul.f32 1.442695, %v1559_v22 }
 0x664   : > { %4714 = vpow2.f32 %v1590_v45 }
 0x66a   : > { %2062 = vrot.lane.b32.xlu2 %v5440_v37, %s4962_s21  ;;  %v2317_v37 = vsub.f32 %v6003_v42, %v6106_v24  ;;  %v6248_v5 = vpop.eup %4714  ;;  %v1609_v42 = vpop.xlane.xlu0 %1608 }
 0x66c   : > { %4318 = vmatmul.msk.bf16.gmra.mxu2 %vm994_vm5, %v6130_v12  ;;  %v2334_v12 = vmul.f32 1.442695, %v2317_v37 }
 0x66e   : > { %4716 = vpow2.f32 %v2334_v12 }
 0x66f   : > { %v6236_v50 = vpop.f32.mrf.mxu2  ;;  %4718 = vrcp.f32 %v1609_v42 }
 0x670   : > { %7680 = vst [vmem:[#allocation19_spill] sm:$0xff] %v6236_v50 }
 0x672   : > { %2060 = vrot.lane.b32.xlu2 %v5419_v6, %s4962_s21  ;;  %v2229_v6 = vpop.f32.mrf.mxu3  ;;  %v1613_v53 = vpop.xlane.xlu0 %1612 }
 0x673   : > { %v2259_v57 = vmul.f32 0.35355338, %v2229_v6 }
 0x674   : > { %v6251_v1 = vpop.eup %4716 }
 0x675   : > { %v4719_v60 = vpop.eup %4718  ;;  %v6268_v21 = vsel %vm961_vm6, %v2259_v57, -1e+30 }
 0x676   : > { %v1648_v10 = vmul.f32 %v4719_v60, %v6120_v28 }
 0x677   : > { %v6240_v8 = vpop.f32.mrf.mxu2 }
 0x678   : > { %7681 = vst [vmem:[#allocation20_spill] sm:$0xff] %v6240_v8 }
 0x67a   : > { %2058 = vrot.lane.b32.xlu2 %v5407_v23, %s4962_s21  ;;  %v2232_v35 = vpop.f32.mrf.mxu3 }
 0x67b   : > { %v2260_v24 = vmul.f32 0.35355338, %v2232_v35  ;;  %v2447_v35 = vpop.permute.xlu1 %2446 }
 0x67d   : > { %v6263_v3 = vsel %vm961_vm6, %v2260_v24, -1e+30 }
 0x67f   : > { %v1826_v38 = vpop.f32.mrf.mxu2 }
 0x682   : > { %v2234_v13 = vpop.f32.mrf.mxu3 }
 0x683   : > { %v2261_v19 = vmul.f32 0.35355338, %v2234_v13 }
 0x685   : > { %v6276_v39 = vsel %vm961_vm6, %v2261_v19, -1e+30 }
 0x687   : > { %v1828_v14 = vpop.f32.mrf.mxu2 }
 0x688   : > { %1622 = vadd.xlane.f32.xlu0 %v6248_v5  ;;  %v1867_v23 = vmul.f32 0.35355338, %v1828_v14 }
 0x68a   : > { %v6256_v40 = vsel %vm961_vm6, %v1867_v23, -1e+30  ;;  %v1866_v23 = vmul.f32 0.35355338, %v1826_v38  ;;  %v2445_v38 = vpop.permute.xlu1 %2444 }
 0x68f   : > { %v1831_v29 = vpop.f32.mrf.mxu2 }
 0x690   : > { %2366 = vadd.xlane.f32.xlu0 %v6251_v1 }
 0x697   : > { %v1833_v26 = vpop.f32.mrf.mxu2 }
 0x698   : > { %1900 = vmax.xlane.f32.xlu0 %v6256_v40  ;;  %v1869_v45 = vmul.f32 0.35355338, %v1833_v26 }
 0x69d   : > { %v1611_v34 = vpop.xlane.xlu2 %1610 }
 0x69e   : > { %4720 = vrcp.f32 %v1611_v34 }
 0x69f   : > { %v6259_v63 = vpop.f32.mrf.mxu2 }
 0x6a0   : > { %2300 = vmax.xlane.f32.xlu0 %v6263_v3 }
 0x6a3   : > { %2298 = vmax.xlane.f32.xlu2 %v6268_v21 }
 0x6a4   : > { %v4721_v0 = vpop.eup %4720 }
 0x6a5   : > { %v2285_v7 = vpop.xlane.xlu2 %2284  ;;  %v1649_v2 = vmul.f32 %v4721_v0, %v6164_v41  ;;  %v1617_v37 = vpop.xlane.xlu0 %1616  ;;  %v6283_v41 = vsel %vm961_vm6, %v1869_v45, -1e+30  ;;  %v6296_v0 = vsel %vm961_vm6, %v1866_v23, -1e+30 }
 0x6a6   : > { %v2316_v9 = vsub.f32 %v6179_v46, %v2285_v7  ;;  %v2057_v23 = vpop.permute.xlu1 %2056 }
 0x6a7   : > { %v1838_v32 = vpop.f32.mrf.mxu2  ;;  %v1660_v31 = vpack.c.bf16 %v1649_v2, %v1648_v10 }
 0x6a8   : > { %v2332_v22 = vmul.f32 1.442695, %v2316_v9  ;;  %2302 = vmax.xlane.f32.xlu0 %v6276_v39  ;;  %v1871_v9 = vmul.f32 0.35355338, %v1838_v32 }
 0x6a9   : > { %1716 = vmatmul.bf16.gmra.mxu0 %v1660_v31 }
 0x6aa   : > { %4722 = vpow2.f32 %v2332_v22 }
 0x6ab   : > { %4724 = vrcp.f32 %v1613_v53 }
 0x6ad   : > { %v1615_v12 = vpop.xlane.xlu2 %1614  ;;  %v6291_v34 = vpop.xlane.xlu0 %2294 }
 0x6ae   : > { %4726 = vrcp.f32 %v1615_v12 }
 0x6af   : > { %v6279_v28 = vpop.f32.mrf.mxu2 }
 0x6b0   : > { %v6285_v46 = vpop.eup %4722  ;;  %1904 = vmax.xlane.f32.xlu0 %v6283_v41 }
 0x6b1   : > { %2364 = vadd.xlane.f32.xlu1 %v6285_v46  ;;  %v4725_v14 = vpop.eup %4724 }
 0x6b2   : > { %v1650_v42 = vmul.f32 %v4725_v14, %v6127_v55  ;;  %v1868_v55 = vmul.f32 0.35355338, %v1831_v29 }
 0x6b4   : > { %v4727_v6 = vpop.eup %4726  ;;  %v6307_v10 = vsel %vm961_vm6, %v1868_v55, -1e+30 }
 0x6b5   : > { %v2289_v26 = vpop.xlane.xlu2 %2288  ;;  %v1651_v24 = vmul.f32 %v4727_v6, %v6189_v52  ;;  %v1621_v7 = vpop.xlane.xlu0 %1620  ;;  %v6317_v6 = vsel %vm961_vm6, %v1871_v9, -1e+30 }
 0x6b6   : > { %v2318_v57 = vsub.f32 %v6207_v36, %v2289_v26 }
 0x6b7   : > { %v1843_v13 = vpop.f32.mrf.mxu2  ;;  %v1661_v60 = vpack.c.bf16 %v1651_v24, %v1650_v42  ;;  %v6328_v42 = vpop.xlane.xlu1 %2296  ;;  %v7684_v24 = vld [vmem:[#allocation4_spill] sm:$0xff] }
 0x6b8   : > { %v2336_v19 = vmul.f32 1.442695, %v2318_v57  ;;  %v1873_v32 = vmul.f32 0.35355338, %v1843_v13 }
 0x6b9   : > { %1898 = vmax.xlane.f32.xlu1 %v6296_v0  ;;  %1721 = vmatmul.bf16.gmra.mxu0 %v1661_v60 }
 0x6ba   : > { %4728 = vpow2.f32 %v2336_v19  ;;  %v6326_v26 = vsel %vm961_vm6, %v1873_v32, -1e+30 }
 0x6bb   : > { %2054 = vrot.lane.b32.xlu2 %v5413_v58, %s4962_s21  ;;  %4730 = vrcp.f32 %v1617_v37  ;;  %v7683_v58 = vld [vmem:[#allocation3_spill] sm:$0xff] }
 0x6bd   : > { %v1619_v52 = vpop.xlane.xlu2 %1618 }
 0x6be   : > { %4732 = vrcp.f32 %v1619_v52  ;;  %v6340_v52 = vpop.f32.mrf.mxu0 }
 0x6bf   : > { %v6301_v36 = vpop.f32.mrf.mxu2  ;;  %v2441_v19 = vpop.permute.xlu1 %2440  ;;  %4734 = vrcp.f32 %v1621_v7 }
 0x6c0   : > { %v6303_v53 = vpop.eup %4728 }
 0x6c1   : > { %1902 = vmax.xlane.f32.xlu1 %v6307_v10  ;;  %2368 = vadd.xlane.f32.xlu0 %v6303_v53  ;;  %v4731_v2 = vpop.eup %4730 }
 0x6c2   : > { %v1652_v22 = vmul.f32 %v4731_v2, %v6175_v18 }
 0x6c3   : > { %2052 = vrot.lane.b32.xlu2 %v7683_v58, %s4962_s21 }
 0x6c4   : > { %v4733_v29 = vpop.eup %4732 }
 0x6c5   : > { %v2065_v31 = vpop.permute.xlu2 %2064  ;;  %v1653_v45 = vmul.f32 %v4733_v29, %v6211_v49  ;;  %v1872_v29 = vmul.f32 0.35355338, %v6279_v28 }
 0x6c6   : > { %2074 = vmatpush.bf16.msrb.mxu1 %v2065_v31  ;;  %v6342_v2 = vpop.f32.mrf.mxu0 }
 0x6c7   : > { %v1848_v37 = vpop.f32.mrf.mxu2  ;;  %v1662_v12 = vpack.c.bf16 %v1653_v45, %v1652_v22  ;;  %v6351_v22 = vsel %vm961_vm6, %v1872_v29, -1e+30  ;;  %v1870_v45 = vmul.f32 0.35355338, %v6259_v63 }
 0x6c8   : > { %v2449_v14 = vpop.permute.xlu0 %2448 }
 0x6c9   : > { %1908 = vmax.xlane.f32.xlu0 %v6317_v6  ;;  %1726 = vmatmul.bf16.gmra.mxu0 %v1662_v12  ;;  %v1875_v12 = vmul.f32 0.35355338, %v1848_v37  ;;  %v6363_v7 = vsel %vm961_vm6, %v1870_v45, -1e+30  ;;  %v1874_v37 = vmul.f32 0.35355338, %v6301_v36 }
 0x6ca   : > { %2461 = vmatpush.bf16.msra.mxu0 %v2449_v14  ;;  %v4735_v14 = vpop.eup %4734 }
 0x6cb   : > { %2438 = vrot.lane.b32.xlu2 %v7683_v58, %s4961_s20  ;;  %v6359_v28 = vsel %vm961_vm6, %v1875_v12, -1e+30 }
 0x6cd   : > { %v2063_v18 = vpop.permute.xlu2 %2062 }
 0x6ce   : > { %2462 = vmatpush.bf16.msra.mxu0 %v2447_v35  ;;  %2075 = vmatpush.bf16.msrb.mxu1 %v2063_v18  ;;  %v6344_v58 = vpop.f32.mrf.mxu0 }
 0x6cf   : > { %v6322_v49 = vpop.f32.mrf.mxu2 }
 0x6d0   : > { %v2443_v57 = vpop.permute.xlu0 %2442 }
 0x6d1   : > { %1912 = vmax.xlane.f32.xlu0 %v6326_v26 }
 0x6d2   : > { %2463 = vmatpush.bf16.msra.mxu0 %v2445_v38 }
 0x6d3   : > { %2436 = vrot.lane.b32.xlu2 %v7684_v24, %s4961_s20 }
 0x6d5   : > { %v2061_v60 = vpop.permute.xlu2 %2060 }
 0x6d6   : > { %2464 = vmatpush.bf16.msra.mxu0 %v2443_v57  ;;  %2076 = vmatpush.bf16.msrb.mxu1 %v2061_v60  ;;  %v6347_v9 = vpop.f32.mrf.mxu0 }
 0x6d7   : > { %v1853_v35 = vpop.f32.mrf.mxu2 }
 0x6d8   : > { %v1877_v13 = vmul.f32 0.35355338, %v1853_v35  ;;  %v6372_v35 = vsel %vm961_vm6, %v1874_v37, -1e+30 }
 0x6da   : > { %2465 = vmatpush.bf16.msra.mxu0 %v2441_v19  ;;  %2050 = vrot.lane.b32.xlu1 %v7684_v24, %s4962_s21  ;;  %v6337_v55 = vsel %vm961_vm6, %v1877_v13, -1e+30  ;;  %v1654_v24 = vmul.f32 %v4735_v14, %v6203_v51 }
 0x6db   : > { %1920 = vmax.xlane.f32.xlu0 %v6337_v55 }
 0x6dd   : > { %v2059_v38 = vpop.permute.xlu2 %2058 }
 0x6de   : > { %2077 = vmatpush.bf16.msrb.mxu1 %v2059_v38  ;;  %v6355_v32 = vpop.f32.mrf.mxu0 }
 0x6e2   : > { %2078 = vmatpush.bf16.msrb.mxu1 %v2057_v23 }
 0x6e6   : > { %v6374_v13 = vpop.f32.mrf.mxu0 }
 0x6fb   : > { %v1623_v31 = vpop.xlane.xlu0 %1622 }
 0x6fc   : > { %4736 = vrcp.f32 %v1623_v31  ;;  %1910 = vmax.xlane.f32.xlu2 %v6351_v22  ;;  %v6380_v31 = vpop.f32.mrf.mxu0 }
 0x702   : > { %v4737_v23 = vpop.eup %4736 }
 0x703   : > { %v2367_v18 = vpop.xlane.xlu0 %2366  ;;  %v1655_v57 = vmul.f32 %v4737_v23, %v6248_v5  ;;  %v7685_v5 = vld [vmem:[#allocation6_spill] sm:$0xff] }
 0x704   : > { %1916 = vmax.xlane.f32.xlu2 %v6359_v28  ;;  %1906 = vmax.xlane.f32.xlu1 %v6363_v7  ;;  %v2319_v38 = vsub.f32 %v7685_v5, %v6118_v25  ;;  %v6391_v14 = vpop.f32.mrf.mxu0 }
 0x705   : > { %v1663_v63 = vpack.c.bf16 %v1655_v57, %v1654_v24  ;;  %v2237_v24 = vpop.f32.mrf.mxu3 }
 0x706   : > { %v2338_v29 = vmul.f32 1.442695, %v2319_v38  ;;  %v2262_v25 = vmul.f32 0.35355338, %v2237_v24 }
 0x707   : > { %1731 = vmatmul.bf16.gmra.mxu0 %v1663_v63 }
 0x70b   : > { %v1901_v60 = vpop.xlane.xlu0 %1900 }
 0x70c   : > { %v1931_v19 = vsub.f32 %v6256_v40, %v1901_v60  ;;  %1914 = vmax.xlane.f32.xlu1 %v6372_v35 }
 0x70e   : > { %v1948_v51 = vmul.f32 1.442695, %v1931_v19  ;;  %v6400_v19 = vsel %vm961_vm6, %v2262_v25, -1e+30 }
 0x710   : > { %4738 = vpow2.f32 %v1948_v51  ;;  %v1856_v51 = vpop.f32.mrf.mxu2 }
 0x711   : > { %4740 = vpow2.f32 %v2338_v29  ;;  %v1878_v5 = vmul.f32 0.35355338, %v1856_v51 }
 0x713   : > { %v6387_v12 = vpop.xlane.xlu0 %2300  ;;  %v6408_v8 = vsel %vm961_vm6, %v1878_v5, -1e+30 }
 0x716   : > { %v6382_v36 = vpop.eup %4738  ;;  %v6384_v45 = vpop.xlane.xlu2 %2298 }
 0x717   : > { %1980 = vadd.xlane.f32.xlu1 %v6382_v36  ;;  %v6389_v40 = vpop.eup %4740 }
 0x71b   : > { %v6394_v57 = vpop.xlane.xlu0 %2302 }
 0x71e   : > { %v2055_v23 = vpop.permute.xlu2 %2054 }
 0x71f   : > { %2079 = vmatpush.bf16.msrb.mxu1 %v2055_v23  ;;  %2370 = vadd.xlane.f32.xlu1 %v6389_v40 }
 0x723   : > { %v1905_v38 = vpop.xlane.xlu0 %1904 }
 0x724   : > { %v2365_v63 = vpop.xlane.xlu1 %2364 }
 0x725   : > { %4742 = vrcp.f32 %v2365_v63 }
 0x726   : > { %v2053_v37 = vpop.permute.xlu2 %2052  ;;  %v6396_v60 = vpop.f32.mrf.mxu0  ;;  %4744 = vrcp.f32 %v2367_v18 }
 0x727   : > { %2080 = vmatpush.bf16.msrb.mxu1 %v2053_v37  ;;  %2304 = vmax.xlane.f32.xlu1 %v6400_v19 }
 0x72b   : > { %v4743_v37 = vpop.eup %4742 }
 0x72c   : > { %v1899_v29 = vpop.xlane.xlu1 %1898  ;;  %v4745_v51 = vpop.eup %4744  ;;  %v2412_v63 = vmul.f32 %v4743_v37, %v6285_v46  ;;  %v1876_v46 = vmul.f32 0.35355338, %v6322_v49 }
 0x72d   : > { %v1930_v23 = vsub.f32 %v6296_v0, %v1899_v29  ;;  %v2239_v0 = vpop.f32.mrf.mxu3  ;;  %v2413_v44 = vmul.f32 %v4745_v51, %v6251_v1 }
 0x72e   : > { %v2439_v24 = vpop.permute.xlu2 %2438  ;;  %v6404_v50 = vpop.f32.mrf.mxu0  ;;  %v2263_v49 = vmul.f32 0.35355338, %v2239_v0 }
 0x72f   : > { %v1946_v25 = vmul.f32 1.442695, %v1930_v23  ;;  %2466 = vmatpush.bf16.msra.mxu0 %v2439_v24  ;;  %1922 = vmax.xlane.f32.xlu1 %v6408_v8  ;;  %v2428_v27 = vpack.c.bf16 %v2413_v44, %v2412_v63  ;;  %v6432_v44 = vsel %vm961_vm6, %v1876_v46, -1e+30 }
 0x731   : > { %4746 = vpow2.f32 %v1946_v25  ;;  %v1933_v25 = vsub.f32 %v6283_v41, %v1905_v38  ;;  %v7686_v41 = vld [vmem:[#allocation7_spill] sm:$0xff] }
 0x733   : > { %v1952_v37 = vmul.f32 1.442695, %v1933_v25 }
 0x734   : > { %v1903_v54 = vpop.xlane.xlu1 %1902  ;;  %v6412_v18 = vpop.xlane.xlu0 %2368 }
 0x735   : > { %v1932_v29 = vsub.f32 %v6307_v10, %v1903_v54  ;;  %v6428_v17 = vpop.f32.mrf.mxu3 }
 0x736   : > { %v2437_v47 = vpop.permute.xlu2 %2436  ;;  %v6416_v5 = vpop.f32.mrf.mxu0 }
 0x737   : > { %v6418_v23 = vpop.eup %4746  ;;  %v1950_v24 = vmul.f32 1.442695, %v1932_v29  ;;  %2467 = vmatpush.bf16.msra.mxu0 %v2437_v47  ;;  %v1858_v29 = vpop.f32.mrf.mxu2 }
 0x738   : > { %1978 = vadd.xlane.f32.xlu2 %v6418_v23 }
 0x739   : > { %4748 = vpow2.f32 %v1950_v24 }
 0x73a   : > { %2468 = vmatmul.bf16.vlgmr.msra.gmra.mxu0 %v2428_v27  ;;  %v2320_v27 = vsub.f32 %v7686_v41, %v6125_v20  ;;  %4750 = vpow2.f32 %v1952_v37  ;;  %v6448_v20 = vsel %vm961_vm6, %v2263_v49, -1e+30  ;;  %v1879_v49 = vmul.f32 0.35355338, %v1858_v29 }
 0x73c   : > { %v1909_v54 = vpop.xlane.xlu0 %1908  ;;  %v2340_v38 = vmul.f32 1.442695, %v2320_v27 }
 0x73d   : > { %v1935_v1 = vsub.f32 %v6317_v6, %v1909_v54  ;;  %v2321_v6 = vsub.f32 %v6193_v61, %v6291_v34  ;;  %v2244_v61 = vpop.f32.mrf.mxu3  ;;  %v2322_v34 = vsub.f32 %v6087_v59, %v6328_v42  ;;  %v2323_v42 = vsub.f32 %v6268_v21, %v6384_v45 }
 0x73e   : > { %v6424_v10 = vpop.f32.mrf.mxu0  ;;  %v2265_v0 = vmul.f32 0.35355338, %v2244_v61 }
 0x73f   : > { %v6426_v51 = vpop.eup %4748  ;;  %v1956_v47 = vmul.f32 1.442695, %v1935_v1  ;;  %v2342_v63 = vmul.f32 1.442695, %v2321_v6  ;;  %v2344_v1 = vmul.f32 1.442695, %v2322_v34  ;;  %v6461_v27 = vpop.f32.mrf.mxu2 }
 0x740   : > { %1918 = vmax.xlane.f32.xlu2 %v6432_v44  ;;  %1982 = vadd.xlane.f32.xlu0 %v6426_v51  ;;  %v6440_v24 = vpop.eup %4750  ;;  %v6469_v59 = vsel %vm961_vm6, %v2265_v0, -1e+30 }
 0x741   : > { %4752 = vpow2.f32 %v1956_v47 }
 0x742   : > { %4754 = vpow2.f32 %v2340_v38  ;;  %v2346_v38 = vmul.f32 1.442695, %v2323_v42 }
 0x743   : > { %4756 = vpow2.f32 %v2342_v63  ;;  %v6476_v63 = vsel %vm961_vm6, %v1879_v49, -1e+30 }
 0x744   : > { %4758 = vpow2.f32 %v2344_v1 }
 0x745   : > { %4760 = vpow2.f32 %v2346_v38  ;;  %v2247_v56 = vpop.f32.mrf.mxu3 }
 0x746   : > { %v6442_v25 = vpop.f32.mrf.mxu0 }
 0x747   : > { %v6444_v46 = vpop.eup %4752  ;;  %v1863_v34 = vpop.f32.mrf.mxu2 }
 0x748   : > { %2306 = vmax.xlane.f32.xlu2 %v6448_v20  ;;  %1984 = vadd.xlane.f32.xlu0 %v6440_v24  ;;  %v6455_v54 = vpop.eup %4754  ;;  %v1881_v0 = vmul.f32 0.35355338, %v1863_v34 }
 0x749   : > { %1988 = vadd.xlane.f32.xlu1 %v6444_v46  ;;  %v6459_v41 = vpop.eup %4756 }
 0x74a   : > { %v6478_v61 = vpop.eup %4758  ;;  %v6487_v21 = vsel %vm961_vm6, %v1881_v0, -1e+30  ;;  %v2266_v0 = vmul.f32 0.35355338, %v2247_v56  ;;  %v2264_v56 = vmul.f32 0.35355338, %v6428_v17 }
 0x74c   : > { %v2051_v37 = vpop.permute.xlu1 %2050 }
 0x74d   : > { %2081 = vmatpush.bf16.msrb.mxu1 %v2051_v37  ;;  %v6482_v37 = vpop.eup %4760 }
 0x74e   : > { %v6457_v47 = vpop.f32.mrf.mxu0 }
 0x750   : > { %2372 = vadd.xlane.f32.xlu2 %v6455_v54  ;;  %2374 = vadd.xlane.f32.xlu0 %v6459_v41 }
 0x751   : > { %2310 = vmax.xlane.f32.xlu1 %v6469_v59 }
 0x758   : > { %1924 = vmax.xlane.f32.xlu2 %v6476_v63 }
 0x759   : > { %2376 = vadd.xlane.f32.xlu1 %v6478_v61 }
 0x760   : > { %2378 = vadd.xlane.f32.xlu2 %v6482_v37 }
 0x761   : > { %1928 = vmax.xlane.f32.xlu1 %v6487_v21 }
 0x76f   : > { %v1911_v45 = vpop.xlane.xlu2 %1910 }
 0x770   : > { %v1936_v29 = vsub.f32 %v6351_v22, %v1911_v45  ;;  %v1913_v45 = vpop.xlane.xlu0 %1912 }
 0x772   : > { %v1958_v1 = vmul.f32 1.442695, %v1936_v29 }
 0x774   : > { %4762 = vpow2.f32 %v1958_v1 }
 0x777   : > { %v1907_v42 = vpop.xlane.xlu1 %1906  ;;  %v1917_v38 = vpop.xlane.xlu2 %1916 }
 0x778   : > { %v1934_v49 = vsub.f32 %v6363_v7, %v1907_v42  ;;  %v1939_v33 = vsub.f32 %v6359_v28, %v1917_v38  ;;  %v6501_v7 = vsel %vm961_vm6, %v2266_v0, -1e+30  ;;  %v1937_v28 = vsub.f32 %v6326_v26, %v1913_v45 }
 0x779   : > { %v6517_v38 = vsel %vm961_vm6, %v2264_v56, -1e+30 }
 0x77a   : > { %v6492_v34 = vpop.eup %4762  ;;  %v1954_v6 = vmul.f32 1.442695, %v1934_v49  ;;  %v1964_v62 = vmul.f32 1.442695, %v1939_v33 }
 0x77b   : > { %1990 = vadd.xlane.f32.xlu2 %v6492_v34 }
 0x77c   : > { %4764 = vpow2.f32 %v1954_v6 }
 0x77d   : > { %4766 = vpow2.f32 %v1964_v62 }
 0x77f   : > { %v1915_v4 = vpop.xlane.xlu1 %1914 }
 0x780   : > { %v1938_v22 = vsub.f32 %v6372_v35, %v1915_v4  ;;  %v2325_v4 = vsub.f32 %v6276_v39, %v6394_v57  ;;  %v1960_v35 = vmul.f32 1.442695, %v1937_v28 }
 0x782   : > { %v6497_v29 = vpop.eup %4764  ;;  %v1962_v1 = vmul.f32 1.442695, %v1938_v22  ;;  %v2350_v42 = vmul.f32 1.442695, %v2325_v4  ;;  %v1880_v22 = vmul.f32 0.35355338, %v6461_v27 }
 0x783   : > { %2312 = vmax.xlane.f32.xlu2 %v6501_v7  ;;  %1986 = vadd.xlane.f32.xlu0 %v6497_v29  ;;  %v6511_v6 = vpop.eup %4766 }
 0x784   : > { %4768 = vpow2.f32 %v1962_v1  ;;  %v6506_v33 = vpop.f32.mrf.mxu0  ;;  %v6536_v4 = vsel %vm961_vm6, %v1880_v22, -1e+30  ;;  %v1921_v22 = vpop.xlane.xlu0 %1920 }
 0x785   : > { %4770 = vpow2.f32 %v1960_v35  ;;  %v2249_v35 = vpop.f32.mrf.mxu3 }
 0x786   : > { %4772 = vpow2.f32 %v2350_v42  ;;  %v2267_v30 = vmul.f32 0.35355338, %v2249_v35 }
 0x787   : > { %4774 = vrcp.f32 %v6412_v18 }
 0x78a   : > { %v6513_v49 = vpop.eup %4768  ;;  %v1981_v62 = vpop.xlane.xlu1 %1980 }
 0x78b   : > { %1996 = vadd.xlane.f32.xlu2 %v6511_v6  ;;  %2308 = vmax.xlane.f32.xlu0 %v6517_v38  ;;  %v6527_v26 = vpop.eup %4770 }
 0x78c   : > { %1994 = vadd.xlane.f32.xlu1 %v6513_v49  ;;  %v6522_v39 = vpop.f32.mrf.mxu0  ;;  %v6529_v0 = vpop.eup %4772 }
 0x78d   : > { %v4775_v45 = vpop.eup %4774 }
 0x78e   : > { %v2414_v18 = vmul.f32 %v4775_v45, %v6303_v53  ;;  %v6546_v53 = vsel %vm961_vm6, %v2267_v30, -1e+30 }
 0x792   : > { %v2371_v57 = vpop.xlane.xlu1 %2370 }
 0x793   : > { %4776 = vrcp.f32 %v2371_v57  ;;  %1992 = vadd.xlane.f32.xlu0 %v6527_v26  ;;  %v2324_v57 = vsub.f32 %v6263_v3, %v6387_v12 }
 0x794   : > { %2382 = vadd.xlane.f32.xlu1 %v6529_v0 }
 0x795   : > { %v2348_v15 = vmul.f32 1.442695, %v2324_v57 }
 0x799   : > { %v4777_v1 = vpop.eup %4776 }
 0x79a   : > { %v2305_v28 = vpop.xlane.xlu1 %2304  ;;  %v2415_v56 = vmul.f32 %v4777_v1, %v6389_v40  ;;  %v1941_v40 = vsub.f32 %v6337_v55, %v1921_v22 }
 0x79b   : > { %v2326_v42 = vsub.f32 %v6400_v19, %v2305_v28  ;;  %1926 = vmax.xlane.f32.xlu0 %v6536_v4 }
 0x79c   : > { %v2429_v27 = vpack.c.bf16 %v2415_v56, %v2414_v18  ;;  %v1968_v3 = vmul.f32 1.442695, %v1941_v40 }
 0x79d   : > { %v2352_v17 = vmul.f32 1.442695, %v2326_v42 }
 0x79e   : > { %2473 = vmatmul.bf16.gmra.mxu0 %v2429_v27 }
 0x79f   : > { %4778 = vpow2.f32 %v2352_v17 }
 0x7a0   : > { %4780 = vpow2.f32 %v2348_v15 }
 0x7a1   : > { %4782 = vrcp.f32 %v1981_v62 }
 0x7a2   : > { %v1923_v12 = vpop.xlane.xlu1 %1922  ;;  %4784 = vpow2.f32 %v1968_v3 }
 0x7a3   : > { %2314 = vmax.xlane.f32.xlu0 %v6546_v53  ;;  %v1942_v43 = vsub.f32 %v6408_v8, %v1923_v12 }
 0x7a5   : > { %v6550_v19 = vpop.eup %4778  ;;  %v1970_v55 = vmul.f32 1.442695, %v1942_v43 }
 0x7a6   : > { %2384 = vadd.xlane.f32.xlu1 %v6550_v19  ;;  %v6553_v45 = vpop.eup %4780 }
 0x7a7   : > { %v4783_v30 = vpop.eup %4782 }
 0x7a8   : > { %v6557_v1 = vpop.eup %4784  ;;  %v2027_v62 = vmul.f32 %v4783_v30, %v6382_v36 }
 0x7ab   : > { %v1979_v17 = vpop.xlane.xlu2 %1978  ;;  %2380 = vadd.xlane.f32.xlu0 %v6553_v45 }
 0x7ac   : > { %4786 = vrcp.f32 %v1979_v17 }
 0x7ad   : > { %4788 = vpow2.f32 %v1970_v55 }
 0x7b2   : > { %v4787_v15 = vpop.eup %4786 }
 0x7b3   : > { %v1919_v28 = vpop.xlane.xlu2 %1918  ;;  %2000 = vadd.xlane.f32.xlu0 %v6557_v1  ;;  %v1983_v18 = vpop.xlane.xlu0 %1982  ;;  %v2026_v56 = vmul.f32 %v4787_v15, %v6418_v23 }
 0x7b4   : > { %v1940_v35 = vsub.f32 %v6432_v44, %v1919_v28  ;;  %v6563_v8 = vpop.eup %4788 }
 0x7b5   : > { %v2042_v42 = vpack.c.bf16 %v2027_v62, %v2026_v56 }
 0x7b6   : > { %v1966_v57 = vmul.f32 1.442695, %v1940_v35 }
 0x7b7   : > { %2082 = vmatmul.bf16.vlgmr.msrb.gmra.mxu1 %v2042_v42 }
 0x7b8   : > { %4790 = vpow2.f32 %v1966_v57 }
 0x7b9   : > { %4792 = vrcp.f32 %v1983_v18 }
 0x7bb   : > { %v2307_v27 = vpop.xlane.xlu2 %2306  ;;  %2002 = vadd.xlane.f32.xlu0 %v6563_v8  ;;  %v1985_v22 = vpop.xlane.xlu0 %1984 }
 0x7bc   : > { %v2327_v40 = vsub.f32 %v6448_v20, %v2307_v27  ;;  %v1989_v3 = vpop.xlane.xlu1 %1988  ;;  %4794 = vrcp.f32 %v1985_v22 }
 0x7be   : > { %v6567_v23 = vpop.eup %4790  ;;  %v2354_v36 = vmul.f32 1.442695, %v2327_v40 }
 0x7bf   : > { %1998 = vadd.xlane.f32.xlu2 %v6567_v23  ;;  %v4793_v44 = vpop.eup %4792 }
 0x7c0   : > { %4796 = vpow2.f32 %v2354_v36  ;;  %v2028_v30 = vmul.f32 %v4793_v44, %v6426_v51 }
 0x7c2   : > { %v4795_v12 = vpop.eup %4794 }
 0x7c3   : > { %v2373_v17 = vpop.xlane.xlu2 %2372  ;;  %v2375_v43 = vpop.xlane.xlu0 %2374  ;;  %v2029_v55 = vmul.f32 %v4795_v12, %v6440_v24 }
 0x7c4   : > { %4798 = vrcp.f32 %v2373_v17  ;;  %v2311_v15 = vpop.xlane.xlu1 %2310 }
 0x7c5   : > { %v2329_v20 = vsub.f32 %v6469_v59, %v2311_v15  ;;  %4800 = vrcp.f32 %v2375_v43  ;;  %v2043_v28 = vpack.c.bf16 %v2029_v55, %v2028_v30 }
 0x7c6   : > { %v6573_v18 = vpop.eup %4796 }
 0x7c7   : > { %v2358_v56 = vmul.f32 1.442695, %v2329_v20  ;;  %2386 = vadd.xlane.f32.xlu2 %v6573_v18  ;;  %2087 = vmatmul.bf16.gmra.mxu1 %v2043_v28 }
 0x7c9   : > { %4802 = vpow2.f32 %v2358_v56 }
 0x7ca   : > { %v4799_v62 = vpop.eup %4798 }
 0x7cb   : > { %v4801_v35 = vpop.eup %4800  ;;  %v1925_v42 = vpop.xlane.xlu2 %1924  ;;  %v2416_v51 = vmul.f32 %v4799_v62, %v6455_v54 }
 0x7cc   : > { %v1943_v24 = vsub.f32 %v6476_v63, %v1925_v42  ;;  %v2417_v57 = vmul.f32 %v4801_v35, %v6459_v41  ;;  %v2377_v40 = vpop.xlane.xlu1 %2376 }
 0x7ce   : > { %v1972_v27 = vmul.f32 1.442695, %v1943_v24  ;;  %v2430_v59 = vpack.c.bf16 %v2417_v57, %v2416_v51 }
 0x7cf   : > { %v6579_v22 = vpop.eup %4802 }
 0x7d0   : > { %4804 = vpow2.f32 %v1972_v27  ;;  %2390 = vadd.xlane.f32.xlu0 %v6579_v22  ;;  %2478 = vmatmul.bf16.gmra.mxu0 %v2430_v59 }
 0x7d1   : > { %4806 = vrcp.f32 %v2377_v40 }
 0x7d3   : > { %v2379_v36 = vpop.xlane.xlu2 %2378 }
 0x7d4   : > { %4808 = vrcp.f32 %v2379_v36  ;;  %v1929_v42 = vpop.xlane.xlu1 %1928 }
 0x7d5   : > { %4810 = vrcp.f32 %v1989_v3 }
 0x7d6   : > { %v6582_v44 = vpop.eup %4804 }
 0x7d7   : > { %2004 = vadd.xlane.f32.xlu1 %v6582_v44  ;;  %v4807_v54 = vpop.eup %4806 }
 0x7d8   : > { %v2418_v41 = vmul.f32 %v4807_v54, %v6478_v61 }
 0x7da   : > { %v4809_v63 = vpop.eup %4808 }
 0x7db   : > { %v2419_v12 = vmul.f32 %v4809_v63, %v6482_v37  ;;  %v4811_v28 = vpop.eup %4810 }
 0x7dc   : > { %v2031_v61 = vmul.f32 %v4811_v28, %v6444_v46 }
 0x7dd   : > { %v2431_v17 = vpack.c.bf16 %v2419_v12, %v2418_v41 }
 0x7e0   : > { %2483 = vmatmul.bf16.gmra.mxu0 %v2431_v17 }
 0x7ee   : > { %v1991_v43 = vpop.xlane.xlu2 %1990 }
 0x7f6   : > { %v2313_v30 = vpop.xlane.xlu2 %2312  ;;  %v1987_v55 = vpop.xlane.xlu0 %1986 }
 0x7f7   : > { %v2330_v15 = vsub.f32 %v6501_v7, %v2313_v30  ;;  %4812 = vrcp.f32 %v1987_v55  ;;  %v1945_v7 = vsub.f32 %v6487_v21, %v1929_v42 }
 0x7f9   : > { %v2360_v20 = vmul.f32 1.442695, %v2330_v15  ;;  %v1976_v27 = vmul.f32 1.442695, %v1945_v7 }
 0x7fb   : > { %4814 = vpow2.f32 %v2360_v20 }
 0x7fd   : > { %v4813_v56 = vpop.eup %4812 }
 0x7fe   : > { %v2309_v62 = vpop.xlane.xlu0 %2308  ;;  %v2030_v35 = vmul.f32 %v4813_v56, %v6497_v29  ;;  %v1997_v59 = vpop.xlane.xlu2 %1996 }
 0x7ff   : > { %v2328_v37 = vsub.f32 %v6517_v38, %v2309_v62  ;;  %v1995_v63 = vpop.xlane.xlu1 %1994 }
 0x800   : > { %v2044_v51 = vpack.c.bf16 %v2031_v61, %v2030_v35 }
 0x801   : > { %v6591_v24 = vpop.eup %4814  ;;  %v2356_v3 = vmul.f32 1.442695, %v2328_v37 }
 0x802   : > { %2392 = vadd.xlane.f32.xlu0 %v6591_v24  ;;  %2092 = vmatmul.bf16.gmra.mxu1 %v2044_v51 }
 0x803   : > { %4816 = vpow2.f32 %v2356_v3 }
 0x804   : > { %4818 = vrcp.f32 %v1991_v43  ;;  %v4406_v43 = vld [vmem:[%s7639_s5 + $0x8] sm:$0xff] }
 0x805   : > { %2809 = vmatpush.bf16.msra.mxu2 %v4406_v43  ;;  %v4472_v43 = vpack.i.bf16 %v6374_v13, %v6355_v32 }
 0x806   : > { %v1993_v57 = vpop.xlane.xlu0 %1992 }
 0x807   : > { %4820 = vrcp.f32 %v1993_v57  ;;  %v2383_v20 = vpop.xlane.xlu1 %2382 }
 0x808   : > { %4822 = vpow2.f32 %v1976_v27 }
 0x809   : > { %v6595_v29 = vpop.eup %4816  ;;  %4824 = vrcp.f32 %v1997_v59 }
 0x80a   : > { %2388 = vadd.xlane.f32.xlu2 %v6595_v29  ;;  %v4819_v46 = vpop.eup %4818  ;;  %4826 = vrcp.f32 %v1995_v63 }
 0x80b   : > { %v2032_v36 = vmul.f32 %v4819_v46, %v6492_v34 }
 0x80d   : > { %v4821_v38 = vpop.eup %4820 }
 0x80e   : > { %v1927_v40 = vpop.xlane.xlu0 %1926  ;;  %v2033_v54 = vmul.f32 %v4821_v38, %v6527_v26  ;;  %v6601_v12 = vpop.eup %4822 }
 0x80f   : > { %v1944_v21 = vsub.f32 %v6536_v4, %v1927_v40  ;;  %v4825_v26 = vpop.eup %4824 }
 0x810   : > { %v2045_v41 = vpack.c.bf16 %v2033_v54, %v2032_v36  ;;  %v4827_v4 = vpop.eup %4826  ;;  %v2035_v56 = vmul.f32 %v4825_v26, %v6511_v6  ;;  %v2469_v6 = vpop.f32.mrf.mxu0 }
 0x811   : > { %v1974_v17 = vmul.f32 1.442695, %v1944_v21  ;;  %v2034_v28 = vmul.f32 %v4827_v4, %v6513_v49  ;;  %v4442_v49 = vpack.i.bf16 %v6342_v2, %v6340_v52 }
 0x812   : > { %2008 = vadd.xlane.f32.xlu2 %v6601_v12  ;;  %2097 = vmatmul.bf16.gmra.mxu1 %v2045_v41 }
 0x813   : > { %4828 = vpow2.f32 %v1974_v17  ;;  %v2046_v35 = vpack.c.bf16 %v2035_v56, %v2034_v28 }
 0x816   : > { %v2315_v34 = vpop.xlane.xlu0 %2314 }
 0x817   : > { %v2331_v30 = vsub.f32 %v6546_v53, %v2315_v34 }
 0x818   : > { %v2471_v27 = vpop.f32.mrf.mxu0 }
 0x819   : > { %v6608_v55 = vpop.eup %4828  ;;  %v2362_v15 = vmul.f32 1.442695, %v2331_v30  ;;  %v2385_v38 = vpop.xlane.xlu1 %2384  ;;  %v4452_v40 = vpack.i.bf16 %v2471_v27, %v2469_v6  ;;  %v4457_v30 = vpack.i.bf16 %v6347_v9, %v6344_v58  ;;  %v4502_v9 = vpack.i.bf16 %v6404_v50, %v6396_v60 }
 0x81a   : > { %2006 = vadd.xlane.f32.xlu1 %v6608_v55  ;;  %v4517_v50 = vpack.i.bf16 %v6424_v10, %v6416_v5 }
 0x81b   : > { %4830 = vpow2.f32 %v2362_v15 }
 0x81c   : > { %4832 = vrcp.f32 %v2383_v20  ;;  %v4487_v20 = vpack.i.bf16 %v6391_v14, %v6380_v31 }
 0x81e   : > { %v2381_v62 = vpop.xlane.xlu0 %2380 }
 0x81f   : > { %4834 = vrcp.f32 %v2381_v62 }
 0x820   : > { %v2474_v36 = vpop.f32.mrf.mxu0 }
 0x821   : > { %v6613_v61 = vpop.eup %4830 }
 0x822   : > { %2102 = vmatmul.bf16.gmra.mxu1 %v2046_v35  ;;  %2394 = vadd.xlane.f32.xlu1 %v6613_v61  ;;  %v4833_v53 = vpop.eup %4832 }
 0x823   : > { %v2421_v51 = vmul.f32 %v4833_v53, %v6529_v0 }
 0x825   : > { %v4835_v37 = vpop.eup %4834 }
 0x826   : > { %v2420_v42 = vmul.f32 %v4835_v37, %v6553_v45  ;;  %v2001_v7 = vpop.xlane.xlu0 %2000  ;;  %v4405_v37 = vld [vmem:[%s7639_s5] sm:$0xff] }
 0x827   : > { %4836 = vrcp.f32 %v2001_v7  ;;  %2810 = vmatpush.bf16.msra.mxu2 %v4405_v37 }
 0x828   : > { %v2432_v3 = vpack.c.bf16 %v2421_v51, %v2420_v42  ;;  %v2476_v4 = vpop.f32.mrf.mxu0  ;;  %v7688_v51 = vpack.i.bf16 %v6522_v39, %v6506_v33 }
 0x82a   : > { %4443 = vrot.lane.b32.xlu2 %v4442_v49, %s4963_s24  ;;  %2488 = vmatmul.bf16.gmra.mxu0 %v2432_v3 }
 0x82d   : > { %v4837_v59 = vpop.eup %4836 }
 0x82e   : > { %v2037_v2 = vmul.f32 %v4837_v59, %v6557_v1  ;;  %v2003_v15 = vpop.xlane.xlu0 %2002 }
 0x832   : > { %v1999_v57 = vpop.xlane.xlu2 %1998 }
 0x833   : > { %4838 = vrcp.f32 %v1999_v57 }
 0x834   : > { %v2083_v46 = vpop.f32.mrf.mxu1  ;;  %4840 = vrcp.f32 %v2385_v38 }
 0x839   : > { %v4839_v45 = vpop.eup %4838 }
 0x83a   : > { %v2387_v0 = vpop.xlane.xlu2 %2386  ;;  %v2036_v52 = vmul.f32 %v4839_v45, %v6567_v23  ;;  %v4841_v41 = vpop.eup %4840 }
 0x83b   : > { %4842 = vrcp.f32 %v2387_v0  ;;  %4453 = vrot.lane.b32.xlu1 %v4452_v40, %s4964_s28  ;;  %v2422_v23 = vmul.f32 %v4841_v41, %v6550_v19  ;;  %v4467_v19 = vpack.i.bf16 %v2476_v4, %v2474_v36 }
 0x83c   : > { %v2085_v54 = vpop.f32.mrf.mxu1  ;;  %v2047_v63 = vpack.c.bf16 %v2037_v2, %v2036_v52  ;;  %4844 = vrcp.f32 %v2003_v15 }
 0x83d   : > { %v4447_v21 = vpack.i.bf16 %v2085_v54, %v2083_v46 }
 0x83e   : > { %2107 = vmatmul.bf16.gmra.mxu1 %v2047_v63 }
 0x83f   : > { %4448 = vrot.lane.b32.xlu0 %v4447_v21, %s4965_s29 }
 0x841   : > { %v4843_v17 = vpop.eup %4842 }
 0x842   : > { %v2423_v1 = vmul.f32 %v4843_v17, %v6573_v18  ;;  %v4845_v56 = vpop.eup %4844 }
 0x843   : > { %4473 = vrot.lane.b32.xlu1 %v4472_v43, %s4963_s24  ;;  %v2038_v31 = vmul.f32 %v4845_v56, %v6563_v8  ;;  %v7687_v8 = vpack.i.bf16 %v6457_v47, %v6442_v25  ;;  %v2391_v49 = vpop.xlane.xlu0 %2390 }
 0x844   : > { %v2088_v34 = vpop.f32.mrf.mxu1  ;;  %v2433_v26 = vpack.c.bf16 %v2423_v1, %v2422_v23 }
 0x846   : > { %2493 = vmatmul.bf16.gmra.mxu0 %v2433_v26 }
 0x847   : > { %4458 = vrot.lane.b32.xlu0 %v4457_v30, %s4963_s24 }
 0x84a   : > { %v2005_v32 = vpop.xlane.xlu1 %2004 }
 0x84b   : > { %4846 = vrcp.f32 %v2005_v32  ;;  %4488 = vrot.lane.b32.xlu1 %v4487_v20, %s4963_s24 }
 0x84c   : > { %v2090_v13 = vpop.f32.mrf.mxu1  ;;  %4848 = vrcp.f32 %v2391_v49 }
 0x84d   : > { %v4462_v18 = vpack.i.bf16 %v2090_v13, %v2088_v34  ;;  %v2479_v28 = vpop.f32.mrf.mxu0 }
 0x84f   : > { %4468 = vrot.lane.b32.xlu0 %v4467_v19, %s4964_s28  ;;  %4463 = vrot.lane.b32.xlu2 %v4462_v18, %s4965_s29 }
 0x851   : > { %v4847_v58 = vpop.eup %4846 }
 0x852   : > { %v2039_v14 = vmul.f32 %v4847_v58, %v6582_v44  ;;  %v4849_v3 = vpop.eup %4848 }
 0x853   : > { %4503 = vrot.lane.b32.xlu1 %v4502_v9, %s4963_s24  ;;  %v2425_v25 = vmul.f32 %v4849_v3, %v6579_v22 }
 0x854   : > { %v2048_v62 = vpack.c.bf16 %v2039_v14, %v2038_v31 }
 0x855   : > { %v2481_v35 = vpop.f32.mrf.mxu0 }
 0x856   : > { %v4482_v53 = vpack.i.bf16 %v2481_v35, %v2479_v28  ;;  %2112 = vmatmul.bf16.gmra.mxu1 %v2048_v62 }
 0x858   : > { %4483 = vrot.lane.b32.xlu0 %v4482_v53, %s4964_s28  ;;  %v7689_v53 = vld [vmem:[#allocation8_spill] sm:$0xff] }
 0x85b   : > { %4518 = vrot.lane.b32.xlu1 %v4517_v50, %s4963_s24 }
 0x85d   : > { %v2484_v60 = vpop.f32.mrf.mxu0 }
 0x863   : > { %4533 = vrot.lane.b32.xlu1 %v7687_v8, %s4963_s24 }
 0x865   : > { %v2486_v44 = vpop.f32.mrf.mxu0 }
 0x866   : > { %v4497_v42 = vpack.i.bf16 %v2486_v44, %v2484_v60 }
 0x868   : > { %4498 = vrot.lane.b32.xlu0 %v4497_v42, %s4964_s28 }
 0x86b   : > { %4548 = vrot.lane.b32.xlu1 %v7688_v51, %s4963_s24 }
 0x875   : > { %v2393_v38 = vpop.xlane.xlu0 %2392 }
 0x87d   : > { %v2389_v5 = vpop.xlane.xlu2 %2388 }
 0x87e   : > { %4850 = vrcp.f32 %v2389_v5 }
 0x87f   : > { %v2093_v10 = vpop.f32.mrf.mxu1 }
 0x884   : > { %v4851_v6 = vpop.eup %4850 }
 0x885   : > { %v2424_v7 = vmul.f32 %v4851_v6, %v6595_v29  ;;  %v2009_v46 = vpop.xlane.xlu2 %2008 }
 0x886   : > { %4852 = vrcp.f32 %v2009_v46 }
 0x887   : > { %v2095_v47 = vpop.f32.mrf.mxu1  ;;  %v2434_v57 = vpack.c.bf16 %v2425_v25, %v2424_v7 }
 0x888   : > { %v4477_v27 = vpack.i.bf16 %v2095_v47, %v2093_v10 }
 0x889   : > { %2498 = vmatmul.bf16.gmra.mxu0 %v2434_v57 }
 0x88a   : > { %4478 = vrot.lane.b32.xlu2 %v4477_v27, %s4965_s29 }
 0x88c   : > { %v4853_v59 = vpop.eup %4852 }
 0x88d   : > { %v2007_v33 = vpop.xlane.xlu1 %2006  ;;  %v2041_v22 = vmul.f32 %v4853_v59, %v6601_v12  ;;  %v4444_v12 = vpop.permute.xlu2 %4443 }
 0x88e   : > { %4854 = vrcp.f32 %v2007_v33  ;;  %v4446_v1 = vunpack.i.h.bf16 %v4444_v12  ;;  %v4445_v34 = vunpack.i.l.bf16 %v4444_v12 }
 0x88f   : > { %v2098_v39 = vpop.f32.mrf.mxu1  ;;  %4856 = vrcp.f32 %v2393_v38 }
 0x890   : > { %v2701_v32 = vsel %vm994_vm5, %v6135_v16, %v4445_v34 }
 0x894   : > { %v4855_v45 = vpop.eup %4854 }
 0x895   : > { %v2395_v40 = vpop.xlane.xlu1 %2394  ;;  %v2040_v29 = vmul.f32 %v4855_v45, %v6608_v55  ;;  %v4857_v36 = vpop.eup %4856 }
 0x896   : > { %4858 = vrcp.f32 %v2395_v40  ;;  %v2426_v63 = vmul.f32 %v4857_v36, %v6591_v24 }
 0x897   : > { %v2100_v0 = vpop.f32.mrf.mxu1  ;;  %v2049_v52 = vpack.c.bf16 %v2041_v22, %v2040_v29  ;;  %v7690_v22 = vld [vmem:[#allocation10_spill] sm:$0xff] }
 0x898   : > { %v4492_v2 = vpack.i.bf16 %v2100_v0, %v2098_v39 }
 0x899   : > { %2117 = vmatmul.bf16.gmra.mxu1 %v2049_v52  ;;  %v7691_v52 = vld [vmem:[#allocation9_spill] sm:$0xff] }
 0x89a   : > { %4493 = vrot.lane.b32.xlu2 %v4492_v2, %s4965_s29 }
 0x89c   : > { %v4859_v54 = vpop.eup %4858 }
 0x89d   : > { %v2427_v21 = vmul.f32 %v4859_v54, %v6613_v61  ;;  %v2702_v61 = vsel %vm994_vm5, %v6141_v48, %v4446_v1 }
 0x89f   : > { %v2103_v41 = vpop.f32.mrf.mxu1  ;;  %v2435_v17 = vpack.c.bf16 %v2427_v21, %v2426_v63 }
 0x8a1   : > { %2503 = vmatmul.bf16.gmra.mxu0 %v2435_v17 }
 0x8a7   : > { %v2105_v43 = vpop.f32.mrf.mxu1  ;;  %v2489_v55 = vpop.f32.mrf.mxu0 }
 0x8a8   : > { %v4507_v23 = vpack.i.bf16 %v2105_v43, %v2103_v41 }
 0x8a9   : > { %v4464_v35 = vpop.permute.xlu2 %4463 }
 0x8aa   : > { %4508 = vrot.lane.b32.xlu2 %v4507_v23, %s4965_s29  ;;  %v4466_v50 = vunpack.i.h.bf16 %v4464_v35  ;;  %v4465_v60 = vunpack.i.l.bf16 %v4464_v35 }
 0x8ad   : > { %v4454_v30 = vpop.permute.xlu1 %4453 }
 0x8ae   : > { %v4456_v13 = vunpack.i.h.bf16 %v4454_v30  ;;  %v4455_v19 = vunpack.i.l.bf16 %v4454_v30 }
 0x8af   : > { %v2491_v26 = vpop.f32.mrf.mxu0 }
 0x8b0   : > { %v4512_v4 = vpack.i.bf16 %v2491_v26, %v2489_v55 }
 0x8b1   : > { %v4449_v15 = vpop.permute.xlu0 %4448 }
 0x8b2   : > { %v4451_v24 = vunpack.i.h.bf16 %v4449_v15  ;;  %v4450_v20 = vunpack.i.l.bf16 %v4449_v15  ;;  %4513 = vrot.lane.b32.xlu0 %v4512_v4, %s4964_s28  ;;  %v7692_v4 = vld [vmem:[#allocation12_spill] sm:$0xff] }
 0x8b4   : > { %v2719_v18 = vsel %vm2717_vm7, %v2702_v61, %v4451_v24  ;;  %v2718_v28 = vsel %vm2717_vm7, %v2701_v32, %v4450_v20  ;;  %v7693_v24 = vld [vmem:[#allocation11_spill] sm:$0xff] }
 0x8b5   : > { %v2736_v56 = vsel %vm2734_vm8, %v2719_v18, %v4456_v13  ;;  %v2735_v58 = vsel %vm2734_vm8, %v2718_v28, %v4455_v19  ;;  %v4474_v33 = vpop.permute.xlu1 %4473 }
 0x8b6   : > { %v2751_v9 = vpack.c.bf16 %v2736_v56, %v2735_v58  ;;  %v4476_v39 = vunpack.i.h.bf16 %v4474_v33  ;;  %v4475_v38 = vunpack.i.l.bf16 %v4474_v33 }
 0x8b8   : > { %4335 = vmatmul.msk.bf16.vlgmr.msra.gmra.mxu2 %vm460_vm0, %v2751_v9  ;;  %v2706_v0 = vsel %vm994_vm5, %v7690_v22, %v4476_v39  ;;  %v2705_v2 = vsel %vm994_vm5, %v7691_v52, %v4475_v38  ;;  %v7696_v22 = vld [vmem:[#allocation16_spill] sm:$0xff]  ;;  %v7697_v52 = vld [vmem:[#allocation15_spill] sm:$0xff] }
 0x8b9   : > { %v4459_v31 = vpop.permute.xlu0 %4458 }
 0x8ba   : > { %v4461_v62 = vunpack.i.h.bf16 %v4459_v31  ;;  %v4460_v48 = vunpack.i.l.bf16 %v4459_v31 }
 0x8bb   : > { %v2108_v14 = vpop.f32.mrf.mxu1 }
 0x8bc   : > { %v2704_v16 = vsel %vm994_vm5, %v6150_v11, %v4461_v62  ;;  %v2703_v37 = vsel %vm994_vm5, %v7689_v53, %v4460_v48 }
 0x8bd   : > { %v2720_v51 = vsel %vm2717_vm7, %v2703_v37, %v4465_v60  ;;  %v2721_v49 = vsel %vm2717_vm7, %v2704_v16, %v4466_v50  ;;  %v4489_v55 = vpop.permute.xlu1 %4488 }
 0x8be   : > { %v4491_v23 = vunpack.i.h.bf16 %v4489_v55  ;;  %v4490_v12 = vunpack.i.l.bf16 %v4489_v55 }
 0x8c0   : > { %v2708_v15 = vsel %vm994_vm5, %v7692_v4, %v4491_v23  ;;  %v2707_v20 = vsel %vm994_vm5, %v7693_v24, %v4490_v12  ;;  %v6736_v23 = vld [vmem:[%s7640_s6] ss:$0 sm:$0xff]  ;;  %v4925_v24 = vld [vmem:[%s5052_s30 + $0x18] sm:$0xff] }
 0x8c1   : > { %v4469_v8 = vpop.permute.xlu0 %4468 }
 0x8c2   : > { %v4471_v44 = vunpack.i.h.bf16 %v4469_v8  ;;  %v4470_v42 = vunpack.i.l.bf16 %v4469_v8 }
 0x8c3   : > { %v2110_v5 = vpop.f32.mrf.mxu1  ;;  %v2494_v10 = vpop.f32.mrf.mxu0 }
 0x8c4   : > { %v2737_v3 = vsel %vm2734_vm8, %v2720_v51, %v4470_v42  ;;  %v2738_v6 = vsel %vm2734_vm8, %v2721_v49, %v4471_v44  ;;  %v4522_v7 = vpack.i.bf16 %v2110_v5, %v2108_v14  ;;  %v7694_v42 = vld [vmem:[#allocation14_spill] sm:$0xff]  ;;  %v7695_v49 = vld [vmem:[#allocation13_spill] sm:$0xff] }
 0x8c5   : > { %v2752_v11 = vpack.c.bf16 %v2738_v6, %v2737_v3  ;;  %v4504_v62 = vpop.permute.xlu1 %4503 }
 0x8c6   : > { %4523 = vrot.lane.b32.xlu2 %v4522_v7, %s4965_s29  ;;  %v4506_v37 = vunpack.i.h.bf16 %v4504_v62  ;;  %v4505_v50 = vunpack.i.l.bf16 %v4504_v62 }
 0x8c8   : > { %4336 = vmatmul.msk.bf16.gmra.mxu2 %vm460_vm0, %v2752_v11  ;;  %v2710_v51 = vsel %vm994_vm5, %v7694_v42, %v4506_v37  ;;  %v2709_v5 = vsel %vm994_vm5, %v7695_v49, %v4505_v50  ;;  %v7698_v49 = vld [vmem:[#allocation18_spill] sm:$0xff] }
 0x8ca   : > { %v4484_v59 = vpop.permute.xlu0 %4483 }
 0x8cb   : > { %v2496_v25 = vpop.f32.mrf.mxu0  ;;  %v4486_v36 = vunpack.i.h.bf16 %v4484_v59  ;;  %v4485_v54 = vunpack.i.l.bf16 %v4484_v59 }
 0x8cc   : > { %v4527_v47 = vpack.i.bf16 %v2496_v25, %v2494_v10 }
 0x8ce   : > { %4528 = vrot.lane.b32.xlu0 %v4527_v47, %s4964_s28 }
 0x8d3   : > { %v2113_v57 = vpop.f32.mrf.mxu1 }
 0x8da   : > { %v4499_v1 = vpop.permute.xlu0 %4498 }
 0x8db   : > { %v2115_v27 = vpop.f32.mrf.mxu1  ;;  %v4501_v61 = vunpack.i.h.bf16 %v4499_v1  ;;  %v4500_v32 = vunpack.i.l.bf16 %v4499_v1 }
 0x8dc   : > { %v4537_v46 = vpack.i.bf16 %v2115_v27, %v2113_v57 }
 0x8de   : > { %4538 = vrot.lane.b32.xlu2 %v4537_v46, %s4965_s29  ;;  %v4519_v46 = vpop.permute.xlu1 %4518 }
 0x8df   : > { %v4521_v38 = vunpack.i.h.bf16 %v4519_v46  ;;  %v4520_v59 = vunpack.i.l.bf16 %v4519_v46 }
 0x8e4   : > { %v4479_v45 = vpop.permute.xlu2 %4478 }
 0x8e5   : > { %v4481_v40 = vunpack.i.h.bf16 %v4479_v45  ;;  %v4480_v29 = vunpack.i.l.bf16 %v4479_v45 }
 0x8e6   : > { %v4534_v62 = vpop.permute.xlu1 %4533 }
 0x8e7   : > { %v2722_v63 = vsel %vm2717_vm7, %v2705_v2, %v4480_v29  ;;  %v2723_v21 = vsel %vm2717_vm7, %v2706_v0, %v4481_v40  ;;  %v2712_v0 = vsel %vm994_vm5, %v7696_v22, %v4521_v38  ;;  %v2711_v2 = vsel %vm994_vm5, %v7697_v52, %v4520_v59  ;;  %v4929_v38 = vld [vmem:[%s5052_s30 + $0x38] sm:$0xff] }
 0x8e8   : > { %v2739_v41 = vsel %vm2734_vm8, %v2722_v63, %v4485_v54  ;;  %v2740_v17 = vsel %vm2734_vm8, %v2723_v21, %v4486_v36  ;;  %v4535_v37 = vunpack.i.l.bf16 %v4534_v62 }
 0x8e9   : > { %v2753_v43 = vpack.c.bf16 %v2740_v17, %v2739_v41 }
 0x8eb   : > { %4337 = vmatmul.msk.bf16.gmra.mxu2 %vm460_vm0, %v2753_v43 }
 0x8f4   : > { %v4494_v34 = vpop.permute.xlu2 %4493 }
 0x8f5   : > { %v4496_v26 = vunpack.i.h.bf16 %v4494_v34  ;;  %v4495_v30 = vunpack.i.l.bf16 %v4494_v34  ;;  %v4924_v34 = vld [vmem:[%s5052_s30 + $0x10] sm:$0xff] }
 0x8f7   : > { %v2724_v13 = vsel %vm2717_vm7, %v2707_v20, %v4495_v30  ;;  %v2725_v19 = vsel %vm2717_vm7, %v2708_v15, %v4496_v26 }
 0x8f8   : > { %v2741_v18 = vsel %vm2734_vm8, %v2724_v13, %v4500_v32  ;;  %v2742_v28 = vsel %vm2734_vm8, %v2725_v19, %v4501_v61  ;;  %v4926_v19 = vld [vmem:[%s5052_s30 + $0x20] sm:$0xff] }
 0x8f9   : > { %v2754_v56 = vpack.c.bf16 %v2742_v28, %v2741_v18 }
 0x8fb   : > { %4338 = vmatmul.msk.bf16.gmra.mxu2 %vm460_vm0, %v2754_v56 }
 0x904   : > { %v4509_v16 = vpop.permute.xlu2 %4508 }
 0x905   : > { %v4511_v60 = vunpack.i.h.bf16 %v4509_v16  ;;  %v4510_v8 = vunpack.i.l.bf16 %v4509_v16 }
 0x906   : > { %v2499_v58 = vpop.f32.mrf.mxu0 }
 0x907   : > { %v2726_v6 = vsel %vm2717_vm7, %v2709_v5, %v4510_v8  ;;  %v2727_v7 = vsel %vm2717_vm7, %v2710_v51, %v4511_v60  ;;  %v4928_v8 = vld [vmem:[%s5052_s30 + $0x30] sm:$0xff] }
 0x90e   : > { %v2501_v9 = vpop.f32.mrf.mxu0 }
 0x90f   : > { %v4542_v31 = vpack.i.bf16 %v2501_v9, %v2499_v58  ;;  %v4927_v9 = vld [vmem:[%s5052_s30 + $0x28] sm:$0xff] }
 0x911   : > { %4543 = vrot.lane.b32.xlu0 %v4542_v31, %s4964_s28 }
 0x916   : > { %v2118_v14 = vpop.f32.mrf.mxu1 }
 0x91e   : > { %v2120_v48 = vpop.f32.mrf.mxu1  ;;  %v2504_v35 = vpop.f32.mrf.mxu0 }
 0x91f   : > { %v4552_v53 = vpack.i.bf16 %v2120_v48, %v2118_v14 }
 0x920   : > { %v4524_v33 = vpop.permute.xlu2 %4523 }
 0x921   : > { %4553 = vrot.lane.b32.xlu2 %v4552_v53, %s4965_s29  ;;  %v4526_v45 = vunpack.i.h.bf16 %v4524_v33  ;;  %v4525_v40 = vunpack.i.l.bf16 %v4524_v33  ;;  %v4536_v53 = vunpack.i.h.bf16 %v4534_v62 }
 0x923   : > { %v2729_v63 = vsel %vm2717_vm7, %v2712_v0, %v4526_v45  ;;  %v2728_v21 = vsel %vm2717_vm7, %v2711_v2, %v4525_v40  ;;  %v2714_v5 = vsel %vm994_vm5, %v7698_v49, %v4536_v53  ;;  %v4549_v40 = vpop.permute.xlu1 %4548  ;;  %v4931_v53 = vld [vmem:[%s5052_s30 + $0x48] sm:$0xff] }
 0x924   : > { %v4514_v44 = vpop.permute.xlu0 %4513  ;;  %v4551_v22 = vunpack.i.h.bf16 %v4549_v40  ;;  %v4550_v0 = vunpack.i.l.bf16 %v4549_v40 }
 0x925   : > { %v4516_v10 = vunpack.i.h.bf16 %v4514_v44  ;;  %v4515_v3 = vunpack.i.l.bf16 %v4514_v44 }
 0x926   : > { %v2506_v11 = vpop.f32.mrf.mxu0 }
 0x927   : > { %v2744_v25 = vsel %vm2734_vm8, %v2727_v7, %v4516_v10  ;;  %v2743_v47 = vsel %vm2734_vm8, %v2726_v6, %v4515_v3  ;;  %v4557_v57 = vpack.i.bf16 %v2506_v11, %v2504_v35  ;;  %v7699_v10 = vld [vmem:[#allocation17_spill] sm:$0xff] }
 0x928   : > { %v2755_v27 = vpack.c.bf16 %v2744_v25, %v2743_v47  ;;  %v2713_v3 = vsel %vm994_vm5, %v7699_v10, %v4535_v37 }
 0x929   : > { %4558 = vrot.lane.b32.xlu0 %v4557_v57, %s4964_s28 }
 0x92a   : > { %4339 = vmatmul.msk.bf16.gmra.mxu2 %vm460_vm0, %v2755_v27 }
 0x938   : > { %v4539_v48 = vpop.permute.xlu2 %4538 }
 0x939   : > { %v4541_v50 = vunpack.i.h.bf16 %v4539_v48  ;;  %v4540_v60 = vunpack.i.l.bf16 %v4539_v48 }
 0x93b   : > { %v6720_v39 = vpop.f32.mrf.mxu2  ;;  %v2731_v11 = vsel %vm2717_vm7, %v2714_v5, %v4541_v50  ;;  %v2730_v25 = vsel %vm2717_vm7, %v2713_v3, %v4540_v60  ;;  %v4932_v5 = vld [vmem:[%s5052_s30 + $0x50] sm:$0xff] }
 0x940   : > { %v4529_v29 = vpop.permute.xlu0 %4528 }
 0x941   : > { %v4531_v36 = vunpack.i.h.bf16 %v4529_v29  ;;  %v4530_v54 = vunpack.i.l.bf16 %v4529_v29 }
 0x943   : > { %v2746_v41 = vsel %vm2734_vm8, %v2729_v63, %v4531_v36  ;;  %v2745_v17 = vsel %vm2734_vm8, %v2728_v21, %v4530_v54  ;;  %v6730_v43 = vpop.f32.mrf.mxu2  ;;  %v7700_v54 = vld [vmem:[#allocation20_spill] sm:$0xff]  ;;  %v7701_v21 = vld [vmem:[#allocation19_spill] sm:$0xff] }
 0x944   : > { %v2756_v55 = vpack.c.bf16 %v2746_v41, %v2745_v17  ;;  %v2716_v63 = vsel %vm994_vm5, %v7700_v54, %v4551_v22  ;;  %v2715_v41 = vsel %vm994_vm5, %v7701_v21, %v4550_v0 }
 0x946   : > { %4340 = vmatmul.msk.bf16.gmra.mxu2 %vm460_vm0, %v2756_v55 }
 0x94b   : > { %v2817_v12 = vpop.f32.mrf.mxu2 }
 0x94c   : > { %v2818_v1 = vadd.f32 %v6736_v23, %v2817_v12 }
 0x94e   : > { %v6740_v26 = vadd.f32 %v4924_v34, %v2818_v1 }
 0x950   : > { %v2876_v30 = vsel %vm460_vm0, %v6740_v26, 0.0 }
 0x951   : > { %2877 = vadd.xlane.f32.xlu1 %v2876_v30 }
 0x953   : > { %v2819_v4 = vpop.f32.mrf.mxu2 }
 0x954   : > { %v2820_v15 = vadd.f32 %v6736_v23, %v2819_v4 }
 0x956   : > { %v6746_v20 = vadd.f32 %v4925_v24, %v2820_v15 }
 0x958   : > { %v2879_v61 = vsel %vm460_vm0, %v6746_v20, 0.0 }
 0x959   : > { %2880 = vadd.xlane.f32.xlu2 %v2879_v61  ;;  %v4930_v61 = vld [vmem:[%s5052_s30 + $0x40] sm:$0xff] }
 0x96e   : > { %v2822_v32 = vpop.f32.mrf.mxu2 }
 0x96f   : > { %v2823_v13 = vadd.f32 %v6736_v23, %v2822_v32 }
 0x971   : > { %v6752_v18 = vadd.f32 %v4926_v19, %v2823_v13 }
 0x973   : > { %v2882_v28 = vsel %vm460_vm0, %v6752_v18, 0.0 }
 0x974   : > { %2883 = vadd.xlane.f32.xlu0 %v2882_v28  ;;  %v7702_v28 = vld [vmem:[#allocation2_spill] sm:$0xff] }
 0x976   : > { %v2824_v56 = vpop.f32.mrf.mxu2 }
 0x977   : > { %v2825_v58 = vadd.f32 %v6736_v23, %v2824_v56 }
 0x979   : > { %v6758_v31 = vadd.f32 %v4927_v9, %v2825_v58 }
 0x97b   : > { %v2885_v14 = vsel %vm460_vm0, %v6758_v31, 0.0  ;;  %v4554_v29 = vpop.permute.xlu2 %4553 }
 0x97c   : > { %2886 = vadd.xlane.f32.xlu2 %v2885_v14  ;;  %v4556_v52 = vunpack.i.h.bf16 %v4554_v29  ;;  %v4555_v2 = vunpack.i.l.bf16 %v4554_v29 }
 0x97e   : > { %v2827_v35 = vpop.f32.mrf.mxu2  ;;  %v2733_v12 = vsel %vm2717_vm7, %v2716_v63, %v4556_v52  ;;  %v2732_v1 = vsel %vm2717_vm7, %v2715_v41, %v4555_v2 }
 0x97f   : > { %v2828_v16 = vadd.f32 %v6736_v23, %v2827_v35 }
 0x981   : > { %v6764_v44 = vadd.f32 %v4928_v8, %v2828_v16 }
 0x983   : > { %v4544_v42 = vpop.permute.xlu0 %4543  ;;  %v2888_v51 = vsel %vm460_vm0, %v6764_v44, 0.0 }
 0x984   : > { %v4546_v6 = vunpack.i.h.bf16 %v4544_v42  ;;  %v4545_v7 = vunpack.i.l.bf16 %v4544_v42  ;;  %2889 = vadd.xlane.f32.xlu1 %v2888_v51 }
 0x986   : > { %v2748_v47 = vsel %vm2734_vm8, %v2731_v11, %v4546_v6  ;;  %v2747_v57 = vsel %vm2734_vm8, %v2730_v25, %v4545_v7  ;;  %v2829_v27 = vpop.f32.mrf.mxu2 }
 0x987   : > { %v2757_v46 = vpack.c.bf16 %v2748_v47, %v2747_v57  ;;  %v2830_v33 = vadd.f32 %v6736_v23, %v2829_v27 }
 0x989   : > { %v6778_v59 = vadd.f32 %v4929_v38, %v2830_v33  ;;  %4341 = vmatmul.msk.bf16.gmra.mxu2 %vm460_vm0, %v2757_v46  ;;  %v4933_v38 = vld [vmem:[%s5052_s30 + $0x58] sm:$0xff] }
 0x98b   : > { %v2891_v45 = vsel %vm460_vm0, %v6778_v59, 0.0 }
 0x98c   : > { %2892 = vadd.xlane.f32.xlu0 %v2891_v45 }
 0x99b   : > { %v4559_v36 = vpop.permute.xlu0 %4558 }
 0x99c   : > { %v4561_v17 = vunpack.i.h.bf16 %v4559_v36  ;;  %v4560_v55 = vunpack.i.l.bf16 %v4559_v36 }
 0x99e   : > { %v2750_v34 = vsel %vm2734_vm8, %v2733_v12, %v4561_v17  ;;  %v2749_v30 = vsel %vm2734_vm8, %v2732_v1, %v4560_v55 }
 0x99f   : > { %v2758_v4 = vpack.c.bf16 %v2750_v34, %v2749_v30  ;;  %v4934_v30 = vld [vmem:[%s5052_s30 + $0x60] sm:$0xff] }
 0x9a1   : > { %4342 = vmatmul.msk.bf16.gmra.mxu2 %vm460_vm0, %v2758_v4 }
 0x9ad   : > { %v2832_v15 = vpop.f32.mrf.mxu2 }
 0x9ae   : > { %v2833_v24 = vadd.f32 %v6736_v23, %v2832_v15 }
 0x9b0   : > { %v6794_v32 = vadd.f32 %v4930_v61, %v2833_v24 }
 0x9b2   : > { %v2894_v13 = vsel %vm460_vm0, %v6794_v32, 0.0 }
 0x9b3   : > { %2895 = vadd.xlane.f32.xlu0 %v2894_v13  ;;  %v4935_v13 = vld [vmem:[%s5052_s30 + $0x68] sm:$0xff] }
 0x9b5   : > { %v2834_v9 = vpop.f32.mrf.mxu2 }
 0x9b6   : > { %v2835_v62 = vadd.f32 %v6736_v23, %v2834_v9 }
 0x9b8   : > { %v6808_v37 = vadd.f32 %v4931_v53, %v2835_v62  ;;  %v2815_v53 = vadd.f32 %v6736_v23, %v6730_v43  ;;  %v4938_v43 = vld [vmem:[%s5052_s30 + $0x78] sm:$0xff] }
 0x9ba   : > { %v2897_v49 = vsel %vm460_vm0, %v6808_v37, 0.0 }
 0x9c4   : > { %v2878_v19 = vpop.xlane.xlu1 %2877 }
 0x9c5   : > { %v2920_v56 = vmul.f32 %v2878_v19, %v7702_v28 }
 0x9c7   : > { %v6800_v58 = vsub.f32 %v6740_v26, %v2920_v56 }
 0x9c9   : > { %v2952_v14 = vmul.f32 %v6800_v58, %v6800_v58  ;;  %v2837_v60 = vpop.f32.mrf.mxu2 }
 0x9ca   : > { %v2838_v42 = vadd.f32 %v6736_v23, %v2837_v60 }
 0x9cb   : > { %v2972_v48 = vsel %vm460_vm0, %v2952_v14, 0.0 }
 0x9cc   : > { %v2881_v35 = vpop.xlane.xlu2 %2880  ;;  %2973 = vadd.xlane.f32.xlu2 %v2972_v48  ;;  %v6820_v10 = vadd.f32 %v4932_v5, %v2838_v42  ;;  %v4936_v48 = vld [vmem:[%s5052_s30 + $0x70] sm:$0xff] }
 0x9cd   : > { %v2921_v16 = vmul.f32 %v2881_v35, %v7702_v28 }
 0x9ce   : > { %v2900_v3 = vsel %vm460_vm0, %v6820_v10, 0.0 }
 0x9cf   : > { %v6811_v50 = vsub.f32 %v6746_v20, %v2921_v16 }
 0x9d1   : > { %v2953_v8 = vmul.f32 %v6811_v50, %v6811_v50  ;;  %v2839_v25 = vpop.f32.mrf.mxu2 }
 0x9d2   : > { %v2840_v57 = vadd.f32 %v6736_v23, %v2839_v25 }
 0x9d3   : > { %v2975_v51 = vsel %vm460_vm0, %v2953_v8, 0.0 }
 0x9d4   : > { %2976 = vadd.xlane.f32.xlu1 %v2975_v51  ;;  %2898 = vadd.xlane.f32.xlu2 %v2897_v49  ;;  %v6834_v45 = vadd.f32 %v4933_v38, %v2840_v57  ;;  %v4937_v49 = vld [vmem:[%s5052_s30 + $0x8] sm:$0xff]  ;;  %v4407_v38 = vld [vmem:[%s7643_s9] sm:$0xff] }
 0x9d5   : > { %v6885_v5 = vadd.f32 %v4937_v49, %v2815_v53 }
 0x9d6   : > { %v2903_v0 = vsel %vm460_vm0, %v6834_v45, 0.0 }
 0x9d7   : > { %v2873_v25 = vsel %vm460_vm0, %v6885_v5, 0.0 }
 0x9dc   : > { %2901 = vadd.xlane.f32.xlu2 %v2900_v3 }
 0x9e7   : > { %v2884_v6 = vpop.xlane.xlu0 %2883 }
 0x9e8   : > { %v2922_v7 = vmul.f32 %v2884_v6, %v7702_v28 }
 0x9ea   : > { %v6826_v11 = vsub.f32 %v6752_v18, %v2922_v7 }
 0x9ec   : > { %v2954_v47 = vmul.f32 %v6826_v11, %v6826_v11 }
 0x9ee   : > { %v2978_v27 = vsel %vm460_vm0, %v2954_v47, 0.0 }
 0x9ef   : > { %v2887_v46 = vpop.xlane.xlu2 %2886  ;;  %2979 = vadd.xlane.f32.xlu1 %v2978_v27  ;;  %v4408_v27 = vld [vmem:[%s7643_s9 + $0x8] sm:$0xff] }
 0x9f0   : > { %v2923_v33 = vmul.f32 %v2887_v46, %v7702_v28  ;;  %4413 = vmatpush.bf16.msra.mxu1 %v4408_v27  ;;  %3318 = vmatpush.bf16.msrb.mxu0 %v4408_v27 }
 0x9f2   : > { %v6837_v40 = vsub.f32 %v6758_v31, %v2923_v33 }
 0x9f4   : > { %v2955_v29 = vmul.f32 %v6837_v40, %v6837_v40  ;;  %4414 = vmatpush.bf16.msra.mxu1 %v4407_v38  ;;  %3319 = vmatpush.bf16.msrb.mxu0 %v4407_v38 }
 0x9f6   : > { %v2981_v22 = vsel %vm460_vm0, %v2955_v29, 0.0 }
 0x9f7   : > { %2982 = vadd.xlane.f32.xlu0 %v2981_v22  ;;  %2904 = vadd.xlane.f32.xlu1 %v2903_v0  ;;  %v2890_v52 = vpop.xlane.xlu1 %2889 }
 0x9f8   : > { %v2924_v2 = vmul.f32 %v2890_v52, %v7702_v28 }
 0x9fa   : > { %v6846_v36 = vsub.f32 %v6764_v44, %v2924_v2 }
 0x9fc   : > { %v2956_v54 = vmul.f32 %v6846_v36, %v6846_v36 }
 0x9fe   : > { %v2984_v63 = vsel %vm460_vm0, %v2956_v54, 0.0 }
 0x9ff   : > { %v2893_v21 = vpop.xlane.xlu0 %2892  ;;  %2985 = vadd.xlane.f32.xlu0 %v2984_v63 }
 0xa00   : > { %v2925_v41 = vmul.f32 %v2893_v21, %v7702_v28 }
 0xa02   : > { %v6853_v17 = vsub.f32 %v6778_v59, %v2925_v41 }
 0xa04   : > { %v2957_v55 = vmul.f32 %v6853_v17, %v6853_v17 }
 0xa06   : > { %v2987_v12 = vsel %vm460_vm0, %v2957_v55, 0.0 }
 0xa07   : > { %2988 = vadd.xlane.f32.xlu2 %v2987_v12  ;;  %v2813_v12 = vadd.f32 %v6736_v23, %v6720_v39 }
 0xa0c   : > { %v2842_v1 = vpop.f32.mrf.mxu2 }
 0xa0d   : > { %v2843_v34 = vadd.f32 %v6736_v23, %v2842_v1 }
 0xa0f   : > { %v6860_v4 = vadd.f32 %v4934_v30, %v2843_v34 }
 0xa11   : > { %v2906_v15 = vsel %vm460_vm0, %v6860_v4, 0.0 }
 0xa12   : > { %2907 = vadd.xlane.f32.xlu1 %v2906_v15 }
 0xa14   : > { %v2844_v24 = vpop.f32.mrf.mxu2 }
 0xa15   : > { %v2845_v61 = vadd.f32 %v6736_v23, %v2844_v24 }
 0xa17   : > { %v6866_v19 = vadd.f32 %v4935_v13, %v2845_v61  ;;  %v4939_v13 = vld [vmem:[%s5052_s30] sm:$0xff] }
 0xa19   : > { %v2909_v56 = vsel %vm460_vm0, %v6866_v19, 0.0 }
 0xa1a   : > { %2910 = vadd.xlane.f32.xlu0 %v2909_v56  ;;  %v6915_v56 = vadd.f32 %v4939_v13, %v2813_v12 }
 0xa24   : > { %v2847_v9 = vpop.f32.mrf.mxu2 }
 0xa25   : > { %v2848_v14 = vadd.f32 %v6736_v23, %v2847_v9 }
 0xa26   : > { %v2896_v62 = vpop.xlane.xlu0 %2895 }
 0xa27   : > { %v6872_v35 = vadd.f32 %v4936_v48, %v2848_v14  ;;  %v2926_v16 = vmul.f32 %v2896_v62, %v7702_v28 }
 0xa29   : > { %v6878_v60 = vsub.f32 %v6794_v32, %v2926_v16  ;;  %v2912_v8 = vsel %vm460_vm0, %v6872_v35, 0.0  ;;  %v2870_v16 = vsel %vm460_vm0, %v6915_v56, 0.0 }
 0xa2a   : > { %2913 = vadd.xlane.f32.xlu0 %v2912_v8 }
 0xa2b   : > { %v2958_v42 = vmul.f32 %v6878_v60, %v6878_v60 }
 0xa2c   : > { %v2849_v51 = vpop.f32.mrf.mxu2 }
 0xa2d   : > { %v2850_v3 = vadd.f32 %v6736_v23, %v2849_v51  ;;  %v2990_v6 = vsel %vm460_vm0, %v2958_v42, 0.0  ;;  %v6928_v51 = vld [vmem:[%s7641_s7] ss:$0 sm:$0xff] }
 0xa2e   : > { %2991 = vadd.xlane.f32.xlu2 %v2990_v6 }
 0xa2f   : > { %v6890_v7 = vadd.f32 %v4938_v43, %v2850_v3  ;;  %v6934_v43 = vld [vmem:[%s7642_s8] ss:$0 sm:$0xff] }
 0xa31   : > { %v2915_v47 = vsel %vm460_vm0, %v6890_v7, 0.0 }
 0xa32   : > { %2874 = vadd.xlane.f32.xlu0 %v2873_v25 }
 0xa36   : > { %2916 = vadd.xlane.f32.xlu2 %v2915_v47 }
 0xa3f   : > { %v2974_v57 = vpop.xlane.xlu2 %2973 }
 0xa40   : > { %v3016_v46 = vmul.f32 %v2974_v57, %v7702_v28 }
 0xa42   : > { %v3032_v33 = vadd.f32 1e-05, %v3016_v46 }
 0xa44   : > { %4860 = vrsqrt.f32 %v3032_v33  ;;  %vm3072_vm10 = vweird.f32 %v3032_v33 }
 0xa47   : > { %v2899_v29 = vpop.xlane.xlu2 %2898  ;;  %v2977_v22 = vpop.xlane.xlu1 %2976 }
 0xa48   : > { %v2927_v0 = vmul.f32 %v2899_v29, %v7702_v28  ;;  %v3017_v52 = vmul.f32 %v2977_v22, %v7702_v28 }
 0xa4a   : > { %v4861_v2 = vpop.eup %4860  ;;  %v6906_v54 = vsub.f32 %v6808_v37, %v2927_v0  ;;  %v3033_v63 = vadd.f32 1e-05, %v3017_v52 }
 0xa4b   : > { %v3067_v21 = vmul.f32 %v4861_v2, %v3032_v33  ;;  %vm3073_vm9 = vweird.f32 %v4861_v2 }
 0xa4c   : > { %4862 = vrsqrt.f32 %v3033_v63  ;;  %v2959_v41 = vmul.f32 %v6906_v54, %v6906_v54  ;;  %vm3074_vm11 = vmor %vm3072_vm10, %vm3073_vm9  ;;  %vm3082_vm13 = vweird.f32 %v3033_v63 }
 0xa4d   : > { %v3068_v55 = vmul.f32 %v4861_v2, %v3067_v21 }
 0xa4e   : > { %v2993_v1 = vsel %vm460_vm0, %v2959_v41, 0.0 }
 0xa4f   : > { %v3069_v34 = vmul.f32 0.5, %v3068_v55  ;;  %2994 = vadd.xlane.f32.xlu1 %v2993_v1  ;;  %v2902_v30 = vpop.xlane.xlu2 %2901 }
 0xa50   : > { %v2928_v15 = vmul.f32 %v2902_v30, %v7702_v28 }
 0xa51   : > { %v3070_v24 = vsub.f32 1.5, %v3069_v34 }
 0xa52   : > { %v4863_v61 = vpop.eup %4862  ;;  %v6918_v9 = vsub.f32 %v6820_v10, %v2928_v15 }
 0xa53   : > { %v3071_v14 = vmul.f32 %v4861_v2, %v3070_v24  ;;  %v3077_v62 = vmul.f32 %v4863_v61, %v3033_v63  ;;  %vm3083_vm12 = vweird.f32 %v4863_v61 }
 0xa54   : > { %v2960_v39 = vmul.f32 %v6918_v9, %v6918_v9  ;;  %vm3084_vm14 = vmor %vm3082_vm13, %vm3083_vm12 }
 0xa55   : > { %v3078_v23 = vmul.f32 %v4863_v61, %v3077_v62  ;;  %v3075_v53 = vsel %vm3074_vm11, %v4861_v2, %v3071_v14 }
 0xa56   : > { %v2996_v48 = vsel %vm460_vm0, %v2960_v39, 0.0  ;;  %v3208_v49 = vmul.f32 %v3075_v53, %v6800_v58 }
 0xa57   : > { %v3079_v8 = vmul.f32 0.5, %v3078_v23  ;;  %2997 = vadd.xlane.f32.xlu2 %v2996_v48  ;;  %2871 = vadd.xlane.f32.xlu1 %v2870_v16 }
 0xa58   : > { %v3227_v25 = vmul.f32 %v6928_v51, %v3208_v49 }
 0xa59   : > { %v3080_v42 = vsub.f32 1.5, %v3079_v8 }
 0xa5a   : > { %v3246_v27 = vadd.f32 %v6934_v43, %v3227_v25 }
 0xa5b   : > { %v3081_v3 = vmul.f32 %v4863_v61, %v3080_v42 }
 0xa5d   : > { %v3085_v6 = vsel %vm3084_vm14, %v4863_v61, %v3081_v3 }
 0xa5e   : > { %v3209_v47 = vmul.f32 %v3085_v6, %v6811_v50 }
 0xa60   : > { %v3228_v57 = vmul.f32 %v6928_v51, %v3209_v47 }
 0xa62   : > { %v3247_v46 = vadd.f32 %v6934_v43, %v3228_v57  ;;  %v2980_v58 = vpop.xlane.xlu1 %2979 }
 0xa63   : > { %v3018_v33 = vmul.f32 %v2980_v58, %v7702_v28 }
 0xa64   : > { %v3261_v38 = vpack.c.bf16 %v3247_v46, %v3246_v27 }
 0xa65   : > { %v3034_v29 = vadd.f32 1e-05, %v3018_v33 }
 0xa66   : > { %4352 = vmatmul.msk.bf16.vlgmr.msra.gmra.mxu1 %vm460_vm0, %v3261_v38 }
 0xa67   : > { %4864 = vrsqrt.f32 %v3034_v29  ;;  %vm3092_vm1 = vweird.f32 %v3034_v29 }
 0xa6a   : > { %v2983_v22 = vpop.xlane.xlu0 %2982  ;;  %v2905_v0 = vpop.xlane.xlu1 %2904 }
 0xa6b   : > { %v3019_v52 = vmul.f32 %v2983_v22, %v7702_v28  ;;  %v2929_v50 = vmul.f32 %v2905_v0, %v7702_v28 }
 0xa6d   : > { %v4865_v2 = vpop.eup %4864  ;;  %v3035_v63 = vadd.f32 1e-05, %v3019_v52  ;;  %v6946_v21 = vsub.f32 %v6834_v45, %v2929_v50 }
 0xa6e   : > { %v3087_v41 = vmul.f32 %v4865_v2, %v3034_v29  ;;  %vm3093_vm15 = vweird.f32 %v4865_v2 }
 0xa6f   : > { %4866 = vrsqrt.f32 %v3035_v63  ;;  %v2961_v55 = vmul.f32 %v6946_v21, %v6946_v21  ;;  %vm3094_vm2 = vmor %vm3092_vm1, %vm3093_vm15  ;;  %vm3102_vm4 = vweird.f32 %v3035_v63 }
 0xa70   : > { %v3088_v12 = vmul.f32 %v4865_v2, %v3087_v41 }
 0xa71   : > { %v2999_v1 = vsel %vm460_vm0, %v2961_v55, 0.0 }
 0xa72   : > { %v3089_v34 = vmul.f32 0.5, %v3088_v12  ;;  %v2986_v30 = vpop.xlane.xlu0 %2985  ;;  %3000 = vadd.xlane.f32.xlu1 %v2999_v1 }
 0xa73   : > { %v3020_v15 = vmul.f32 %v2986_v30, %v7702_v28 }
 0xa74   : > { %v3090_v24 = vsub.f32 1.5, %v3089_v34 }
 0xa75   : > { %v4867_v61 = vpop.eup %4866  ;;  %v3036_v13 = vadd.f32 1e-05, %v3020_v15 }
 0xa76   : > { %v3091_v14 = vmul.f32 %v4865_v2, %v3090_v24  ;;  %v3097_v62 = vmul.f32 %v4867_v61, %v3035_v63  ;;  %vm3103_vm3 = vweird.f32 %v4867_v61 }
 0xa77   : > { %4868 = vrsqrt.f32 %v3036_v13  ;;  %vm3104_vm5 = vmor %vm3102_vm4, %vm3103_vm3  ;;  %vm3112_vm7 = vweird.f32 %v3036_v13 }
 0xa78   : > { %v3098_v39 = vmul.f32 %v4867_v61, %v3097_v62  ;;  %v3095_v23 = vsel %vm3094_vm2, %v4865_v2, %v3091_v14 }
 0xa79   : > { %v3210_v49 = vmul.f32 %v3095_v23, %v6826_v11 }
 0xa7a   : > { %v3099_v48 = vmul.f32 0.5, %v3098_v39  ;;  %v2989_v16 = vpop.xlane.xlu2 %2988 }
 0xa7b   : > { %v3021_v53 = vmul.f32 %v2989_v16, %v7702_v28  ;;  %v3229_v46 = vmul.f32 %v6928_v51, %v3210_v49 }
 0xa7c   : > { %v3100_v8 = vsub.f32 1.5, %v3099_v48 }
 0xa7d   : > { %v4869_v42 = vpop.eup %4868  ;;  %v3037_v3 = vadd.f32 1e-05, %v3021_v53  ;;  %v3248_v11 = vadd.f32 %v6934_v43, %v3229_v46 }
 0xa7e   : > { %v3101_v6 = vmul.f32 %v4867_v61, %v3100_v8  ;;  %v3107_v25 = vmul.f32 %v4869_v42, %v3036_v13  ;;  %vm3113_vm6 = vweird.f32 %v4869_v42 }
 0xa7f   : > { %4870 = vrsqrt.f32 %v3037_v3  ;;  %vm3114_vm8 = vmor %vm3112_vm7, %vm3113_vm6  ;;  %vm3122_vm10 = vweird.f32 %v3037_v3 }
 0xa80   : > { %v3105_v47 = vsel %vm3104_vm5, %v4867_v61, %v3101_v6  ;;  %v3108_v57 = vmul.f32 %v4869_v42, %v3107_v25 }
 0xa81   : > { %v3211_v27 = vmul.f32 %v3105_v47, %v6837_v40 }
 0xa82   : > { %v3109_v58 = vmul.f32 0.5, %v3108_v57 }
 0xa83   : > { %v3230_v33 = vmul.f32 %v6928_v51, %v3211_v27 }
 0xa84   : > { %v3110_v38 = vsub.f32 1.5, %v3109_v58 }
 0xa85   : > { %v4871_v29 = vpop.eup %4870  ;;  %v2908_v22 = vpop.xlane.xlu1 %2907  ;;  %v3249_v0 = vadd.f32 %v6934_v43, %v3230_v33 }
 0xa86   : > { %v3111_v52 = vmul.f32 %v4869_v42, %v3110_v38  ;;  %v3117_v50 = vmul.f32 %v4871_v29, %v3037_v3  ;;  %v2930_v2 = vmul.f32 %v2908_v22, %v7702_v28  ;;  %vm3123_vm9 = vweird.f32 %v4871_v29 }
 0xa87   : > { %v3262_v63 = vpack.c.bf16 %v3249_v0, %v3248_v11  ;;  %vm3124_vm11 = vmor %vm3122_vm10, %vm3123_vm9 }
 0xa88   : > { %v3118_v40 = vmul.f32 %v4871_v29, %v3117_v50  ;;  %v6961_v41 = vsub.f32 %v6860_v4, %v2930_v2  ;;  %v3115_v55 = vsel %vm3114_vm8, %v4869_v42, %v3111_v52 }
 0xa89   : > { %4353 = vmatmul.msk.bf16.gmra.mxu1 %vm460_vm0, %v3262_v63  ;;  %v3212_v15 = vmul.f32 %v3115_v55, %v6846_v36 }
 0xa8a   : > { %v3119_v12 = vmul.f32 0.5, %v3118_v40  ;;  %v2962_v1 = vmul.f32 %v6961_v41, %v6961_v41 }
 0xa8b   : > { %v3231_v23 = vmul.f32 %v6928_v51, %v3212_v15 }
 0xa8c   : > { %v3120_v34 = vsub.f32 1.5, %v3119_v12  ;;  %v3002_v30 = vsel %vm460_vm0, %v2962_v1, 0.0 }
 0xa8d   : > { %v2911_v24 = vpop.xlane.xlu0 %2910  ;;  %3003 = vadd.xlane.f32.xlu0 %v3002_v30  ;;  %v3250_v53 = vadd.f32 %v6934_v43, %v3231_v23 }
 0xa8e   : > { %v3121_v61 = vmul.f32 %v4871_v29, %v3120_v34  ;;  %v2931_v13 = vmul.f32 %v2911_v24, %v7702_v28 }
 0xa90   : > { %v3125_v14 = vsel %vm3124_vm11, %v4871_v29, %v3121_v61  ;;  %v6970_v62 = vsub.f32 %v6866_v19, %v2931_v13 }
 0xa91   : > { %v3213_v39 = vmul.f32 %v3125_v14, %v6853_v17 }
 0xa92   : > { %v2963_v48 = vmul.f32 %v6970_v62, %v6970_v62 }
 0xa93   : > { %v3232_v36 = vmul.f32 %v6928_v51, %v3213_v39 }
 0xa94   : > { %v3005_v16 = vsel %vm460_vm0, %v2963_v48, 0.0 }
 0xa95   : > { %3006 = vadd.xlane.f32.xlu2 %v3005_v16  ;;  %v3251_v8 = vadd.f32 %v6934_v43, %v3232_v36 }
 0xa97   : > { %v3263_v42 = vpack.c.bf16 %v3251_v8, %v3250_v53 }
 0xa99   : > { %4354 = vmatmul.msk.bf16.gmra.mxu1 %vm460_vm0, %v3263_v42 }
 0xa9d   : > { %v2914_v49 = vpop.xlane.xlu0 %2913 }
 0xa9e   : > { %v2932_v17 = vmul.f32 %v2914_v49, %v7702_v28 }
 0xaa0   : > { %v6983_v3 = vsub.f32 %v6872_v35, %v2932_v17 }
 0xaa1   : > { %v2992_v6 = vpop.xlane.xlu2 %2991 }
 0xaa2   : > { %v2964_v25 = vmul.f32 %v6983_v3, %v6983_v3  ;;  %v3022_v11 = vmul.f32 %v2992_v6, %v7702_v28 }
 0xaa4   : > { %v3008_v47 = vsel %vm460_vm0, %v2964_v25, 0.0  ;;  %v3038_v50 = vadd.f32 1e-05, %v3022_v11 }
 0xaa5   : > { %v2875_v57 = vpop.xlane.xlu0 %2874  ;;  %3009 = vadd.xlane.f32.xlu1 %v3008_v47 }
 0xaa6   : > { %v2919_v27 = vmul.f32 %v2875_v57, %v7702_v28  ;;  %4872 = vrsqrt.f32 %v3038_v50  ;;  %vm3132_vm13 = vweird.f32 %v3038_v50 }
 0xaa8   : > { %v6990_v46 = vsub.f32 %v6885_v5, %v2919_v27 }
 0xaa9   : > { %v2917_v58 = vpop.xlane.xlu2 %2916 }
 0xaaa   : > { %v2933_v33 = vmul.f32 %v2917_v58, %v7702_v28  ;;  %v2951_v38 = vmul.f32 %v6990_v46, %v6990_v46 }
 0xaac   : > { %v6996_v29 = vsub.f32 %v6890_v7, %v2933_v33  ;;  %v2969_v22 = vsel %vm460_vm0, %v2951_v38, 0.0  ;;  %v4873_v2 = vpop.eup %4872 }
 0xaad   : > { %2970 = vadd.xlane.f32.xlu1 %v2969_v22  ;;  %v3127_v63 = vmul.f32 %v4873_v2, %v3038_v50  ;;  %vm3133_vm12 = vweird.f32 %v4873_v2 }
 0xaae   : > { %v2965_v0 = vmul.f32 %v6996_v29, %v6996_v29  ;;  %vm3134_vm14 = vmor %vm3132_vm13, %vm3133_vm12 }
 0xaaf   : > { %v3128_v40 = vmul.f32 %v4873_v2, %v3127_v63 }
 0xab0   : > { %v3011_v52 = vsel %vm460_vm0, %v2965_v0, 0.0 }
 0xab1   : > { %3012 = vadd.xlane.f32.xlu0 %v3011_v52  ;;  %v3129_v34 = vmul.f32 0.5, %v3128_v40 }
 0xab3   : > { %v3130_v30 = vsub.f32 1.5, %v3129_v34 }
 0xab5   : > { %v3131_v39 = vmul.f32 %v4873_v2, %v3130_v30 }
 0xab7   : > { %v3135_v8 = vsel %vm3134_vm14, %v4873_v2, %v3131_v39 }
 0xab8   : > { %v3214_v6 = vmul.f32 %v3135_v8, %v6878_v60  ;;  %v7021_v60 = vld [vmem:[%s7644_s10] ss:$0 sm:$0xff] }
 0xaba   : > { %v3233_v27 = vmul.f32 %v6928_v51, %v3214_v6 }
 0xabc   : > { %v3252_v33 = vadd.f32 %v6934_v43, %v3233_v27 }
 0xac2   : > { %v2995_v55 = vpop.xlane.xlu1 %2994 }
 0xac3   : > { %v3023_v12 = vmul.f32 %v2995_v55, %v7702_v28 }
 0xac5   : > { %v3039_v1 = vadd.f32 1e-05, %v3023_v12 }
 0xac7   : > { %4874 = vrsqrt.f32 %v3039_v1  ;;  %vm3142_vm1 = vweird.f32 %v3039_v1 }
 0xaca   : > { %v2872_v15 = vpop.xlane.xlu1 %2871  ;;  %v2998_v13 = vpop.xlane.xlu2 %2997 }
 0xacb   : > { %v2918_v24 = vmul.f32 %v2872_v15, %v7702_v28  ;;  %v3024_v16 = vmul.f32 %v2998_v13, %v7702_v28 }
 0xacd   : > { %v4875_v61 = vpop.eup %4874  ;;  %v7006_v14 = vsub.f32 %v6915_v56, %v2918_v24  ;;  %v3040_v17 = vadd.f32 1e-05, %v3024_v16 }
 0xace   : > { %v3137_v23 = vmul.f32 %v4875_v61, %v3039_v1  ;;  %vm3143_vm15 = vweird.f32 %v4875_v61 }
 0xacf   : > { %v2950_v48 = vmul.f32 %v7006_v14, %v7006_v14  ;;  %vm3144_vm2 = vmor %vm3142_vm1, %vm3143_vm15  ;;  %4876 = vrsqrt.f32 %v3040_v17  ;;  %vm3152_vm4 = vweird.f32 %v3040_v17 }
 0xad0   : > { %v3138_v36 = vmul.f32 %v4875_v61, %v3137_v23 }
 0xad1   : > { %v2966_v53 = vsel %vm460_vm0, %v2950_v48, 0.0 }
 0xad2   : > { %v3139_v42 = vmul.f32 0.5, %v3138_v36  ;;  %2967 = vadd.xlane.f32.xlu2 %v2966_v53 }
 0xad4   : > { %v3140_v49 = vsub.f32 1.5, %v3139_v42 }
 0xad5   : > { %v4877_v22 = vpop.eup %4876 }
 0xad6   : > { %v3141_v25 = vmul.f32 %v4875_v61, %v3140_v49  ;;  %v3147_v0 = vmul.f32 %v4877_v22, %v3040_v17  ;;  %vm3153_vm3 = vweird.f32 %v4877_v22 }
 0xad7   : > { %vm3154_vm5 = vmor %vm3152_vm4, %vm3153_vm3 }
 0xad8   : > { %v3145_v47 = vsel %vm3144_vm2, %v4875_v61, %v3141_v25  ;;  %v3148_v50 = vmul.f32 %v4877_v22, %v3147_v0  ;;  %vm4109_vm2 = vcmask 523264  }
 0xad9   : > { %v3215_v57 = vmul.f32 %v3145_v47, %v6906_v54 }
 0xada   : > { %v3149_v1 = vmul.f32 0.5, %v3148_v50 }
 0xadb   : > { %v3234_v58 = vmul.f32 %v6928_v51, %v3215_v57 }
 0xadc   : > { %v3150_v13 = vsub.f32 1.5, %v3149_v1 }
 0xadd   : > { %v3253_v38 = vadd.f32 %v6934_v43, %v3234_v58 }
 0xade   : > { %v3151_v53 = vmul.f32 %v4877_v22, %v3150_v13 }
 0xadf   : > { %v3264_v11 = vpack.c.bf16 %v3253_v38, %v3252_v33 }
 0xae0   : > { %v3155_v27 = vsel %vm3154_vm5, %v4877_v22, %v3151_v53 }
 0xae1   : > { %4355 = vmatmul.msk.bf16.gmra.mxu1 %vm460_vm0, %v3264_v11  ;;  %v3216_v17 = vmul.f32 %v3155_v27, %v6918_v9 }
 0xae3   : > { %v3326_v52 = vpop.f32.mrf.mxu1 }
 0xae4   : > { %v7025_v54 = vadd.f32 %v7021_v60, %v3326_v52 }
 0xae5   : > { %v3001_v2 = vpop.xlane.xlu1 %3000 }
 0xae6   : > { %v7028_v63 = vmul.f32 0.70710677, %v7025_v54  ;;  %v3025_v40 = vmul.f32 %v3001_v2, %v7702_v28 }
 0xae8   : > { %v3473_v55 = vmul.f32 %v7028_v63, %v7028_v63  ;;  %v3041_v12 = vadd.f32 1e-05, %v3025_v40 }
 0xaea   : > { %v7033_v34 = vmin.f32 %v3473_v55, 16.0  ;;  %4878 = vrsqrt.f32 %v3041_v12  ;;  %v4412_v55 = vld [vmem:[%s7645_s11 + $0x18] sm:$0xff]  ;;  %vm3162_vm7 = vweird.f32 %v3041_v12 }
 0xaeb   : > { %v3328_v30 = vpop.f32.mrf.mxu1  ;;  %4415 = vmatpush.bf16.msra.mxu3 %v4412_v55  ;;  %4138 = vmatpush.bf16.msra.mxu0 %v4412_v55 }
 0xaec   : > { %v3475_v15 = vmul.f32 2.1237322e-06, %v7033_v34  ;;  %v3486_v24 = vmul.f32 3.8918573e-05, %v7033_v34  ;;  %v7038_v61 = vadd.f32 %v7021_v60, %v3328_v30 }
 0xaee   : > { %v3476_v39 = vadd.f32 0.00028619796, %v3475_v15  ;;  %v3487_v23 = vadd.f32 0.001143296, %v3486_v24  ;;  %v7041_v48 = vmul.f32 0.70710677, %v7038_v61 }
 0xaf0   : > { %v4879_v36 = vpop.eup %4878  ;;  %v3488_v16 = vmul.f32 %v3487_v23, %v7033_v34  ;;  %v3513_v42 = vmul.f32 %v7041_v48, %v7041_v48  ;;  %v3477_v49 = vmul.f32 %v3476_v39, %v7033_v34 }
 0xaf1   : > { %v3157_v8 = vmul.f32 %v4879_v36, %v3041_v12  ;;  %vm3163_vm6 = vweird.f32 %v4879_v36  ;;  %v3235_v12 = vmul.f32 %v6928_v51, %v3216_v17 }
 0xaf2   : > { %v3489_v6 = vadd.f32 0.014752088, %v3488_v16  ;;  %v7047_v47 = vmin.f32 %v3513_v42, 16.0  ;;  %v3478_v11 = vadd.f32 0.0036580483, %v3477_v49  ;;  %vm3164_vm8 = vmor %vm3162_vm7, %vm3163_vm6 }
 0xaf3   : > { %v3158_v25 = vmul.f32 %v4879_v36, %v3157_v8  ;;  %v4411_v8 = vld [vmem:[%s7645_s11 + $0x10] sm:$0xff] }
 0xaf4   : > { %v3490_v57 = vmul.f32 %v3489_v6, %v7033_v34  ;;  %v3515_v33 = vmul.f32 2.1237322e-06, %v7047_v47  ;;  %v3526_v38 = vmul.f32 3.8918573e-05, %v7047_v47  ;;  %v3479_v15 = vmul.f32 %v3478_v11, %v7033_v34  ;;  %4416 = vmatpush.bf16.msra.mxu3 %v4411_v8  ;;  %4139 = vmatpush.bf16.msra.mxu0 %v4411_v8  ;;  %v4409_v8 = vld [vmem:[%s7645_s11] sm:$0xff] }
 0xaf5   : > { %v3159_v58 = vmul.f32 0.5, %v3158_v25 }
 0xaf6   : > { %v3491_v0 = vadd.f32 0.112945676, %v3490_v57  ;;  %v3516_v50 = vadd.f32 0.00028619796, %v3515_v33  ;;  %v3527_v2 = vadd.f32 0.001143296, %v3526_v38  ;;  %v3254_v33 = vadd.f32 %v6934_v43, %v3235_v12 }
 0xaf7   : > { %v3160_v52 = vsub.f32 1.5, %v3159_v58  ;;  %v3480_v42 = vadd.f32 0.05243302, %v3479_v15  ;;  %v4410_v57 = vld [vmem:[%s7645_s11 + $0x8] sm:$0xff] }
 0xaf8   : > { %v3492_v40 = vmul.f32 %v3491_v0, %v7033_v34  ;;  %v3517_v1 = vmul.f32 %v3516_v50, %v7047_v47  ;;  %v3528_v30 = vmul.f32 %v3527_v2, %v7047_v47  ;;  %4417 = vmatpush.bf16.msra.mxu3 %v4410_v57  ;;  %4140 = vmatpush.bf16.msra.mxu0 %v4410_v57 }
 0xaf9   : > { %v3161_v22 = vmul.f32 %v4879_v36, %v3160_v52  ;;  %v3481_v27 = vmul.f32 %v3480_v42, %v7033_v34 }
 0xafa   : > { %v3493_v24 = vadd.f32 0.4994258, %v3492_v40  ;;  %v3518_v9 = vadd.f32 0.0036580483, %v3517_v1  ;;  %v3529_v39 = vadd.f32 0.014752088, %v3528_v30 }
 0xafb   : > { %v3165_v13 = vsel %vm3164_vm8, %v4879_v36, %v3161_v22  ;;  %v3482_v17 = vadd.f32 0.18741608, %v3481_v27 }
 0xafc   : > { %v3494_v23 = vmul.f32 %v3493_v24, %v7033_v34  ;;  %v3217_v16 = vmul.f32 %v3165_v13, %v6946_v21  ;;  %v3530_v53 = vmul.f32 %v3529_v39, %v7047_v47  ;;  %v3519_v6 = vmul.f32 %v3518_v9, %v7047_v47  ;;  %4418 = vmatpush.bf16.msra.mxu3 %v4409_v8 }
 0xafd   : > { %v3483_v9 = vmul.f32 %v3482_v17, %v7033_v34  ;;  %4141 = vmatpush.bf16.msra.mxu0 %v4409_v8 }
 0xafe   : > { %v3495_v49 = vadd.f32 1.0, %v3494_v23  ;;  %v3236_v36 = vmul.f32 %v6928_v51, %v3217_v16  ;;  %v3531_v25 = vadd.f32 0.112945676, %v3530_v53  ;;  %v3520_v58 = vadd.f32 0.05243302, %v3519_v6 }
 0xb00   : > { %4880 = vrcp.f32 %v3495_v49  ;;  %v3532_v21 = vmul.f32 %v3531_v25, %v7047_v47  ;;  %v3255_v38 = vadd.f32 %v6934_v43, %v3236_v36  ;;  %v3004_v50 = vpop.xlane.xlu0 %3003  ;;  %v3521_v40 = vmul.f32 %v3520_v58, %v7047_v47 }
 0xb01   : > { %v3026_v30 = vmul.f32 %v3004_v50, %v7702_v28  ;;  %v3507_v53 = vand.u32 2147483648, %v3495_v49  ;;  %v3505_v42 = vand.u32 2147483647, %v3495_v49  ;;  %vm3501_vm10 = vweird.f32 %v3495_v49 }
 0xb02   : > { %v3533_v11 = vadd.f32 0.4994258, %v3532_v21  ;;  %v3265_v0 = vpack.c.bf16 %v3255_v38, %v3254_v33  ;;  %v3522_v39 = vadd.f32 0.18741608, %v3521_v40  ;;  %v3484_v21 = vadd.f32 1.1283791, %v3483_v9 }
 0xb03   : > { %v7094_v6 = vadd.f32 1e-05, %v3026_v30  ;;  %vm3506_vm12 = vcmp.eq.f32.partialorder %v3505_v42, 8.507059e+37 }
 0xb04   : > { %v3534_v52 = vmul.f32 %v3533_v11, %v7047_v47  ;;  %4356 = vmatmul.msk.bf16.gmra.mxu1 %vm460_vm0, %v3265_v0  ;;  %v3523_v57 = vmul.f32 %v3522_v39, %v7047_v47  ;;  %v3508_v11 = vor.u32 1.1754944e-38, %v3507_v53  ;;  %v3485_v17 = vmul.f32 %v3484_v21, %v7028_v63 }
 0xb05   : > { %vm3172_vm3 = vweird.f32 %v7094_v6 }
 0xb06   : > { %v4881_v2 = vpop.eup %4880  ;;  %v3331_v55 = vpop.f32.mrf.mxu1  ;;  %v7079_v1 = vadd.f32 1.0, %v3534_v52  ;;  %v3524_v40 = vadd.f32 1.1283791, %v3523_v57 }
 0xb07   : > { %v3497_v22 = vmul.f32 %v4881_v2, %v3495_v49  ;;  %v7083_v15 = vadd.f32 %v7021_v60, %v3331_v55  ;;  %vm3502_vm9 = vweird.f32 %v4881_v2 }
 0xb08   : > { %v3007_v24 = vpop.xlane.xlu2 %3006  ;;  %4882 = vrcp.f32 %v7079_v1  ;;  %vm3503_vm11 = vmor %vm3501_vm10, %vm3502_vm9  ;;  %v3547_v30 = vand.u32 2147483648, %v7079_v1  ;;  %vm3541_vm14 = vweird.f32 %v7079_v1 }
 0xb09   : > { %v3498_v13 = vsub.f32 1.0, %v3497_v22  ;;  %v7088_v23 = vmul.f32 0.70710677, %v7083_v15  ;;  %v3027_v12 = vmul.f32 %v3007_v24, %v7702_v28  ;;  %4884 = vrsqrt.f32 %v7094_v6 }
 0xb0a   : > { %v3545_v22 = vand.u32 2147483647, %v7079_v1 }
 0xb0b   : > { %v3499_v16 = vmul.f32 %v4881_v2, %v3498_v13  ;;  %v3553_v36 = vmul.f32 %v7088_v23, %v7088_v23  ;;  %v7098_v25 = vadd.f32 1e-05, %v3027_v12 }
 0xb0c   : > { %vm3546_vm1 = vcmp.eq.f32.partialorder %v3545_v22, 8.507059e+37 }
 0xb0d   : > { %v3500_v34 = vadd.f32 %v4881_v2, %v3499_v16  ;;  %v7101_v27 = vmin.f32 %v3553_v36, 16.0  ;;  %4886 = vrsqrt.f32 %v7098_v25  ;;  %v3525_v36 = vmul.f32 %v3524_v40, %v7041_v48 }
 0xb0e   : > { %v3333_v58 = vpop.f32.mrf.mxu1  ;;  %v4883_v33 = vpop.eup %4882  ;;  %vm3182_vm7 = vweird.f32 %v7098_v25 }
 0xb0f   : > { %v3504_v38 = vsel %vm3503_vm11, %v4881_v2, %v3500_v34  ;;  %v3537_v0 = vmul.f32 %v4883_v33, %v7079_v1  ;;  %v3555_v49 = vmul.f32 2.1237322e-06, %v7101_v27  ;;  %v3566_v50 = vmul.f32 3.8918573e-05, %v7101_v27  ;;  %v7119_v12 = vpop.eup %4884 }
 0xb10   : > { %v3509_v52 = vsel %vm3506_vm12, %v3508_v11, %v3504_v38  ;;  %v7109_v47 = vadd.f32 %v7021_v60, %v3333_v58  ;;  %vm3542_vm13 = vweird.f32 %v4883_v33  ;;  %v3548_v34 = vor.u32 1.1754944e-38, %v3547_v30 }
 0xb11   : > { %v3538_v2 = vsub.f32 1.0, %v3537_v0  ;;  %v3556_v55 = vadd.f32 0.00028619796, %v3555_v49  ;;  %v3567_v24 = vadd.f32 0.001143296, %v3566_v50  ;;  %v3510_v13 = vmul.f32 %v3509_v52, %v3485_v17  ;;  %vm3543_vm15 = vmor %vm3541_vm14, %vm3542_vm13 }
 0xb12   : > { %v7116_v16 = vmul.f32 0.70710677, %v7109_v47  ;;  %v3167_v50 = vmul.f32 %v7119_v12, %v7094_v6  ;;  %vm3173_vm4 = vweird.f32 %v7119_v12 }
 0xb13   : > { %v3539_v9 = vmul.f32 %v4883_v33, %v3538_v2  ;;  %v3557_v39 = vmul.f32 %v3556_v55, %v7101_v27  ;;  %v3568_v53 = vmul.f32 %v3567_v24, %v7101_v27  ;;  %v7122_v42 = vpop.eup %4886  ;;  %v4361_v58 = vclamps-f32 %v3510_v13, 1.0  ;;  %vm7192_vm6 = vmor %vm3172_vm3, %vm3173_vm4 }
 0xb14   : > { %v3593_v57 = vmul.f32 %v7116_v16, %v7116_v16  ;;  %v3177_v17 = vmul.f32 %v7122_v42, %v7098_v25  ;;  %v3363_v55 = vmul.f32 0.5, %v7025_v54  ;;  %vm3183_vm5 = vweird.f32 %v7122_v42 }
 0xb15   : > { %v3540_v63 = vadd.f32 %v4883_v33, %v3539_v9  ;;  %v3569_v21 = vadd.f32 0.014752088, %v3568_v53  ;;  %v3558_v11 = vadd.f32 0.0036580483, %v3557_v39  ;;  %v4035_v22 = vadd.f32 1.0, %v4361_v58  ;;  %vm7202_vm8 = vmor %vm3182_vm7, %vm3183_vm5 }
 0xb16   : > { %v3336_v8 = vpop.f32.mrf.mxu1  ;;  %v7129_v1 = vmin.f32 %v3593_v57, 16.0 }
 0xb17   : > { %v3544_v38 = vsel %vm3543_vm15, %v4883_v33, %v3540_v63  ;;  %v3570_v49 = vmul.f32 %v3569_v21, %v7101_v27  ;;  %v7132_v52 = vadd.f32 %v7021_v60, %v3336_v8  ;;  %v3559_v24 = vmul.f32 %v3558_v11, %v7101_v27 }
 0xb18   : > { %v3549_v0 = vsel %vm3546_vm1, %v3548_v34, %v3544_v38  ;;  %v3595_v33 = vmul.f32 2.1237322e-06, %v7129_v1  ;;  %v3606_v2 = vmul.f32 3.8918573e-05, %v7129_v1  ;;  %v3364_v63 = vmul.f32 0.5, %v7038_v61 }
 0xb19   : > { %v3550_v48 = vmul.f32 %v3549_v0, %v3525_v36  ;;  %v3571_v40 = vadd.f32 0.112945676, %v3570_v49  ;;  %v7144_v53 = vmul.f32 0.70710677, %v7132_v52  ;;  %v3168_v36 = vmul.f32 %v7119_v12, %v3167_v50  ;;  %v3010_v49 = vpop.xlane.xlu1 %3009 }
 0xb1a   : > { %v3596_v9 = vadd.f32 0.00028619796, %v3595_v33  ;;  %v3607_v39 = vadd.f32 0.001143296, %v3606_v2  ;;  %v3178_v34 = vmul.f32 %v7122_v42, %v3177_v17  ;;  %v4051_v38 = vmul.f32 %v4035_v22, %v3363_v55 }
 0xb1b   : > { %v4362_v30 = vclamps-f32 %v3550_v48, 1.0  ;;  %v3572_v13 = vmul.f32 %v3571_v40, %v7101_v27  ;;  %v3633_v58 = vmul.f32 %v7144_v53, %v7144_v53  ;;  %v3560_v0 = vadd.f32 0.05243302, %v3559_v24 }
 0xb1c   : > { %v3597_v54 = vmul.f32 %v3596_v9, %v7129_v1  ;;  %v3608_v57 = vmul.f32 %v3607_v39, %v7129_v1  ;;  %v3169_v33 = vmul.f32 0.5, %v3168_v36  ;;  %v3028_v55 = vmul.f32 %v3010_v49, %v7702_v28 }
 0xb1d   : > { %v4036_v8 = vadd.f32 1.0, %v4362_v30  ;;  %v3573_v21 = vadd.f32 0.4994258, %v3572_v13  ;;  %v7154_v17 = vmin.f32 %v3633_v58, 16.0  ;;  %v3179_v13 = vmul.f32 0.5, %v3178_v34 }
 0xb1e   : > { %v3598_v61 = vadd.f32 0.0036580483, %v3597_v54  ;;  %v3609_v40 = vadd.f32 0.014752088, %v3608_v57  ;;  %v3338_v2 = vpop.f32.mrf.mxu1  ;;  %v3561_v22 = vmul.f32 %v3560_v0, %v7101_v27  ;;  %v7169_v57 = vadd.f32 1e-05, %v3028_v55 }
 0xb1f   : > { %v4052_v11 = vmul.f32 %v4036_v8, %v3364_v63  ;;  %v3574_v48 = vmul.f32 %v3573_v21, %v7101_v27  ;;  %v3646_v39 = vmul.f32 3.8918573e-05, %v7154_v17  ;;  %v7166_v63 = vadd.f32 %v7021_v60, %v3338_v2 }
 0xb20   : > { %v3610_v9 = vmul.f32 %v3609_v40, %v7129_v1  ;;  %v3599_v24 = vmul.f32 %v3598_v61, %v7129_v1  ;;  %v3170_v8 = vsub.f32 1.5, %v3169_v33  ;;  %v3635_v34 = vmul.f32 2.1237322e-06, %v7154_v17 }
 0xb21   : > { %v4066_v50 = vpack.c.bf16 %v4052_v11, %v4051_v38  ;;  %v7156_v30 = vadd.f32 1.0, %v3574_v48  ;;  %v3180_v21 = vsub.f32 1.5, %v3179_v13  ;;  %v3647_v54 = vadd.f32 0.001143296, %v3646_v39 }
 0xb22   : > { %v3611_v36 = vadd.f32 0.112945676, %v3610_v9  ;;  %v3562_v58 = vadd.f32 0.18741608, %v3561_v22  ;;  %v3600_v38 = vadd.f32 0.05243302, %v3599_v24  ;;  %v3171_v48 = vmul.f32 %v7119_v12, %v3170_v8 }
 0xb23   : > { %4392 = vmatmul.msk.bf16.vlgmr.msra.gmra.mxu3 %vm4109_vm2, %v4066_v50  ;;  %4888 = vrcp.f32 %v7156_v30  ;;  %v3648_v0 = vmul.f32 %v3647_v54, %v7154_v17  ;;  %v7176_v49 = vmul.f32 0.70710677, %v7166_v63  ;;  %v3636_v40 = vadd.f32 0.00028619796, %v3635_v34  ;;  %v2971_v54 = vpop.xlane.xlu1 %2970 }
 0xb24   : > { %v3612_v11 = vmul.f32 %v3611_v36, %v7129_v1  ;;  %v3181_v33 = vmul.f32 %v7122_v42, %v3180_v21  ;;  %4890 = vrsqrt.f32 %v7169_v57  ;;  %v3563_v9 = vmul.f32 %v3562_v58, %v7101_v27 }
 0xb25   : > { %v3649_v2 = vadd.f32 0.014752088, %v3648_v0  ;;  %v3673_v13 = vmul.f32 %v7176_v49, %v7176_v49  ;;  %v3601_v22 = vmul.f32 %v3600_v38, %v7129_v1  ;;  %v3637_v6 = vmul.f32 %v3636_v40, %v7154_v17 }
 0xb26   : > { %v3613_v61 = vadd.f32 0.4994258, %v3612_v11  ;;  %v3175_v25 = vsel %vm7192_vm6, %v7119_v12, %v3171_v48  ;;  %v3185_v58 = vsel %vm7202_vm8, %v7122_v42, %v3181_v33  ;;  %v3564_v0 = vadd.f32 1.1283791, %v3563_v9 }
 0xb27   : > { %v3650_v8 = vmul.f32 %v3649_v2, %v7154_v17  ;;  %v7198_v36 = vmin.f32 %v3673_v13, 16.0  ;;  %v3602_v2 = vadd.f32 0.18741608, %v3601_v22  ;;  %v3587_v40 = vand.u32 2147483648, %v7156_v30 }
 0xb28   : > { %v3614_v24 = vmul.f32 %v3613_v61, %v7129_v1  ;;  %v3015_v12 = vmul.f32 %v2971_v54, %v7702_v28  ;;  %v3218_v9 = vmul.f32 %v3175_v25, %v6961_v41  ;;  %vm3581_vm10 = vweird.f32 %v7156_v30 }
 0xb29   : > { %v4889_v50 = vpop.eup %4888  ;;  %v3651_v38 = vadd.f32 0.112945676, %v3650_v8  ;;  %v3675_v11 = vmul.f32 2.1237322e-06, %v7198_v36  ;;  %v3686_v33 = vmul.f32 3.8918573e-05, %v7198_v36  ;;  %v3603_v34 = vmul.f32 %v3602_v2, %v7129_v1 }
 0xb2a   : > { %v3577_v55 = vmul.f32 %v4889_v50, %v7156_v30  ;;  %v7206_v21 = vadd.f32 1.0, %v3614_v24  ;;  %v7217_v13 = vpop.eup %4890  ;;  %vm3582_vm9 = vweird.f32 %v4889_v50  ;;  %v3638_v24 = vadd.f32 0.0036580483, %v3637_v6 }
 0xb2b   : > { %v3676_v42 = vadd.f32 0.00028619796, %v3675_v11  ;;  %v3585_v22 = vand.u32 2147483647, %v7156_v30  ;;  %vm7226_vm11 = vmor %vm3581_vm10, %vm3582_vm9  ;;  %v3187_v6 = vmul.f32 %v7217_v13, %v7169_v57  ;;  %v3687_v54 = vadd.f32 0.001143296, %v3686_v33 }
 0xb2c   : > { %v3578_v27 = vsub.f32 1.0, %v3577_v55  ;;  %4892 = vrcp.f32 %v7206_v21  ;;  %v3652_v55 = vmul.f32 %v3651_v38, %v7154_v17  ;;  %v3013_v38 = vpop.xlane.xlu0 %3012  ;;  %v3565_v41 = vmul.f32 %v3564_v0, %v7088_v23 }
 0xb2d   : > { %v3677_v11 = vmul.f32 %v3676_v42, %v7198_v36  ;;  %v3688_v1 = vmul.f32 %v3687_v54, %v7198_v36  ;;  %vm3586_vm12 = vcmp.eq.f32.partialorder %v3585_v22, 8.507059e+37  ;;  %v3029_v23 = vmul.f32 %v3013_v38, %v7702_v28 }
 0xb2e   : > { %v3579_v61 = vmul.f32 %v4889_v50, %v3578_v27  ;;  %v3653_v39 = vadd.f32 0.4994258, %v3652_v55  ;;  %v3219_v27 = vmul.f32 %v3185_v58, %v6970_v62  ;;  %v3588_v55 = vor.u32 1.1754944e-38, %v3587_v40 }
 0xb2f   : > { %v3639_v62 = vmul.f32 %v3638_v24, %v7154_v17  ;;  %v7241_v58 = vadd.f32 1e-05, %v3015_v12  ;;  %v3604_v0 = vadd.f32 1.1283791, %v3603_v34  ;;  %v3689_v42 = vadd.f32 0.014752088, %v3688_v1 }
 0xb30   : > { %v3580_v48 = vadd.f32 %v4889_v50, %v3579_v61  ;;  %v3654_v30 = vmul.f32 %v3653_v39, %v7154_v17  ;;  %v3678_v40 = vadd.f32 0.0036580483, %v3677_v11  ;;  %v3238_v24 = vmul.f32 %v6928_v51, %v3219_v27 }
 0xb31   : > { %v3625_v12 = vand.u32 2147483647, %v7206_v21  ;;  %v3627_v22 = vand.u32 2147483648, %v7206_v21  ;;  %v3640_v8 = vadd.f32 0.05243302, %v3639_v62  ;;  %v3690_v34 = vmul.f32 %v3689_v42, %v7198_v36 }
 0xb32   : > { %v3584_v25 = vsel %vm7226_vm11, %v4889_v50, %v3580_v48  ;;  %v4893_v61 = vpop.eup %4892  ;;  %v7244_v33 = vadd.f32 1.0, %v3654_v30  ;;  %v3188_v48 = vmul.f32 %v7217_v13, %v3187_v6  ;;  %v3605_v6 = vmul.f32 %v3604_v0, %v7116_v16 }
 0xb33   : > { %v3617_v2 = vmul.f32 %v4893_v61, %v7206_v21  ;;  %v3589_v50 = vsel %vm3586_vm12, %v3588_v55, %v3584_v25  ;;  %vm3622_vm13 = vweird.f32 %v4893_v61  ;;  %vm3621_vm14 = vweird.f32 %v7206_v21 }
 0xb34   : > { %4894 = vrcp.f32 %v7244_v33  ;;  %v3590_v54 = vmul.f32 %v3589_v50, %v3565_v41  ;;  %v3189_v25 = vmul.f32 0.5, %v3188_v48  ;;  %v3237_v30 = vmul.f32 %v6928_v51, %v3218_v9  ;;  %vm3623_vm15 = vmor %vm3621_vm14, %vm3622_vm13 }
 0xb35   : > { %v3618_v39 = vsub.f32 1.0, %v3617_v2  ;;  %4896 = vrsqrt.f32 %v7241_v58  ;;  %v3679_v11 = vmul.f32 %v3678_v40, %v7198_v36  ;;  %v3691_v55 = vadd.f32 0.112945676, %v3690_v34 }
 0xb36   : > { %v7258_v1 = vadd.f32 1e-05, %v3029_v23  ;;  %vm3626_vm1 = vcmp.eq.f32.partialorder %v3625_v12, 8.507059e+37  ;;  %v3628_v41 = vor.u32 1.1754944e-38, %v3627_v22  ;;  %v3641_v62 = vmul.f32 %v3640_v8, %v7154_v17 }
 0xb37   : > { %v3619_v38 = vmul.f32 %v4893_v61, %v3618_v39  ;;  %v3257_v2 = vadd.f32 %v6934_v43, %v3238_v24  ;;  %v4363_v16 = vclamps-f32 %v3590_v54, 1.0  ;;  %v3692_v0 = vmul.f32 %v3691_v55, %v7198_v36 }
 0xb38   : > { %4898 = vrsqrt.f32 %v7258_v1  ;;  %v3256_v48 = vadd.f32 %v6934_v43, %v3237_v30  ;;  %v3190_v39 = vsub.f32 1.5, %v3189_v25  ;;  %v3680_v40 = vadd.f32 0.05243302, %v3679_v11 }
 0xb39   : > { %v3620_v27 = vadd.f32 %v4893_v61, %v3619_v38  ;;  %v3693_v24 = vadd.f32 0.4994258, %v3692_v0  ;;  %v3642_v12 = vadd.f32 0.18741608, %v3641_v62  ;;  %v3366_v55 = vmul.f32 0.5, %v7109_v47 }
 0xb3a   : > { %v7262_v50 = vpop.eup %4894  ;;  %v3266_v8 = vpack.c.bf16 %v3257_v2, %v3256_v48  ;;  %vm3193_vm3 = vweird.f32 %v7217_v13  ;;  %v3191_v30 = vmul.f32 %v7217_v13, %v3190_v39  ;;  %v3681_v11 = vmul.f32 %v3680_v40, %v7198_v36 }
 0xb3b   : > { %v3624_v21 = vsel %vm3623_vm15, %v4893_v61, %v3620_v27  ;;  %v7266_v51 = vpop.eup %4896  ;;  %v3657_v23 = vmul.f32 %v7262_v50, %v7244_v33  ;;  %v4037_v61 = vadd.f32 1.0, %v4363_v16  ;;  %v3694_v38 = vmul.f32 %v3693_v24, %v7198_v36 }
 0xb3c   : > { %v3629_v9 = vsel %vm3626_vm1, %v3628_v41, %v3624_v21  ;;  %v3057_v34 = vmul.f32 %v7266_v51, %v7241_v58  ;;  %v3365_v27 = vmul.f32 0.5, %v7083_v15  ;;  %4357 = vmatmul.msk.bf16.gmra.mxu1 %vm460_vm0, %v3266_v8  ;;  %v3643_v2 = vmul.f32 %v3642_v12, %v7154_v17 }
 0xb3d   : > { %v3630_v42 = vmul.f32 %v3629_v9, %v3605_v6  ;;  %v3658_v22 = vsub.f32 1.0, %v3657_v23  ;;  %v7281_v41 = vadd.f32 1.0, %v3694_v38  ;;  %vm3192_vm4 = vweird.f32 %v7169_v57 }
 0xb3e   : > { %v4899_v6 = vpop.eup %4898  ;;  %v4053_v47 = vmul.f32 %v4037_v61, %v3365_v27  ;;  %v3058_v21 = vmul.f32 %v7266_v51, %v3057_v34  ;;  %vm3662_vm5 = vweird.f32 %v7262_v50  ;;  %vm7292_vm6 = vmor %vm3192_vm4, %vm3193_vm3  ;;  %v3667_v48 = vand.u32 2147483648, %v7244_v33 }
 0xb3f   : > { %v4364_v54 = vclamps-f32 %v3630_v42, 1.0  ;;  %v3659_v43 = vmul.f32 %v7262_v50, %v3658_v22  ;;  %v3197_v15 = vmul.f32 %v4899_v6, %v7258_v1  ;;  %4900 = vrcp.f32 %v7281_v41 }
 0xb40   : > { %v3195_v42 = vsel %vm7292_vm6, %v7217_v13, %v3191_v30  ;;  %v3682_v39 = vadd.f32 0.18741608, %v3681_v11  ;;  %vm3661_vm7 = vweird.f32 %v7244_v33  ;;  %v3665_v40 = vand.u32 2147483647, %v7244_v33 }
 0xb41   : > { %v4038_v25 = vadd.f32 1.0, %v4364_v54  ;;  %v3660_v0 = vadd.f32 %v7262_v50, %v3659_v43  ;;  %v3198_v17 = vmul.f32 %v4899_v6, %v3197_v15  ;;  %v3644_v22 = vadd.f32 1.1283791, %v3643_v2  ;;  %vm7305_vm8 = vmor %vm3661_vm7, %vm3662_vm5 }
 0xb42   : > { %vm3203_vm9 = vweird.f32 %v4899_v6  ;;  %v3668_v54 = vor.u32 1.1754944e-38, %v3667_v48  ;;  %v3220_v38 = vmul.f32 %v3195_v42, %v6983_v3  ;;  %v3683_v34 = vmul.f32 %v3682_v39, %v7198_v36  ;;  %v4940_v36 = vld [vmem:[%s7641_s7] ss:$0 sm:$0xff] }
 0xb43   : > { %v4054_v16 = vmul.f32 %v4038_v25, %v3366_v55  ;;  %v3199_v24 = vmul.f32 0.5, %v3198_v17  ;;  %v3664_v13 = vsel %vm7305_vm8, %v7262_v50, %v3660_v0  ;;  %vm3666_vm10 = vcmp.eq.f32.partialorder %v3665_v40, 8.507059e+37  ;;  %v4941_v17 = vld [vmem:[%s7642_s8] ss:$0 sm:$0xff] }
 0xb44   : > { %vm3202_vm11 = vweird.f32 %v7258_v1  ;;  %v3669_v43 = vsel %vm3666_vm10, %v3668_v54, %v3664_v13  ;;  %v3645_v50 = vmul.f32 %v3644_v22, %v7144_v53  ;;  %v3707_v2 = vand.u32 2147483648, %v7281_v41 }
 0xb45   : > { %v2968_v62 = vpop.xlane.xlu2 %2967  ;;  %v4067_v23 = vpack.c.bf16 %v4054_v16, %v4053_v47  ;;  %v3200_v61 = vsub.f32 1.5, %v3199_v24  ;;  %v4901_v33 = vpop.eup %4900  ;;  %vm3204_vm12 = vmor %vm3202_vm11, %vm3203_vm9  ;;  %v3239_v15 = vmul.f32 %v4940_v36, %v3220_v38  ;;  %vm3063_vm14 = vweird.f32 %v7266_v51 }
 0xb46   : > { %v3014_v57 = vmul.f32 %v2968_v62, %v7702_v28  ;;  %v3059_v28 = vmul.f32 0.5, %v3058_v21  ;;  %v3697_v27 = vmul.f32 %v4901_v33, %v7281_v41  ;;  %v3684_v62 = vadd.f32 1.1283791, %v3683_v34 }
 0xb47   : > { %4393 = vmatmul.msk.bf16.gmra.mxu3 %vm4109_vm2, %v4067_v23  ;;  %v3201_v55 = vmul.f32 %v4899_v6, %v3200_v61  ;;  %v3670_v16 = vmul.f32 %v3669_v43, %v3645_v50  ;;  %vm3702_vm13 = vweird.f32 %v4901_v33  ;;  %v3705_v21 = vand.u32 2147483647, %v7281_v41 }
 0xb48   : > { %v7303_v12 = vadd.f32 1e-05, %v3014_v57  ;;  %v3060_v25 = vsub.f32 1.5, %v3059_v28  ;;  %v3698_v30 = vsub.f32 1.0, %v3697_v27  ;;  %vm3701_vm15 = vweird.f32 %v7281_v41 }
 0xb49   : > { %v3205_v11 = vsel %vm3204_vm12, %v4899_v6, %v3201_v55  ;;  %vm3062_vm1 = vweird.f32 %v7241_v58  ;;  %vm3703_vm3 = vmor %vm3701_vm15, %vm3702_vm13  ;;  %v3258_v57 = vadd.f32 %v4941_v17, %v3239_v15  ;;  %v4365_v42 = vclamps-f32 %v3670_v16, 1.0 }
 0xb4a   : > { %4902 = vrsqrt.f32 %v7303_v12  ;;  %v3221_v3 = vmul.f32 %v3205_v11, %v6996_v29  ;;  %v3699_v1 = vmul.f32 %v4901_v33, %v3698_v30  ;;  %v3061_v53 = vmul.f32 %v7266_v51, %v3060_v25  ;;  %vm3064_vm5 = vmor %vm3062_vm1, %vm3063_vm14 }
 0xb4b   : > { %v3708_v29 = vor.u32 1.1754944e-38, %v3707_v2  ;;  %v3685_v39 = vmul.f32 %v3684_v62, %v7176_v49  ;;  %vm3706_vm4 = vcmp.eq.f32.partialorder %v3705_v21, 8.507059e+37  ;;  %v4039_v13 = vadd.f32 1.0, %v4365_v42 }
 0xb4c   : > { %v3240_v6 = vmul.f32 %v4940_v36, %v3221_v3  ;;  %v3700_v9 = vadd.f32 %v4901_v33, %v3699_v1  ;;  %v3065_v58 = vsel %vm3064_vm5, %v7266_v51, %v3061_v53  ;;  %vm3052_vm7 = vweird.f32 %v7303_v12 }
 0xb4d   : > { %v3207_v54 = vmul.f32 %v3065_v58, %v6990_v46  ;;  %v3368_v38 = vmul.f32 0.5, %v7166_v63 }
 0xb4e   : > { %v3259_v23 = vadd.f32 %v4941_v17, %v3240_v6  ;;  %v3704_v40 = vsel %vm3703_vm3, %v4901_v33, %v3700_v9  ;;  %v3367_v33 = vmul.f32 0.5, %v7132_v52 }
 0xb4f   : > { %v3709_v41 = vsel %vm3706_vm4, %v3708_v29, %v3704_v40  ;;  %v3226_v43 = vmul.f32 %v4940_v36, %v3207_v54 }
 0xb50   : > { %v4903_v47 = vpop.eup %4902  ;;  %v3267_v24 = vpack.c.bf16 %v3259_v23, %v3258_v57  ;;  %v3710_v8 = vmul.f32 %v3709_v41, %v3685_v39  ;;  %v4055_v27 = vmul.f32 %v4039_v13, %v3367_v33 }
 0xb51   : > { %v3047_v0 = vmul.f32 %v4903_v47, %v7303_v12  ;;  %vm3053_vm6 = vweird.f32 %v4903_v47  ;;  %v3245_v52 = vadd.f32 %v4941_v17, %v3226_v43 }
 0xb52   : > { %4358 = vmatmul.msk.bf16.gmra.mxu1 %vm460_vm0, %v3267_v24  ;;  %v4366_v61 = vclamps-f32 %v3710_v8, 1.0  ;;  %vm3054_vm8 = vmor %vm3052_vm7, %vm3053_vm6 }
 0xb53   : > { %v3048_v48 = vmul.f32 %v4903_v47, %v3047_v0 }
 0xb54   : > { %v4040_v34 = vadd.f32 1.0, %v4366_v61 }
 0xb55   : > { %v3049_v22 = vmul.f32 0.5, %v3048_v48 }
 0xb56   : > { %v4056_v55 = vmul.f32 %v4040_v34, %v3368_v38 }
 0xb57   : > { %v3050_v28 = vsub.f32 1.5, %v3049_v22 }
 0xb58   : > { %v4068_v46 = vpack.c.bf16 %v4056_v55, %v4055_v27 }
 0xb59   : > { %v3051_v49 = vmul.f32 %v4903_v47, %v3050_v28 }
 0xb5a   : > { %4394 = vmatmul.msk.bf16.gmra.mxu3 %vm4109_vm2, %v4068_v46 }
 0xb5b   : > { %v3055_v51 = vsel %vm3054_vm8, %v4903_v47, %v3051_v49 }
 0xb5c   : > { %v3206_v25 = vmul.f32 %v3055_v51, %v7006_v14 }
 0xb5e   : > { %v3341_v50 = vpop.f32.mrf.mxu1  ;;  %v3225_v11 = vmul.f32 %v4940_v36, %v3206_v25 }
 0xb5f   : > { %v7344_v30 = vadd.f32 %v7021_v60, %v3341_v50 }
 0xb60   : > { %v3244_v62 = vadd.f32 %v4941_v17, %v3225_v11 }
 0xb61   : > { %v7347_v12 = vmul.f32 0.70710677, %v7344_v30 }
 0xb62   : > { %v3260_v2 = vpack.c.bf16 %v3245_v52, %v3244_v62 }
 0xb63   : > { %v3713_v63 = vmul.f32 %v7347_v12, %v7347_v12 }
 0xb64   : > { %4351 = vmatmul.msk.bf16.vlgmr.msrb.gmra.mxu0 %vm460_vm0, %v3260_v2 }
 0xb65   : > { %v3714_v3 = vmin.f32 %v3713_v63, 16.0 }
 0xb66   : > { %v3343_v16 = vpop.f32.mrf.mxu1 }
 0xb67   : > { %v3715_v14 = vmul.f32 2.1237322e-06, %v3714_v3  ;;  %v3726_v15 = vmul.f32 3.8918573e-05, %v3714_v3  ;;  %v7354_v36 = vadd.f32 %v7021_v60, %v3343_v16 }
 0xb69   : > { %v3727_v47 = vadd.f32 0.001143296, %v3726_v15  ;;  %v3716_v1 = vadd.f32 0.00028619796, %v3715_v14  ;;  %v7357_v53 = vmul.f32 0.70710677, %v7354_v36 }
 0xb6b   : > { %v3728_v21 = vmul.f32 %v3727_v47, %v3714_v3  ;;  %v3753_v0 = vmul.f32 %v7357_v53, %v7357_v53  ;;  %v3717_v9 = vmul.f32 %v3716_v1, %v3714_v3 }
 0xb6d   : > { %v3729_v6 = vadd.f32 0.014752088, %v3728_v21  ;;  %v3754_v17 = vmin.f32 %v3753_v0, 16.0  ;;  %v3718_v42 = vadd.f32 0.0036580483, %v3717_v9 }
 0xb6f   : > { %v3730_v29 = vmul.f32 %v3729_v6, %v3714_v3  ;;  %v3755_v23 = vmul.f32 2.1237322e-06, %v3754_v17  ;;  %v3766_v48 = vmul.f32 3.8918573e-05, %v3754_v17  ;;  %v3719_v8 = vmul.f32 %v3718_v42, %v3714_v3 }
 0xb71   : > { %v3731_v57 = vadd.f32 0.112945676, %v3730_v29  ;;  %v3756_v40 = vadd.f32 0.00028619796, %v3755_v23  ;;  %v3767_v41 = vadd.f32 0.001143296, %v3766_v48 }
 0xb72   : > { %v3720_v38 = vadd.f32 0.05243302, %v3719_v8 }
 0xb73   : > { %v3732_v39 = vmul.f32 %v3731_v57, %v3714_v3  ;;  %v3757_v24 = vmul.f32 %v3756_v40, %v3754_v17  ;;  %v3768_v22 = vmul.f32 %v3767_v41, %v3754_v17 }
 0xb74   : > { %v3721_v55 = vmul.f32 %v3720_v38, %v3714_v3 }
 0xb75   : > { %v3733_v58 = vadd.f32 0.4994258, %v3732_v39  ;;  %v3758_v13 = vadd.f32 0.0036580483, %v3757_v24  ;;  %v3769_v61 = vadd.f32 0.014752088, %v3768_v22 }
 0xb76   : > { %v3722_v52 = vadd.f32 0.18741608, %v3721_v55  ;;  %v7376_v22 = vld [vmem:[%s7644_s10] ss:$0 sm:$0xff] }
 0xb77   : > { %v3734_v28 = vmul.f32 %v3733_v58, %v3714_v3  ;;  %v3759_v49 = vmul.f32 %v3758_v13, %v3754_v17  ;;  %v3770_v33 = vmul.f32 %v3769_v61, %v3754_v17 }
 0xb78   : > { %v3723_v16 = vmul.f32 %v3722_v52, %v3714_v3 }
 0xb79   : > { %v3735_v54 = vadd.f32 1.0, %v3734_v28  ;;  %v3771_v34 = vadd.f32 0.112945676, %v3770_v33  ;;  %v3760_v51 = vadd.f32 0.05243302, %v3759_v49 }
 0xb7a   : > { %v3724_v57 = vadd.f32 1.1283791, %v3723_v16 }
 0xb7b   : > { %4904 = vrcp.f32 %v3735_v54  ;;  %v3772_v27 = vmul.f32 %v3771_v34, %v3754_v17  ;;  %v3761_v46 = vmul.f32 %v3760_v51, %v3754_v17  ;;  %v3747_v6 = vand.u32 2147483648, %v3735_v54 }
 0xb7c   : > { %vm3741_vm10 = vweird.f32 %v3735_v54  ;;  %v3745_v0 = vand.u32 2147483647, %v3735_v54  ;;  %v3725_v8 = vmul.f32 %v3724_v57, %v7347_v12  ;;  %v3369_v57 = vmul.f32 0.5, %v7344_v30 }
 0xb7d   : > { %v3773_v43 = vadd.f32 0.4994258, %v3772_v27  ;;  %v3762_v47 = vadd.f32 0.18741608, %v3761_v46  ;;  %v3748_v42 = vor.u32 1.1754944e-38, %v3747_v6 }
 0xb7e   : > { %vm3746_vm12 = vcmp.eq.f32.partialorder %v3745_v0, 8.507059e+37 }
 0xb7f   : > { %v3774_v11 = vmul.f32 %v3773_v43, %v3754_v17  ;;  %v3763_v29 = vmul.f32 %v3762_v47, %v3754_v17 }
 0xb81   : > { %v4905_v25 = vpop.eup %4904  ;;  %v3346_v62 = vpop.f32.mrf.mxu1  ;;  %v3775_v2 = vadd.f32 1.0, %v3774_v11  ;;  %v3764_v24 = vadd.f32 1.1283791, %v3763_v29 }
 0xb82   : > { %v3737_v50 = vmul.f32 %v4905_v25, %v3735_v54  ;;  %v7362_v14 = vadd.f32 %v7021_v60, %v3346_v62  ;;  %vm3742_vm9 = vweird.f32 %v4905_v25 }
 0xb83   : > { %4906 = vrcp.f32 %v3775_v2  ;;  %vm3743_vm11 = vmor %vm3741_vm10, %vm3742_vm9  ;;  %v3785_v54 = vand.u32 2147483647, %v3775_v2  ;;  %v3787_v49 = vand.u32 2147483648, %v3775_v2  ;;  %vm3781_vm14 = vweird.f32 %v3775_v2 }
 0xb84   : > { %v3738_v63 = vsub.f32 1.0, %v3737_v50  ;;  %v7365_v1 = vmul.f32 0.70710677, %v7362_v14 }
 0xb85   : > { %v3788_v50 = vor.u32 1.1754944e-38, %v3787_v49  ;;  %vm3786_vm1 = vcmp.eq.f32.partialorder %v3785_v54, 8.507059e+37 }
 0xb86   : > { %v3739_v15 = vmul.f32 %v4905_v25, %v3738_v63  ;;  %v3793_v9 = vmul.f32 %v7365_v1, %v7365_v1 }
 0xb88   : > { %v3740_v21 = vadd.f32 %v4905_v25, %v3739_v15  ;;  %v7369_v23 = vmin.f32 %v3793_v9, 16.0 }
 0xb89   : > { %v4907_v48 = vpop.eup %4906  ;;  %v3348_v3 = vpop.f32.mrf.mxu1 }
 0xb8a   : > { %v3744_v60 = vsel %vm3743_vm11, %v4905_v25, %v3740_v21  ;;  %v3777_v39 = vmul.f32 %v4907_v48, %v3775_v2  ;;  %v3795_v40 = vmul.f32 2.1237322e-06, %v7369_v23  ;;  %v3806_v41 = vmul.f32 3.8918573e-05, %v7369_v23 }
 0xb8b   : > { %v3749_v58 = vsel %vm3746_vm12, %v3748_v42, %v3744_v60  ;;  %v7379_v17 = vadd.f32 %v7376_v22, %v3348_v3  ;;  %vm3782_vm13 = vweird.f32 %v4907_v48  ;;  %v3765_v25 = vmul.f32 %v3764_v24, %v7357_v53 }
 0xb8c   : > { %v3778_v28 = vsub.f32 1.0, %v3777_v39  ;;  %v3796_v13 = vadd.f32 0.00028619796, %v3795_v40  ;;  %v3807_v61 = vadd.f32 0.001143296, %v3806_v41  ;;  %v3750_v38 = vmul.f32 %v3749_v58, %v3725_v8  ;;  %vm3783_vm15 = vmor %vm3781_vm14, %vm3782_vm13 }
 0xb8d   : > { %v7383_v33 = vmul.f32 0.70710677, %v7379_v17  ;;  %v3370_v42 = vmul.f32 0.5, %v7354_v36 }
 0xb8e   : > { %v3779_v34 = vmul.f32 %v4907_v48, %v3778_v28  ;;  %v3808_v51 = vmul.f32 %v3807_v61, %v7369_v23  ;;  %v3797_v12 = vmul.f32 %v3796_v13, %v7369_v23  ;;  %v4367_v11 = vclamps-f32 %v3750_v38, 1.0 }
 0xb8f   : > { %v3833_v27 = vmul.f32 %v7383_v33, %v7383_v33 }
 0xb90   : > { %v3780_v55 = vadd.f32 %v4907_v48, %v3779_v34  ;;  %v3809_v43 = vadd.f32 0.014752088, %v3808_v51  ;;  %v3798_v16 = vadd.f32 0.0036580483, %v3797_v12  ;;  %v4041_v53 = vadd.f32 1.0, %v4367_v11 }
 0xb91   : > { %v7390_v46 = vmin.f32 %v3833_v27, 16.0 }
 0xb92   : > { %v3784_v52 = vsel %vm3783_vm15, %v4907_v48, %v3780_v55  ;;  %v3810_v62 = vmul.f32 %v3809_v43, %v7369_v23  ;;  %v3799_v39 = vmul.f32 %v3798_v16, %v7369_v23  ;;  %v4057_v24 = vmul.f32 %v4041_v53, %v3369_v57 }
 0xb93   : > { %v3789_v63 = vsel %vm3786_vm1, %v3788_v50, %v3784_v52  ;;  %v3835_v15 = vmul.f32 2.1237322e-06, %v7390_v46  ;;  %v3846_v47 = vmul.f32 3.8918573e-05, %v7390_v46  ;;  %v7412_v52 = vld [vmem:[%s7646_s12] ss:$0 sm:$0xff] }
 0xb94   : > { %v3790_v2 = vmul.f32 %v3789_v63, %v3765_v25  ;;  %v3811_v21 = vadd.f32 0.112945676, %v3810_v62  ;;  %v3800_v30 = vadd.f32 0.05243302, %v3799_v39 }
 0xb95   : > { %v3836_v6 = vadd.f32 0.00028619796, %v3835_v15  ;;  %v3847_v0 = vadd.f32 0.001143296, %v3846_v47 }
 0xb96   : > { %v4368_v9 = vclamps-f32 %v3790_v2, 1.0  ;;  %v3812_v29 = vmul.f32 %v3811_v21, %v7369_v23  ;;  %v3801_v34 = vmul.f32 %v3800_v30, %v7369_v23 }
 0xb97   : > { %v3837_v60 = vmul.f32 %v3836_v6, %v7390_v46  ;;  %v3848_v48 = vmul.f32 %v3847_v0, %v7390_v46 }
 0xb98   : > { %v4042_v3 = vadd.f32 1.0, %v4368_v9  ;;  %v3813_v40 = vadd.f32 0.4994258, %v3812_v29  ;;  %v3802_v43 = vadd.f32 0.18741608, %v3801_v34 }
 0xb99   : > { %v3838_v41 = vadd.f32 0.0036580483, %v3837_v60  ;;  %v3849_v58 = vadd.f32 0.014752088, %v3848_v48 }
 0xb9a   : > { %v4058_v8 = vmul.f32 %v4042_v3, %v3370_v42  ;;  %v3814_v28 = vmul.f32 %v3813_v40, %v7369_v23  ;;  %v3803_v15 = vmul.f32 %v3802_v43, %v7369_v23 }
 0xb9b   : > { %v3850_v13 = vmul.f32 %v3849_v58, %v7390_v46  ;;  %v3839_v49 = vmul.f32 %v3838_v41, %v7390_v46 }
 0xb9c   : > { %v4069_v61 = vpack.c.bf16 %v4058_v8, %v4057_v24  ;;  %v3815_v54 = vadd.f32 1.0, %v3814_v28  ;;  %v3804_v9 = vadd.f32 1.1283791, %v3803_v15 }
 0xb9d   : > { %v3851_v38 = vadd.f32 0.112945676, %v3850_v13  ;;  %v3840_v51 = vadd.f32 0.05243302, %v3839_v49 }
 0xb9e   : > { %4908 = vrcp.f32 %v3815_v54  ;;  %4395 = vmatmul.msk.bf16.gmra.mxu3 %vm4109_vm2, %v4069_v61  ;;  %v3827_v16 = vand.u32 2147483648, %v3815_v54  ;;  %v3825_v6 = vand.u32 2147483647, %v3815_v54  ;;  %vm3821_vm4 = vweird.f32 %v3815_v54 }
 0xb9f   : > { %v3852_v36 = vmul.f32 %v3851_v38, %v7390_v46  ;;  %v3841_v50 = vmul.f32 %v3840_v51, %v7390_v46  ;;  %v3372_v51 = vmul.f32 0.5, %v7379_v17 }
 0xba0   : > { %v3828_v57 = vor.u32 1.1754944e-38, %v3827_v16  ;;  %vm3826_vm6 = vcmp.eq.f32.partialorder %v3825_v6, 8.507059e+37 }
 0xba1   : > { %v3853_v27 = vadd.f32 0.4994258, %v3852_v36  ;;  %v3842_v21 = vadd.f32 0.18741608, %v3841_v50 }
 0xba3   : > { %v3854_v55 = vmul.f32 %v3853_v27, %v7390_v46  ;;  %v3843_v60 = vmul.f32 %v3842_v21, %v7390_v46 }
 0xba4   : > { %v4909_v12 = vpop.eup %4908 }
 0xba5   : > { %v3817_v25 = vmul.f32 %v4909_v12, %v3815_v54  ;;  %v3855_v11 = vadd.f32 1.0, %v3854_v55  ;;  %vm3822_vm3 = vweird.f32 %v4909_v12  ;;  %v3844_v41 = vadd.f32 1.1283791, %v3843_v60 }
 0xba6   : > { %v4148_v62 = vpop.f32.mrf.mxu3  ;;  %vm3823_vm5 = vmor %vm3821_vm4, %vm3822_vm3 }
 0xba7   : > { %v3818_v63 = vsub.f32 1.0, %v3817_v25  ;;  %4910 = vrcp.f32 %v3855_v11  ;;  %v4149_v47 = vadd.f32 %v7412_v52, %v4148_v62  ;;  %v3867_v58 = vand.u32 2147483648, %v3855_v11 }
 0xba8   : > { %v3865_v13 = vand.u32 2147483647, %v3855_v11  ;;  %vm3861_vm8 = vweird.f32 %v3855_v11  ;;  %v3845_v54 = vmul.f32 %v3844_v41, %v7383_v33 }
 0xba9   : > { %v3819_v2 = vmul.f32 %v4909_v12, %v3818_v63  ;;  %v4185_v0 = vadd.f32 %v4149_v47, %v6740_v26  ;;  %v3805_v26 = vmul.f32 %v3804_v9, %v7365_v1  ;;  %v3868_v61 = vor.u32 1.1754944e-38, %v3867_v58 }
 0xbaa   : > { %vm3866_vm10 = vcmp.eq.f32.partialorder %v3865_v13, 8.507059e+37 }
 0xbab   : > { %v3820_v53 = vadd.f32 %v4909_v12, %v3819_v2  ;;  %4201 = vst.msk [vmem:[%s7421_s18 + $0x10] sm:$0xff] %vm460_vm0, %v4185_v0 }
 0xbad   : > { %v4911_v23 = vpop.eup %4910  ;;  %v3824_v29 = vsel %vm3823_vm5, %v4909_v12, %v3820_v53 }
 0xbae   : > { %v3857_v48 = vmul.f32 %v4911_v23, %v3855_v11  ;;  %v4150_v42 = vpop.f32.mrf.mxu3  ;;  %v3829_v3 = vsel %vm3826_vm6, %v3828_v57, %v3824_v29  ;;  %vm3862_vm7 = vweird.f32 %v4911_v23 }
 0xbaf   : > { %v4151_v39 = vadd.f32 %v7412_v52, %v4150_v42  ;;  %v3830_v8 = vmul.f32 %v3829_v3, %v3805_v26  ;;  %vm3863_vm9 = vmor %vm3861_vm8, %vm3862_vm7 }
 0xbb0   : > { %v3858_v40 = vsub.f32 1.0, %v3857_v48 }
 0xbb1   : > { %v4186_v24 = vadd.f32 %v4151_v39, %v6746_v20  ;;  %v4369_v30 = vclamps-f32 %v3830_v8, 1.0  ;;  %v3371_v20 = vmul.f32 0.5, %v7362_v14 }
 0xbb2   : > { %v3859_v28 = vmul.f32 %v4911_v23, %v3858_v40 }
 0xbb3   : > { %4202 = vst.msk [vmem:[%s7421_s18 + $0x18] sm:$0xff] %vm460_vm0, %v4186_v24  ;;  %v4043_v36 = vadd.f32 1.0, %v4369_v30 }
 0xbb4   : > { %v3860_v46 = vadd.f32 %v4911_v23, %v3859_v28 }
 0xbb5   : > { %v4059_v55 = vmul.f32 %v4043_v36, %v3371_v20 }
 0xbb6   : > { %v3864_v49 = vsel %vm3863_vm9, %v4911_v23, %v3860_v46 }
 0xbb7   : > { %v3869_v1 = vsel %vm3866_vm10, %v3868_v61, %v3864_v49 }
 0xbb8   : > { %v3870_v38 = vmul.f32 %v3869_v1, %v3845_v54 }
 0xbb9   : > { %v3351_v43 = vpop.f32.mrf.mxu1 }
 0xbba   : > { %v4370_v34 = vclamps-f32 %v3870_v38, 1.0  ;;  %v7436_v25 = vadd.f32 %v7376_v22, %v3351_v43 }
 0xbbc   : > { %v4044_v27 = vadd.f32 1.0, %v4370_v34  ;;  %v7439_v33 = vmul.f32 0.70710677, %v7436_v25 }
 0xbbe   : > { %v4060_v12 = vmul.f32 %v4044_v27, %v3372_v51  ;;  %v3873_v11 = vmul.f32 %v7439_v33, %v7439_v33 }
 0xbc0   : > { %v4070_v50 = vpack.c.bf16 %v4060_v12, %v4059_v55  ;;  %v3874_v62 = vmin.f32 %v3873_v11, 16.0 }
 0xbc1   : > { %v3353_v14 = vpop.f32.mrf.mxu1 }
 0xbc2   : > { %4396 = vmatmul.msk.bf16.gmra.mxu3 %vm4109_vm2, %v4070_v50  ;;  %v3875_v63 = vmul.f32 2.1237322e-06, %v3874_v62  ;;  %v3886_v17 = vmul.f32 3.8918573e-05, %v3874_v62  ;;  %v7445_v15 = vadd.f32 %v7376_v22, %v3353_v14 }
 0xbc4   : > { %v3876_v47 = vadd.f32 0.00028619796, %v3875_v63  ;;  %v3887_v2 = vadd.f32 0.001143296, %v3886_v17  ;;  %v7448_v16 = vmul.f32 0.70710677, %v7445_v15 }
 0xbc6   : > { %v3877_v21 = vmul.f32 %v3876_v47, %v3874_v62  ;;  %v3888_v6 = vmul.f32 %v3887_v2, %v3874_v62  ;;  %v3913_v53 = vmul.f32 %v7448_v16, %v7448_v16 }
 0xbc8   : > { %v3878_v23 = vadd.f32 0.0036580483, %v3877_v21  ;;  %v3889_v29 = vadd.f32 0.014752088, %v3888_v6  ;;  %v7453_v57 = vmin.f32 %v3913_v53, 16.0 }
 0xbca   : > { %v4153_v0 = vpop.f32.mrf.mxu3  ;;  %v3879_v48 = vmul.f32 %v3878_v23, %v3874_v62  ;;  %v3890_v42 = vmul.f32 %v3889_v29, %v3874_v62  ;;  %v3915_v3 = vmul.f32 2.1237322e-06, %v7453_v57  ;;  %v3926_v39 = vmul.f32 3.8918573e-05, %v7453_v57 }
 0xbcb   : > { %v4154_v9 = vadd.f32 %v7412_v52, %v4153_v0 }
 0xbcc   : > { %v3891_v26 = vadd.f32 0.112945676, %v3890_v42  ;;  %v3916_v40 = vadd.f32 0.00028619796, %v3915_v3  ;;  %v3927_v41 = vadd.f32 0.001143296, %v3926_v39 }
 0xbcd   : > { %v4187_v60 = vadd.f32 %v4154_v9, %v6752_v18  ;;  %v3880_v58 = vadd.f32 0.05243302, %v3879_v48 }
 0xbce   : > { %v3892_v24 = vmul.f32 %v3891_v26, %v3874_v62  ;;  %v3917_v13 = vmul.f32 %v3916_v40, %v7453_v57  ;;  %v3928_v18 = vmul.f32 %v3927_v41, %v7453_v57 }
 0xbcf   : > { %4203 = vst.msk [vmem:[%s7421_s18 + $0x20] sm:$0xff] %vm460_vm0, %v4187_v60  ;;  %v3356_v8 = vpop.f32.mrf.mxu1  ;;  %v3881_v34 = vmul.f32 %v3880_v58, %v3874_v62 }
 0xbd0   : > { %v7463_v46 = vadd.f32 %v7376_v22, %v3356_v8  ;;  %v3893_v30 = vadd.f32 0.4994258, %v3892_v24  ;;  %v3918_v54 = vadd.f32 0.0036580483, %v3917_v13  ;;  %v3929_v49 = vadd.f32 0.014752088, %v3928_v18 }
 0xbd2   : > { %v4155_v28 = vpop.f32.mrf.mxu3  ;;  %v3894_v38 = vmul.f32 %v3893_v30, %v3874_v62  ;;  %v7468_v36 = vmul.f32 0.70710677, %v7463_v46  ;;  %v3919_v20 = vmul.f32 %v3918_v54, %v7453_v57  ;;  %v3930_v51 = vmul.f32 %v3929_v49, %v7453_v57 }
 0xbd3   : > { %v4156_v61 = vadd.f32 %v7412_v52, %v4155_v28 }
 0xbd4   : > { %v3895_v27 = vadd.f32 1.0, %v3894_v38  ;;  %v3953_v55 = vmul.f32 %v7468_v36, %v7468_v36  ;;  %v3931_v12 = vadd.f32 0.112945676, %v3930_v51  ;;  %v3920_v43 = vadd.f32 0.05243302, %v3919_v20 }
 0xbd5   : > { %v4188_v1 = vadd.f32 %v4156_v61, %v6758_v31  ;;  %v3882_v31 = vadd.f32 0.18741608, %v3881_v34 }
 0xbd6   : > { %4912 = vrcp.f32 %v3895_v27  ;;  %v3932_v11 = vmul.f32 %v3931_v12, %v7453_v57  ;;  %v7477_v14 = vmin.f32 %v3953_v55, 16.0  ;;  %v3921_v47 = vmul.f32 %v3920_v43, %v7453_v57 }
 0xbd7   : > { %4204 = vst.msk [vmem:[%s7421_s18 + $0x28] sm:$0xff] %vm460_vm0, %v4188_v1  ;;  %v3358_v50 = vpop.f32.mrf.mxu1  ;;  %v3883_v6 = vmul.f32 %v3882_v31, %v3874_v62  ;;  %v3907_v24 = vand.u32 2147483648, %v3895_v27  ;;  %v3905_v54 = vand.u32 2147483647, %v3895_v27  ;;  %vm3901_vm12 = vweird.f32 %v3895_v27 }
 0xbd8   : > { %v7480_v63 = vadd.f32 %v7376_v22, %v3358_v50  ;;  %v3933_v17 = vadd.f32 0.4994258, %v3932_v11  ;;  %v3955_v2 = vmul.f32 2.1237322e-06, %v7477_v14  ;;  %v3966_v21 = vmul.f32 3.8918573e-05, %v7477_v14 }
 0xbd9   : > { %v3922_v3 = vadd.f32 0.18741608, %v3921_v47  ;;  %v3884_v41 = vadd.f32 1.1283791, %v3883_v6  ;;  %v3908_v50 = vor.u32 1.1754944e-38, %v3907_v24  ;;  %vm3906_vm14 = vcmp.eq.f32.partialorder %v3905_v54, 8.507059e+37 }
 0xbda   : > { %v3934_v0 = vmul.f32 %v3933_v17, %v7453_v57  ;;  %v7487_v53 = vmul.f32 0.70710677, %v7480_v63  ;;  %v3956_v23 = vadd.f32 0.00028619796, %v3955_v2  ;;  %v3967_v29 = vadd.f32 0.001143296, %v3966_v21 }
 0xbdb   : > { %v3923_v49 = vmul.f32 %v3922_v3, %v7453_v57  ;;  %v3885_v51 = vmul.f32 %v3884_v41, %v7439_v33 }
 0xbdc   : > { %v4913_v9 = vpop.eup %4912  ;;  %v7489_v48 = vadd.f32 1.0, %v3934_v0  ;;  %v3968_v39 = vmul.f32 %v3967_v29, %v7477_v14  ;;  %v3993_v26 = vmul.f32 %v7487_v53, %v7487_v53  ;;  %v3957_v8 = vmul.f32 %v3956_v23, %v7477_v14 }
 0xbdd   : > { %v3897_v60 = vmul.f32 %v4913_v9, %v3895_v27  ;;  %v4158_v42 = vpop.f32.mrf.mxu3  ;;  %vm3902_vm11 = vweird.f32 %v4913_v9  ;;  %v3924_v17 = vadd.f32 1.1283791, %v3923_v49 }
 0xbde   : > { %v4159_v62 = vadd.f32 %v7412_v52, %v4158_v42  ;;  %4914 = vrcp.f32 %v7489_v48  ;;  %v7497_v28 = vmin.f32 %v3993_v26, 16.0  ;;  %v3969_v18 = vadd.f32 0.014752088, %v3968_v39  ;;  %vm3903_vm13 = vmor %vm3901_vm12, %vm3902_vm11 }
 0xbdf   : > { %v3898_v58 = vsub.f32 1.0, %v3897_v60  ;;  %v3947_v2 = vand.u32 2147483648, %v7489_v48  ;;  %v3945_v42 = vand.u32 2147483647, %v7489_v48  ;;  %v3925_v24 = vmul.f32 %v3924_v17, %v7448_v16 }
 0xbe0   : > { %v4189_v61 = vadd.f32 %v4159_v62, %v6764_v44  ;;  %v3995_v1 = vmul.f32 2.1237322e-06, %v7497_v28  ;;  %v3970_v34 = vmul.f32 %v3969_v18, %v7477_v14  ;;  %v4006_v20 = vmul.f32 3.8918573e-05, %v7497_v28 }
 0xbe1   : > { %v3321_v40 = vpop.f32.mrf.mxu0  ;;  %v3899_v13 = vmul.f32 %v4913_v9, %v3898_v58  ;;  %v3958_v44 = vadd.f32 0.0036580483, %v3957_v8  ;;  %vm3941_vm1 = vweird.f32 %v7489_v48  ;;  %vm3946_vm4 = vcmp.eq.f32.partialorder %v3945_v42, 8.507059e+37 }
 0xbe2   : > { %v7501_v30 = vadd.f32 %v7376_v22, %v3321_v40  ;;  %4205 = vst.msk [vmem:[%s7421_s18 + $0x30] sm:$0xff] %vm460_vm0, %v4189_v61  ;;  %v3996_v55 = vadd.f32 0.00028619796, %v3995_v1  ;;  %v3971_v31 = vadd.f32 0.112945676, %v3970_v34  ;;  %v3948_v61 = vor.u32 1.1754944e-38, %v3947_v2 }
 0xbe3   : > { %v3900_v38 = vadd.f32 %v4913_v9, %v3899_v13  ;;  %v4007_v27 = vadd.f32 0.001143296, %v4006_v20 }
 0xbe4   : > { %v7512_v12 = vmul.f32 0.70710677, %v7501_v30  ;;  %v4915_v57 = vpop.eup %4914  ;;  %v3972_v21 = vmul.f32 %v3971_v31, %v7477_v14  ;;  %v3997_v6 = vmul.f32 %v3996_v55, %v7497_v28 }
 0xbe5   : > { %v3904_v43 = vsel %vm3903_vm13, %v4913_v9, %v3900_v38  ;;  %v4160_v11 = vpop.f32.mrf.mxu3  ;;  %v3937_v47 = vmul.f32 %v4915_v57, %v7489_v48  ;;  %v4008_v0 = vmul.f32 %v4007_v27, %v7497_v28  ;;  %v3959_v9 = vmul.f32 %v3958_v44, %v7477_v14 }
 0xbe6   : > { %v3909_v33 = vsel %vm3906_vm14, %v3908_v50, %v3904_v43  ;;  %v3393_v29 = vmul.f32 %v7512_v12, %v7512_v12  ;;  %v4161_v60 = vadd.f32 %v7412_v52, %v4160_v11  ;;  %vm3942_vm15 = vweird.f32 %v4915_v57 }
 0xbe7   : > { %v3938_v23 = vsub.f32 1.0, %v3937_v47  ;;  %v3973_v3 = vadd.f32 0.4994258, %v3972_v21  ;;  %v3998_v39 = vadd.f32 0.0036580483, %v3997_v6  ;;  %v3910_v26 = vmul.f32 %v3909_v33, %v3885_v51  ;;  %vm3943_vm3 = vmor %vm3941_vm1, %vm3942_vm15 }
 0xbe8   : > { %v4009_v40 = vadd.f32 0.014752088, %v4008_v0  ;;  %v7524_v41 = vmin.f32 %v3393_v29, 16.0  ;;  %v4190_v13 = vadd.f32 %v4161_v60, %v6778_v59  ;;  %v3960_v54 = vadd.f32 0.05243302, %v3959_v9 }
 0xbe9   : > { %v3939_v62 = vmul.f32 %v4915_v57, %v3938_v23  ;;  %v3323_v58 = vpop.f32.mrf.mxu0  ;;  %v3974_v8 = vmul.f32 %v3973_v3, %v7477_v14  ;;  %v3999_v38 = vmul.f32 %v3998_v39, %v7497_v28  ;;  %v4371_v48 = vclamps-f32 %v3910_v26, 1.0 }
 0xbea   : > { %v4010_v49 = vmul.f32 %v4009_v40, %v7497_v28  ;;  %v3406_v34 = vmul.f32 3.8918573e-05, %v7524_v41  ;;  %4206 = vst.msk [vmem:[%s7421_s18 + $0x38] sm:$0xff] %vm460_vm0, %v4190_v13  ;;  %v7539_v16 = vadd.f32 %v7376_v22, %v3323_v58  ;;  %v3395_v44 = vmul.f32 2.1237322e-06, %v7524_v41 }
 0xbeb   : > { %v3940_v18 = vadd.f32 %v4915_v57, %v3939_v62  ;;  %v7532_v1 = vadd.f32 1.0, %v3974_v8  ;;  %v3961_v50 = vmul.f32 %v3960_v54, %v7477_v14  ;;  %v4000_v31 = vadd.f32 0.05243302, %v3999_v38 }
 0xbec   : > { %v4011_v20 = vadd.f32 0.112945676, %v4010_v49  ;;  %v3407_v27 = vadd.f32 0.001143296, %v3406_v34  ;;  %v7546_v11 = vmul.f32 0.70710677, %v7539_v16 }
 0xbed   : > { %v3944_v59 = vsel %vm3943_vm3, %v4915_v57, %v3940_v18  ;;  %4916 = vrcp.f32 %v7532_v1  ;;  %v4045_v22 = vadd.f32 1.0, %v4371_v48  ;;  %v3396_v47 = vadd.f32 0.00028619796, %v3395_v44 }
 0xbee   : > { %v3949_v51 = vsel %vm3946_vm4, %v3948_v61, %v3944_v59  ;;  %v4012_v43 = vmul.f32 %v4011_v20, %v7497_v28  ;;  %v3408_v2 = vmul.f32 %v3407_v27, %v7524_v41  ;;  %v3433_v33 = vmul.f32 %v7546_v11, %v7546_v11 }
 0xbef   : > { %v3950_v55 = vmul.f32 %v3949_v51, %v3925_v24  ;;  %v3373_v21 = vmul.f32 0.5, %v7436_v25  ;;  %v3374_v6 = vmul.f32 0.5, %v7445_v15  ;;  %v3962_v29 = vadd.f32 0.18741608, %v3961_v50 }
 0xbf0   : > { %v4013_v57 = vadd.f32 0.4994258, %v4012_v43  ;;  %v4001_v60 = vmul.f32 %v4000_v31, %v7497_v28  ;;  %v3409_v42 = vadd.f32 0.014752088, %v3408_v2  ;;  %v7555_v3 = vmin.f32 %v3433_v33, 16.0 }
 0xbf1   : > { %v4372_v17 = vclamps-f32 %v3950_v55, 1.0  ;;  %v4061_v39 = vmul.f32 %v4045_v22, %v3373_v21  ;;  %v3397_v58 = vmul.f32 %v3396_v47, %v7524_v41  ;;  %v3963_v18 = vmul.f32 %v3962_v29, %v7477_v14 }
 0xbf2   : > { %v4014_v23 = vmul.f32 %v4013_v57, %v7497_v28  ;;  %v3410_v25 = vmul.f32 %v3409_v42, %v7524_v41  ;;  %v3435_v15 = vmul.f32 2.1237322e-06, %v7555_v3  ;;  %v3446_v13 = vmul.f32 3.8918573e-05, %v7555_v3 }
 0xbf3   : > { %v4046_v0 = vadd.f32 1.0, %v4372_v17  ;;  %v4917_v9 = vpop.eup %4916  ;;  %v4002_v61 = vadd.f32 0.18741608, %v4001_v60  ;;  %v3987_v34 = vand.u32 2147483648, %v7532_v1  ;;  %v3398_v48 = vadd.f32 0.0036580483, %v3397_v58 }
 0xbf4   : > { %v3977_v62 = vmul.f32 %v4917_v9, %v7532_v1  ;;  %v4015_v40 = vadd.f32 1.0, %v4014_v23  ;;  %vm3982_vm5 = vweird.f32 %v4917_v9  ;;  %v3411_v49 = vadd.f32 0.112945676, %v3410_v25 }
 0xbf5   : > { %v4062_v26 = vmul.f32 %v4046_v0, %v3374_v6  ;;  %v3436_v38 = vadd.f32 0.00028619796, %v3435_v15  ;;  %v3447_v59 = vadd.f32 0.001143296, %v3446_v13  ;;  %vm3981_vm6 = vweird.f32 %v7532_v1 }
 0xbf6   : > { %v3978_v8 = vsub.f32 1.0, %v3977_v62  ;;  %4918 = vrcp.f32 %v4015_v40  ;;  %v3985_v51 = vand.u32 2147483647, %v7532_v1  ;;  %v3412_v44 = vmul.f32 %v3411_v49, %v7524_v41  ;;  %vm3983_vm7 = vmor %vm3981_vm6, %vm3982_vm5 }
 0xbf7   : > { %v4071_v24 = vpack.c.bf16 %v4062_v26, %v4061_v39  ;;  %v3437_v14 = vmul.f32 %v3436_v38, %v7555_v3  ;;  %v3448_v55 = vmul.f32 %v3447_v59, %v7555_v3  ;;  %v3964_v43 = vadd.f32 1.1283791, %v3963_v18 }
 0xbf8   : > { %v3979_v54 = vmul.f32 %v4917_v9, %v3978_v8  ;;  %v4003_v31 = vmul.f32 %v4002_v61, %v7497_v28  ;;  %v3413_v27 = vadd.f32 0.4994258, %v3412_v44  ;;  %v3988_v17 = vor.u32 1.1754944e-38, %v3987_v34 }
 0xbf9   : > { %4397 = vmatmul.msk.bf16.gmra.mxu3 %vm4109_vm2, %v4071_v24  ;;  %v3399_v57 = vmul.f32 %v3398_v48, %v7524_v41  ;;  %v3449_v47 = vadd.f32 0.014752088, %v3448_v55  ;;  %vm3986_vm8 = vcmp.eq.f32.partialorder %v3985_v51, 8.507059e+37  ;;  %v3438_v21 = vadd.f32 0.0036580483, %v3437_v14 }
 0xbfa   : > { %v3980_v20 = vadd.f32 %v4917_v9, %v3979_v54  ;;  %v3414_v33 = vmul.f32 %v3413_v27, %v7524_v41  ;;  %v3965_v0 = vmul.f32 %v3964_v43, %v7468_v36  ;;  %v4004_v23 = vadd.f32 1.1283791, %v4003_v31 }
 0xbfb   : > { %v3450_v6 = vmul.f32 %v3449_v47, %v7555_v3  ;;  %v4027_v29 = vand.u32 2147483648, %v4015_v40  ;;  %v3400_v28 = vadd.f32 0.05243302, %v3399_v57  ;;  %v4025_v62 = vand.u32 2147483647, %v4015_v40 }
 0xbfc   : > { %v3984_v50 = vsel %vm3983_vm7, %v4917_v9, %v3980_v20  ;;  %v4919_v22 = vpop.eup %4918  ;;  %v3415_v60 = vadd.f32 1.0, %v3414_v33  ;;  %v3439_v58 = vmul.f32 %v3438_v21, %v7555_v3  ;;  %vm4021_vm10 = vweird.f32 %v4015_v40 }
 0xbfd   : > { %v4017_v2 = vmul.f32 %v4919_v22, %v4015_v40  ;;  %v3989_v1 = vsel %vm3986_vm8, %v3988_v17, %v3984_v50  ;;  %v3451_v42 = vadd.f32 0.112945676, %v3450_v6  ;;  %vm4022_vm9 = vweird.f32 %v4919_v22 }
 0xbfe   : > { %v3990_v39 = vmul.f32 %v3989_v1, %v3965_v0  ;;  %4920 = vrcp.f32 %v3415_v60  ;;  %v4005_v24 = vmul.f32 %v4004_v23, %v7487_v53  ;;  %vm4023_vm11 = vmor %vm4021_vm10, %vm4022_vm9  ;;  %v4028_v36 = vor.u32 1.1754944e-38, %v4027_v29 }
 0xbff   : > { %v4018_v9 = vsub.f32 1.0, %v4017_v2  ;;  %v3452_v15 = vmul.f32 %v3451_v42, %v7555_v3  ;;  %v3401_v8 = vmul.f32 %v3400_v28, %v7524_v41  ;;  %vm4026_vm12 = vcmp.eq.f32.partialorder %v4025_v62, 8.507059e+37 }
 0xc00   : > { %v4373_v13 = vclamps-f32 %v3990_v39, 1.0  ;;  %v3440_v49 = vadd.f32 0.05243302, %v3439_v58  ;;  %v3375_v14 = vmul.f32 0.5, %v7463_v46  ;;  %v3376_v55 = vmul.f32 0.5, %v7480_v63 }
 0xc01   : > { %v4019_v26 = vmul.f32 %v4919_v22, %v4018_v9  ;;  %v3453_v61 = vadd.f32 0.4994258, %v3452_v15  ;;  %v3402_v59 = vadd.f32 0.18741608, %v3401_v8  ;;  %v3427_v57 = vand.u32 2147483648, %v3415_v60 }
 0xc02   : > { %v4047_v40 = vadd.f32 1.0, %v4373_v13  ;;  %v3441_v53 = vmul.f32 %v3440_v49, %v7555_v3  ;;  %vm3421_vm14 = vweird.f32 %v3415_v60  ;;  %v3425_v33 = vand.u32 2147483647, %v3415_v60 }
 0xc03   : > { %v4020_v25 = vadd.f32 %v4919_v22, %v4019_v26  ;;  %v3454_v34 = vmul.f32 %v3453_v61, %v7555_v3  ;;  %v3403_v31 = vmul.f32 %v3402_v59, %v7524_v41  ;;  %v3428_v6 = vor.u32 1.1754944e-38, %v3427_v57 }
 0xc04   : > { %v4921_v48 = vpop.eup %4920  ;;  %v4063_v27 = vmul.f32 %v4047_v40, %v3375_v14  ;;  %v3442_v47 = vadd.f32 0.18741608, %v3441_v53  ;;  %vm3426_vm1 = vcmp.eq.f32.partialorder %v3425_v33, 8.507059e+37  ;;  %v3362_v49 = vmul.f32 0.5, %v7539_v16 }
 0xc05   : > { %v4024_v18 = vsel %vm4023_vm11, %v4919_v22, %v4020_v25  ;;  %v3417_v51 = vmul.f32 %v4921_v48, %v3415_v60  ;;  %v3455_v44 = vadd.f32 1.0, %v3454_v34  ;;  %vm3422_vm13 = vweird.f32 %v4921_v48 }
 0xc06   : > { %v4029_v54 = vsel %vm4026_vm12, %v4028_v36, %v4024_v18  ;;  %vm3423_vm15 = vmor %vm3421_vm14, %vm3422_vm13  ;;  %v3404_v21 = vadd.f32 1.1283791, %v3403_v31  ;;  %v3443_v41 = vmul.f32 %v3442_v47, %v7555_v3 }
 0xc07   : > { %v4030_v38 = vmul.f32 %v4029_v54, %v4005_v24  ;;  %v3418_v50 = vsub.f32 1.0, %v3417_v51  ;;  %4922 = vrcp.f32 %v3455_v44  ;;  %v3467_v42 = vand.u32 2147483648, %v3455_v44 }
 0xc08   : > { %v3405_v9 = vmul.f32 %v3404_v21, %v7512_v12  ;;  %v3444_v28 = vadd.f32 1.1283791, %v3443_v41  ;;  %v3465_v60 = vand.u32 2147483647, %v3455_v44  ;;  %vm3461_vm4 = vweird.f32 %v3455_v44 }
 0xc09   : > { %v4374_v20 = vclamps-f32 %v4030_v38, 1.0  ;;  %v3419_v17 = vmul.f32 %v4921_v48, %v3418_v50  ;;  %v3468_v25 = vor.u32 1.1754944e-38, %v3467_v42  ;;  %v3361_v54 = vmul.f32 0.5, %v7501_v30 }
 0xc0a   : > { %v3445_v24 = vmul.f32 %v3444_v28, %v7546_v11  ;;  %vm3466_vm6 = vcmp.eq.f32.partialorder %v3465_v60, 8.507059e+37 }
 0xc0b   : > { %v4048_v43 = vadd.f32 1.0, %v4374_v20  ;;  %v3420_v1 = vadd.f32 %v4921_v48, %v3419_v17 }
 0xc0d   : > { %v4064_v22 = vmul.f32 %v4048_v43, %v3376_v55  ;;  %v3424_v46 = vsel %vm3423_vm15, %v4921_v48, %v3420_v1  ;;  %v4923_v63 = vpop.eup %4922 }
 0xc0e   : > { %v3457_v0 = vmul.f32 %v4923_v63, %v3455_v44  ;;  %v3429_v23 = vsel %vm3426_vm1, %v3428_v6, %v3424_v46  ;;  %vm3462_vm3 = vweird.f32 %v4923_v63 }
 0xc0f   : > { %v4072_v2 = vpack.c.bf16 %v4064_v22, %v4063_v27  ;;  %v3430_v39 = vmul.f32 %v3429_v23, %v3405_v9  ;;  %vm3463_vm5 = vmor %vm3461_vm4, %vm3462_vm3 }
 0xc10   : > { %v3458_v29 = vsub.f32 1.0, %v3457_v0 }
 0xc11   : > { %4398 = vmatmul.msk.bf16.gmra.mxu3 %vm4109_vm2, %v4072_v2  ;;  %v4359_v15 = vclamps-f32 %v3430_v39, 1.0 }
 0xc12   : > { %v3459_v26 = vmul.f32 %v4923_v63, %v3458_v29 }
 0xc13   : > { %v4033_v18 = vadd.f32 1.0, %v4359_v15 }
 0xc14   : > { %v3460_v62 = vadd.f32 %v4923_v63, %v3459_v26 }
 0xc15   : > { %v4049_v48 = vmul.f32 %v4033_v18, %v3361_v54 }
 0xc16   : > { %v3464_v36 = vsel %vm3463_vm5, %v4923_v63, %v3460_v62 }
 0xc17   : > { %v3469_v12 = vsel %vm3466_vm6, %v3468_v25, %v3464_v36 }
 0xc18   : > { %v3470_v13 = vmul.f32 %v3469_v12, %v3445_v24 }
 0xc1a   : > { %v4360_v61 = vclamps-f32 %v3470_v13, 1.0 }
 0xc1c   : > { %v4034_v38 = vadd.f32 1.0, %v4360_v61 }
 0xc1e   : > { %v4050_v59 = vmul.f32 %v4034_v38, %v3362_v49 }
 0xc20   : > { %v4065_v40 = vpack.c.bf16 %v4050_v59, %v4049_v48 }
 0xc21   : > { %v4163_v58 = vpop.f32.mrf.mxu3 }
 0xc22   : > { %v4164_v3 = vadd.f32 %v7412_v52, %v4163_v58  ;;  %4391 = vmatmul.msk.bf16.vlgmr.msra.gmra.mxu0 %vm4109_vm2, %v4065_v40 }
 0xc24   : > { %v4191_v8 = vadd.f32 %v4164_v3, %v6794_v32 }
 0xc26   : > { %4207 = vst.msk [vmem:[%s7421_s18 + $0x40] sm:$0xff] %vm460_vm0, %v4191_v8 }
 0xc29   : > { %v4165_v34 = vpop.f32.mrf.mxu3 }
 0xc2a   : > { %v4166_v11 = vadd.f32 %v7412_v52, %v4165_v34 }
 0xc2c   : > { %v4192_v32 = vadd.f32 %v4166_v11, %v6808_v37 }
 0xc2e   : > { %4208 = vst.msk [vmem:[%s7421_s18 + $0x48] sm:$0xff] %vm460_vm0, %v4192_v32 }
 0xc45   : > { %v4168_v20 = vpop.f32.mrf.mxu3 }
 0xc46   : > { %v4169_v30 = vadd.f32 %v7412_v52, %v4168_v20 }
 0xc48   : > { %v4193_v16 = vadd.f32 %v4169_v30, %v6820_v10 }
 0xc4a   : > { %4209 = vst.msk [vmem:[%s7421_s18 + $0x50] sm:$0xff] %vm460_vm0, %v4193_v16 }
 0xc4d   : > { %v4170_v51 = vpop.f32.mrf.mxu3 }
 0xc4e   : > { %v4171_v53 = vadd.f32 %v7412_v52, %v4170_v51 }
 0xc50   : > { %v4194_v44 = vadd.f32 %v4171_v53, %v6834_v45 }
 0xc52   : > { %4210 = vst.msk [vmem:[%s7421_s18 + $0x58] sm:$0xff] %vm460_vm0, %v4194_v44 }
 0xc7c   : > { %v4173_v37 = vpop.f32.mrf.mxu3 }
 0xc7d   : > { %v4174_v14 = vadd.f32 %v7412_v52, %v4173_v37 }
 0xc7f   : > { %v4195_v55 = vadd.f32 %v4174_v14, %v6860_v4 }
 0xc81   : > { %4211 = vst.msk [vmem:[%s7421_s18 + $0x60] sm:$0xff] %vm460_vm0, %v4195_v55 }
 0xc84   : > { %v4175_v10 = vpop.f32.mrf.mxu3 }
 0xc85   : > { %v4176_v43 = vadd.f32 %v7412_v52, %v4175_v10 }
 0xc87   : > { %v4196_v50 = vadd.f32 %v4176_v43, %v6866_v19 }
 0xc89   : > { %4212 = vst.msk [vmem:[%s7421_s18 + $0x68] sm:$0xff] %vm460_vm0, %v4196_v50 }
 0xc94   : > { %v4178_v45 = vpop.f32.mrf.mxu3 }
 0xc95   : > { %v4179_v31 = vadd.f32 %v7412_v52, %v4178_v45 }
 0xc97   : > { %v4197_v27 = vadd.f32 %v4179_v31, %v6872_v35 }
 0xc99   : > { %4213 = vst.msk [vmem:[%s7421_s18 + $0x70] sm:$0xff] %vm460_vm0, %v4197_v27 }
 0xc9c   : > { %v4180_v22 = vpop.f32.mrf.mxu3 }
 0xc9d   : > { %v4181_v4 = vadd.f32 %v7412_v52, %v4180_v22 }
 0xc9f   : > { %v4198_v17 = vadd.f32 %v4181_v4, %v6890_v7  ;;  %v4143_v57 = vpop.f32.mrf.mxu0 }
 0xca0   : > { %v4144_v19 = vadd.f32 %v7412_v52, %v4143_v57 }
 0xca1   : > { %4214 = vst.msk [vmem:[%s7421_s18 + $0x78] sm:$0xff] %vm460_vm0, %v4198_v17 }
 0xca2   : > { %v4183_v47 = vadd.f32 %v4144_v19, %v6915_v56 }
 0xca4   : > { %4199 = vst.msk [vmem:[%s7421_s18] sm:$0xff] %vm460_vm0, %v4183_v47 }
 0xca7   : > { %v4145_v2 = vpop.f32.mrf.mxu0 }
 0xca8   : > { %v4146_v1 = vadd.f32 %v7412_v52, %v4145_v2 }
 0xcaa   : > { %v4184_v35 = vadd.f32 %v4146_v1, %v6885_v5 }
 0xcac   : > { %4200 = vst.msk [vmem:[%s7421_s18 + $0x8] sm:$0xff] %vm460_vm0, %v4184_v35 }
 0xcad PF: > { %s23_s25 = sadd.s32 1, %s4949_s25  }
 0xcae   : > { %p20_p4 = scmp.ge.s32.totalorder %s23_s25, 4  }
 0xcb0   :  { %22 = sbr.rel (!%p20_p4) target bundleno = 1 (0x1), region = 102 }

</bundles_post_ra>
